<compile_context>
chip_gen: v5e
topology: v5e:2x2
jax: 0.10.0
libtpu: 0.0.40
codegen_flags: <defaults>
</compile_context>

<pallas_src>
import functools

import jax
import jax.numpy as jnp
from jax.experimental import pallas as pl
from jax.experimental.pallas import tpu as pltpu

DROPOUT_RATE = 0.5
KEEP_SCALE = 1.0 / (1.0 - DROPOUT_RATE)

INPUT_SIZE = 273
LATENT_SIZE = 64
LAYER_1_SIZE = 256
LAYER_2_SIZE = 64
OUTPUT_SIZE = 273

_SUBLANE = 8


def _round_up(n, m):
    return ((n + m - 1) // m) * m


def _batch_tiling(batch, block_m):
    """Pick (bm, n_blocks) for the batch axis.

    * >= 2 grid steps whenever the batch allows it (v7x has 2 TensorCores),
    * bm is a multiple of 8 (sublane) and close to ceil(B / n_blocks), so the
      only wasted rows are the <8 masked rows of the partial last block,
    * never produces a fully out-of-bounds block (last block start < B).
    """
    n_blocks = max(2, pl.cdiv(batch, block_m))
    n_blocks = max(1, min(n_blocks, pl.cdiv(batch, _SUBLANE)))
    bm = _round_up(pl.cdiv(batch, n_blocks), _SUBLANE)
    return bm, n_blocks


def _vae_kernel(x_ref,
                w1_ref, b1_ref,
                wh_ref, bh_ref,      # fused mu||log_var head
                w3_ref, b3_ref,
                w4_ref, b4_ref,
                mask_ref, eps_ref,
                out_ref, head_ref):
    f32 = jnp.float32
    cdt = w1_ref.dtype  # MXU streaming dtype (bf16 or f32); accumulate in f32

    # encode: fc1 -> relu -> dropout (inverted; 1/(1-p) folded into the select)
    h1 = jnp.dot(x_ref[...].astype(cdt), w1_ref[...],
                 preferred_element_type=f32) + b1_ref[...]
    h1 = jnp.maximum(h1, 0.0)
    # NOTE: the mask is assumed to hold exact {0, 1} values.
    # TODO(synk): generate the keep-mask (and eps) in-kernel via
    # pltpu.prng_seed + pltpu.prng_random_bits to drop the (B, 256) HBM stream;
    # kept external so the pure-JAX reference sees the identical realization.
    h1 = jnp.where(mask_ref[...].astype(f32) > 0.0, h1 * KEEP_SCALE, 0.0)

    # fused heads: one lane-dense (256, 128) matmul instead of two N=64 matmuls
    head = jnp.dot(h1.astype(cdt), wh_ref[...],
                   preferred_element_type=f32) + bh_ref[...]
    mu = head[:, :LATENT_SIZE]
    log_var = head[:, LATENT_SIZE:]

    # reparameterize: z = mu + eps * exp(0.5 * log_var)
    z = mu + eps_ref[...].astype(f32) * jnp.exp(0.5 * log_var)

    # decode: fc3 -> relu -> fc4 -> sigmoid
    h3 = jnp.dot(z.astype(cdt), w3_ref[...],
                 preferred_element_type=f32) + b3_ref[...]
    h3 = jnp.maximum(h3, 0.0)
    logits = jnp.dot(h3.astype(cdt), w4_ref[...],
                     preferred_element_type=f32) + b4_ref[...]

    out_ref[...] = jax.nn.sigmoid(logits)   # exp + reciprocal land on the EUP
    head_ref[...] = head                    # lane-dense (bm, 128) store


def prepare_params(params, param_dtype=jnp.bfloat16):
    """One-time weight repack (call OUTSIDE the per-step hot path).

    Fuses the mu / log_var heads into a single lane-dense (256, 128) matmul and
    casts weights to the MXU streaming dtype.  Biases stay f32 (they are added
    on the f32 accumulator inside the kernel).  No shape padding is required.
    """
    f32 = jnp.float32
    return dict(
        w1=params["w1"].astype(param_dtype),
        b1=params["b1"].astype(f32),
        wh=jnp.concatenate([params["w21"], params["w22"]], axis=1).astype(param_dtype),
        bh=jnp.concatenate([params["b21"], params["b22"]], axis=1).astype(f32),
        w3=params["w3"].astype(param_dtype),
        b3=params["b3"].astype(f32),
        w4=params["w4"].astype(param_dtype),
        b4=params["b4"].astype(f32),
    )


@functools.partial(jax.jit, static_argnames=("block_m",))
def ngs_vae_forward(x, prepared, dropout_mask, eps, *, block_m=512):
    """x: (B, 273), dropout_mask: (B, 256) in {0,1}, eps: (B, 64).

    Returns (recon, mu, log_var) as f32 arrays of shapes (B,273), (B,64), (B,64).
    `prepared` is the output of prepare_params(); inputs may be f32 or bf16.
    """
    f32 = jnp.float32
    B = x.shape[0]

    # Cap block_m so the double-buffered per-step footprint stays comfortably
    # inside v7x's 64 MiB VMEM (32 MiB scoped default); 512-2048 is the sweet
    # spot for amortizing the ~0.35 us per-grid-step overhead at large B.
    block_m = min(int(block_m), 2048)
    bm, n_blocks = _batch_tiling(B, block_m)

    w1, b1 = prepared["w1"], prepared["b1"]
    wh, bh = prepared["wh"], prepared["bh"]
    w3, b3 = prepared["w3"], prepared["b3"]
    w4, b4 = prepared["w4"], prepared["b4"]

    def row_spec(cols):                      # batch-blocked activations
        return pl.BlockSpec((bm, cols), lambda i: (i, 0))

    def resident_spec(arr):                  # weights: DMA once, stay in VMEM
        return pl.BlockSpec(arr.shape, lambda i: (0, 0))

    in_specs = [
        row_spec(INPUT_SIZE),                # x (full 273-wide block, no padding)
        resident_spec(w1), resident_spec(b1),
        resident_spec(wh), resident_spec(bh),
        resident_spec(w3), resident_spec(b3),
        resident_spec(w4), resident_spec(b4),
        row_spec(LAYER_1_SIZE),              # dropout mask
        row_spec(LATENT_SIZE),               # eps
    ]
    out_specs = (row_spec(OUTPUT_SIZE), row_spec(2 * LATENT_SIZE))
    out_shapes = (
        jax.ShapeDtypeStruct((B, OUTPUT_SIZE), f32),
        jax.ShapeDtypeStruct((B, 2 * LATENT_SIZE), f32),
    )

    flops = 2 * B * (INPUT_SIZE * LAYER_1_SIZE
                     + LAYER_1_SIZE * 2 * LATENT_SIZE
                     + LATENT_SIZE * LAYER_2_SIZE
                     + LAYER_2_SIZE * OUTPUT_SIZE)
    transcendentals = B * (LATENT_SIZE + OUTPUT_SIZE)   # exp(0.5*lv) + sigmoid
    bytes_accessed = (
        sum(int(a.size) * a.dtype.itemsize
            for a in (x, dropout_mask, eps, w1, b1, wh, bh, w3, b3, w4, b4))
        + B * (OUTPUT_SIZE + 2 * LATENT_SIZE) * 4)

    recon, head = pl.pallas_call(
        _vae_kernel,
        out_shape=out_shapes,
        grid=(n_blocks,),
        in_specs=in_specs,
        out_specs=out_specs,
        compiler_params=pltpu.CompilerParams(
            dimension_semantics=("parallel",)),
        cost_estimate=pl.CostEstimate(flops=int(flops),
                                      transcendentals=int(transcendentals),
                                      bytes_accessed=int(bytes_accessed)),
    )(x, w1, b1, wh, bh, w3, b3, w4, b4, dropout_mask, eps)

    # Small (B, 64) slices of the lane-dense head; typically fused into the
    # consumer by XLA.
    mu = head[:, :LATENT_SIZE]
    log_var = head[:, LATENT_SIZE:]
    return recon, mu, log_var


def init_params(key):
    """Deterministic synthetic weights. Stored as (in, out); biases as (1, out)."""
    def linear(key, fan_in, fan_out):
        kw, kb = jax.random.split(key)
        bound = 1.0 / jnp.sqrt(fan_in)
        w = jax.random.uniform(kw, (fan_in, fan_out), jnp.float32, -bound, bound)
        b = jax.random.uniform(kb, (1, fan_out), jnp.float32, -bound, bound)
        return w, b

    k1, k21, k22, k3, k4 = jax.random.split(key, 5)
    w1, b1 = linear(k1, INPUT_SIZE, LAYER_1_SIZE)
    w21, b21 = linear(k21, LAYER_1_SIZE, LATENT_SIZE)
    w22, b22 = linear(k22, LAYER_1_SIZE, LATENT_SIZE)
    w3, b3 = linear(k3, LATENT_SIZE, LAYER_2_SIZE)
    w4, b4 = linear(k4, LAYER_2_SIZE, OUTPUT_SIZE)
    return dict(w1=w1, b1=b1, w21=w21, b21=b21, w22=w22, b22=b22,
                w3=w3, b3=b3, w4=w4, b4=b4)


if __name__ == "__main__":
    key = jax.random.PRNGKey(0)
    k_params, k_x, k_mask, k_eps = jax.random.split(key, 4)

    # B=300 is deliberately not a multiple of the row tile (bm=152, grid=2), so
    # the partial-last-block masking path is exercised.
    B = 300
    params = init_params(k_params)
    x = jax.random.uniform(k_x, (B, INPUT_SIZE), jnp.float32)
    dropout_mask = jax.random.bernoulli(
        k_mask, p=1.0 - DROPOUT_RATE, shape=(B, LAYER_1_SIZE)).astype(jnp.float32)
    eps = jax.random.normal(k_eps, (B, LATENT_SIZE), jnp.float32)

    # Pure-JAX f32 reference (same math, same mask/eps realization).
    h1 = jnp.maximum(x @ params["w1"] + params["b1"], 0.0)
    h1 = h1 * dropout_mask / (1.0 - DROPOUT_RATE)
    mu_ref = h1 @ params["w21"] + params["b21"]
    lv_ref = h1 @ params["w22"] + params["b22"]
    z = mu_ref + eps * jnp.exp(0.5 * lv_ref)
    h3 = jnp.maximum(z @ params["w3"] + params["b3"], 0.0)
    recon_ref = jax.nn.sigmoid(h3 @ params["w4"] + params["b4"])

    # 1) Default production path: bf16 weight/activation streams, f32 accumulate
    #    and f32 elementwise (relaxed tolerance vs. the f32 reference).
    prep_bf16 = prepare_params(params, jnp.bfloat16)
    recon, mu, log_var = ngs_vae_forward(
        x.astype(jnp.bfloat16), prep_bf16,
        dropout_mask.astype(jnp.bfloat16), eps.astype(jnp.bfloat16))
    jax.block_until_ready((recon, mu, log_var))
    assert recon.shape == (B, OUTPUT_SIZE) and mu.shape == (B, LATENT_SIZE)
    assert log_var.shape == (B, LATENT_SIZE)
    assert jnp.allclose(recon, recon_ref, atol=5e-2), "recon mismatch (bf16)"
    assert jnp.allclose(mu, mu_ref, atol=5e-2), "mu mismatch (bf16)"
    assert jnp.allclose(log_var, lv_ref, atol=5e-2), "log_var mismatch (bf16)"

    # 2) f32 path: tight reference check (structural changes are exact — no
    #    padding of K/N, partial-block masking only drops out-of-range rows).
    prep_f32 = prepare_params(params, jnp.float32)
    recon32, mu32, lv32 = ngs_vae_forward(x, prep_f32, dropout_mask, eps)
    jax.block_until_ready((recon32, mu32, lv32))
    assert jnp.allclose(recon32, recon_ref, atol=1e-5), "recon mismatch (f32)"
    assert jnp.allclose(mu32, mu_ref, atol=1e-5), "mu mismatch (f32)"
    assert jnp.allclose(lv32, lv_ref, atol=1e-5), "log_var mismatch (f32)"

    print("KERNEL_OK")
</pallas_src>

<mosaic_0001>
module attributes {stable_mosaic.version = 11 : i64} {
  func.func @_vae_kernel(%arg0: i32, %arg1: memref<152x273xbf16, #tpu.memory_space<vmem>>, %arg2: memref<273x256xbf16, #tpu.memory_space<vmem>>, %arg3: memref<1x256xf32, #tpu.memory_space<vmem>>, %arg4: memref<256x128xbf16, #tpu.memory_space<vmem>>, %arg5: memref<1x128xf32, #tpu.memory_space<vmem>>, %arg6: memref<64x64xbf16, #tpu.memory_space<vmem>>, %arg7: memref<1x64xf32, #tpu.memory_space<vmem>>, %arg8: memref<64x273xbf16, #tpu.memory_space<vmem>>, %arg9: memref<1x273xf32, #tpu.memory_space<vmem>>, %arg10: memref<152x256xbf16, #tpu.memory_space<vmem>>, %arg11: memref<152x64xbf16, #tpu.memory_space<vmem>>, %arg12: memref<152x273xf32, #tpu.memory_space<vmem>>, %arg13: memref<152x128xf32, #tpu.memory_space<vmem>>) attributes {dimension_semantics = [#tpu.dimension_semantics<parallel>], iteration_bounds = array<i64: 2>, scalar_prefetch = 0 : i64, scratch_operands = 0 : i64, tpu.core_type = #tpu.core_type<tc>, window_params = [{transform_indices = @transform_0, window_bounds = array<i64: 152, 273>}, {pipeline_mode = #tpu.pipeline_mode<synchronous>, transform_indices = @transform_1, window_bounds = array<i64: 273, 256>}, {pipeline_mode = #tpu.pipeline_mode<synchronous>, transform_indices = @transform_2, window_bounds = array<i64: 1, 256>}, {pipeline_mode = #tpu.pipeline_mode<synchronous>, transform_indices = @transform_3, window_bounds = array<i64: 256, 128>}, {pipeline_mode = #tpu.pipeline_mode<synchronous>, transform_indices = @transform_4, window_bounds = array<i64: 1, 128>}, {pipeline_mode = #tpu.pipeline_mode<synchronous>, transform_indices = @transform_5, window_bounds = array<i64: 64, 64>}, {pipeline_mode = #tpu.pipeline_mode<synchronous>, transform_indices = @transform_6, window_bounds = array<i64: 1, 64>}, {pipeline_mode = #tpu.pipeline_mode<synchronous>, transform_indices = @transform_7, window_bounds = array<i64: 64, 273>}, {pipeline_mode = #tpu.pipeline_mode<synchronous>, transform_indices = @transform_8, window_bounds = array<i64: 1, 273>}, {transform_indices = @transform_9, window_bounds = array<i64: 152, 256>}, {transform_indices = @transform_10, window_bounds = array<i64: 152, 64>}, {transform_indices = @transform_11, window_bounds = array<i64: 152, 273>}, {transform_indices = @transform_12, window_bounds = array<i64: 152, 128>}]} {
    %c0 = arith.constant 0 : index
    %c0_0 = arith.constant 0 : index
    %0 = vector.load %arg1[%c0, %c0_0] : memref<152x273xbf16, #tpu.memory_space<vmem>>, vector<152x273xbf16>
    %c0_1 = arith.constant 0 : index
    %c0_2 = arith.constant 0 : index
    %1 = vector.load %arg2[%c0_1, %c0_2] : memref<273x256xbf16, #tpu.memory_space<vmem>>, vector<273x256xbf16>
    %cst = arith.constant dense<0.000000e+00> : vector<152x256xf32>
    %2 = tpu.matmul %0, %1, %cst {dimension_numbers = #tpu.dot_dimension_numbers<[1], [0], [0], [1], [0, 0, 1, 1], [], []>} : vector<152x273xbf16>, vector<273x256xbf16>, vector<152x256xf32> -> vector<152x256xf32>
    %c0_3 = arith.constant 0 : index
    %c0_4 = arith.constant 0 : index
    %3 = vector.load %arg3[%c0_3, %c0_4] : memref<1x256xf32, #tpu.memory_space<vmem>>, vector<1x256xf32>
    %4 = vector.broadcast %3 : vector<1x256xf32> to vector<152x256xf32>
    %5 = arith.addf %2, %4 : vector<152x256xf32>
    %cst_5 = arith.constant 0.000000e+00 : f32
    %6 = vector.broadcast %cst_5 : f32 to vector<152x256xf32>
    %7 = arith.maximumf %5, %6 : vector<152x256xf32>
    %c0_6 = arith.constant 0 : index
    %c0_7 = arith.constant 0 : index
    %8 = vector.load %arg10[%c0_6, %c0_7] : memref<152x256xbf16, #tpu.memory_space<vmem>>, vector<152x256xbf16>
    %9 = arith.extf %8 : vector<152x256xbf16> to vector<152x256xf32>
    %cst_8 = arith.constant 0.000000e+00 : f32
    %10 = vector.broadcast %cst_8 : f32 to vector<152x256xf32>
    %11 = arith.cmpf ogt, %9, %10 : vector<152x256xf32>
    %cst_9 = arith.constant 2.000000e+00 : f32
    %12 = vector.broadcast %cst_9 : f32 to vector<152x256xf32>
    %13 = arith.mulf %7, %12 : vector<152x256xf32>
    %cst_10 = arith.constant 0.000000e+00 : f32
    %14 = vector.broadcast %cst_10 : f32 to vector<152x256xf32>
    %15 = arith.select %11, %13, %14 : vector<152x256xi1>, vector<152x256xf32>
    %16 = arith.truncf %15 : vector<152x256xf32> to vector<152x256xbf16>
    %c0_11 = arith.constant 0 : index
    %c0_12 = arith.constant 0 : index
    %17 = vector.load %arg4[%c0_11, %c0_12] : memref<256x128xbf16, #tpu.memory_space<vmem>>, vector<256x128xbf16>
    %cst_13 = arith.constant dense<0.000000e+00> : vector<152x128xf32>
    %18 = tpu.matmul %16, %17, %cst_13 {dimension_numbers = #tpu.dot_dimension_numbers<[1], [0], [0], [1], [0, 0, 1, 1], [], []>} : vector<152x256xbf16>, vector<256x128xbf16>, vector<152x128xf32> -> vector<152x128xf32>
    %c0_14 = arith.constant 0 : index
    %c0_15 = arith.constant 0 : index
    %19 = vector.load %arg5[%c0_14, %c0_15] : memref<1x128xf32, #tpu.memory_space<vmem>>, vector<1x128xf32>
    %20 = vector.broadcast %19 : vector<1x128xf32> to vector<152x128xf32>
    %21 = arith.addf %18, %20 : vector<152x128xf32>
    %22 = vector.extract_strided_slice %21 {offsets = [0, 0], sizes = [152, 64], strides = [1, 1]} : vector<152x128xf32> to vector<152x64xf32>
    %23 = vector.extract_strided_slice %21 {offsets = [0, 64], sizes = [152, 64], strides = [1, 1]} : vector<152x128xf32> to vector<152x64xf32>
    %c0_16 = arith.constant 0 : index
    %c0_17 = arith.constant 0 : index
    %24 = vector.load %arg11[%c0_16, %c0_17] : memref<152x64xbf16, #tpu.memory_space<vmem>>, vector<152x64xbf16>
    %25 = arith.extf %24 : vector<152x64xbf16> to vector<152x64xf32>
    %cst_18 = arith.constant 5.000000e-01 : f32
    %26 = vector.broadcast %cst_18 : f32 to vector<152x64xf32>
    %27 = arith.mulf %26, %23 : vector<152x64xf32>
    %28 = math.exp %27 : vector<152x64xf32>
    %29 = arith.mulf %25, %28 : vector<152x64xf32>
    %30 = arith.addf %22, %29 : vector<152x64xf32>
    %31 = arith.truncf %30 : vector<152x64xf32> to vector<152x64xbf16>
    %c0_19 = arith.constant 0 : index
    %c0_20 = arith.constant 0 : index
    %32 = vector.load %arg6[%c0_19, %c0_20] : memref<64x64xbf16, #tpu.memory_space<vmem>>, vector<64x64xbf16>
    %cst_21 = arith.constant dense<0.000000e+00> : vector<152x64xf32>
    %33 = tpu.matmul %31, %32, %cst_21 {dimension_numbers = #tpu.dot_dimension_numbers<[1], [0], [0], [1], [0, 0, 1, 1], [], []>} : vector<152x64xbf16>, vector<64x64xbf16>, vector<152x64xf32> -> vector<152x64xf32>
    %c0_22 = arith.constant 0 : index
    %c0_23 = arith.constant 0 : index
    %34 = vector.load %arg7[%c0_22, %c0_23] : memref<1x64xf32, #tpu.memory_space<vmem>>, vector<1x64xf32>
    %35 = vector.broadcast %34 : vector<1x64xf32> to vector<152x64xf32>
    %36 = arith.addf %33, %35 : vector<152x64xf32>
    %cst_24 = arith.constant 0.000000e+00 : f32
    %37 = vector.broadcast %cst_24 : f32 to vector<152x64xf32>
    %38 = arith.maximumf %36, %37 : vector<152x64xf32>
    %39 = arith.truncf %38 : vector<152x64xf32> to vector<152x64xbf16>
    %c0_25 = arith.constant 0 : index
    %c0_26 = arith.constant 0 : index
    %40 = vector.load %arg8[%c0_25, %c0_26] : memref<64x273xbf16, #tpu.memory_space<vmem>>, vector<64x273xbf16>
    %cst_27 = arith.constant dense<0.000000e+00> : vector<152x273xf32>
    %41 = tpu.matmul %39, %40, %cst_27 {dimension_numbers = #tpu.dot_dimension_numbers<[1], [0], [0], [1], [0, 0, 1, 1], [], []>} : vector<152x64xbf16>, vector<64x273xbf16>, vector<152x273xf32> -> vector<152x273xf32>
    %c0_28 = arith.constant 0 : index
    %c0_29 = arith.constant 0 : index
    %42 = vector.load %arg9[%c0_28, %c0_29] : memref<1x273xf32, #tpu.memory_space<vmem>>, vector<1x273xf32>
    %43 = vector.broadcast %42 : vector<1x273xf32> to vector<152x273xf32>
    %44 = arith.addf %41, %43 : vector<152x273xf32>
    %45 = arith.negf %44 : vector<152x273xf32>
    %46 = math.exp %45 : vector<152x273xf32>
    %cst_30 = arith.constant 1.000000e+00 : f32
    %47 = vector.broadcast %cst_30 : f32 to vector<152x273xf32>
    %48 = arith.addf %47, %46 : vector<152x273xf32>
    %49 = arith.divf %47, %48 : vector<152x273xf32>
    %c0_31 = arith.constant 0 : index
    %c0_32 = arith.constant 0 : index
    %50 = vector.load %arg12[%c0_31, %c0_32] : memref<152x273xf32, #tpu.memory_space<vmem>>, vector<152x273xf32>
    tpu.vector_store %arg12[%c0_31, %c0_32], %49 {strides = array<i32>} : memref<152x273xf32, #tpu.memory_space<vmem>>, vector<152x273xf32>,
    %c0_33 = arith.constant 0 : index
    %c0_34 = arith.constant 0 : index
    %51 = vector.load %arg13[%c0_33, %c0_34] : memref<152x128xf32, #tpu.memory_space<vmem>>, vector<152x128xf32>
    tpu.vector_store %arg13[%c0_33, %c0_34], %21 {strides = array<i32>} : memref<152x128xf32, #tpu.memory_space<vmem>>, vector<152x128xf32>,
    return
  }
  func.func @transform_0(%arg0: i32) -> (i32, i32) {
    %c0_i32 = arith.constant 0 : i32
    %c0_i32_0 = arith.constant 0 : i32
    return %arg0, %c0_i32 : i32, i32
  }
  func.func @transform_1(%arg0: i32) -> (i32, i32) {
    %c0_i32 = arith.constant 0 : i32
    %c0_i32_0 = arith.constant 0 : i32
    %c0_i32_1 = arith.constant 0 : i32
    return %c0_i32, %c0_i32_0 : i32, i32
  }
  func.func @transform_2(%arg0: i32) -> (i32, i32) {
    %c0_i32 = arith.constant 0 : i32
    %c0_i32_0 = arith.constant 0 : i32
    %c0_i32_1 = arith.constant 0 : i32
    return %c0_i32, %c0_i32_0 : i32, i32
  }
  func.func @transform_3(%arg0: i32) -> (i32, i32) {
    %c0_i32 = arith.constant 0 : i32
    %c0_i32_0 = arith.constant 0 : i32
    %c0_i32_1 = arith.constant 0 : i32
    return %c0_i32, %c0_i32_0 : i32, i32
  }
  func.func @transform_4(%arg0: i32) -> (i32, i32) {
    %c0_i32 = arith.constant 0 : i32
    %c0_i32_0 = arith.constant 0 : i32
    %c0_i32_1 = arith.constant 0 : i32
    return %c0_i32, %c0_i32_0 : i32, i32
  }
  func.func @transform_5(%arg0: i32) -> (i32, i32) {
    %c0_i32 = arith.constant 0 : i32
    %c0_i32_0 = arith.constant 0 : i32
    %c0_i32_1 = arith.constant 0 : i32
    return %c0_i32, %c0_i32_0 : i32, i32
  }
  func.func @transform_6(%arg0: i32) -> (i32, i32) {
    %c0_i32 = arith.constant 0 : i32
    %c0_i32_0 = arith.constant 0 : i32
    %c0_i32_1 = arith.constant 0 : i32
    return %c0_i32, %c0_i32_0 : i32, i32
  }
  func.func @transform_7(%arg0: i32) -> (i32, i32) {
    %c0_i32 = arith.constant 0 : i32
    %c0_i32_0 = arith.constant 0 : i32
    %c0_i32_1 = arith.constant 0 : i32
    return %c0_i32, %c0_i32_0 : i32, i32
  }
  func.func @transform_8(%arg0: i32) -> (i32, i32) {
    %c0_i32 = arith.constant 0 : i32
    %c0_i32_0 = arith.constant 0 : i32
    %c0_i32_1 = arith.constant 0 : i32
    return %c0_i32, %c0_i32_0 : i32, i32
  }
  func.func @transform_9(%arg0: i32) -> (i32, i32) {
    %c0_i32 = arith.constant 0 : i32
    %c0_i32_0 = arith.constant 0 : i32
    return %arg0, %c0_i32 : i32, i32
  }
  func.func @transform_10(%arg0: i32) -> (i32, i32) {
    %c0_i32 = arith.constant 0 : i32
    %c0_i32_0 = arith.constant 0 : i32
    return %arg0, %c0_i32 : i32, i32
  }
  func.func @transform_11(%arg0: i32) -> (i32, i32) {
    %c0_i32 = arith.constant 0 : i32
    %c0_i32_0 = arith.constant 0 : i32
    return %arg0, %c0_i32 : i32, i32
  }
  func.func @transform_12(%arg0: i32) -> (i32, i32) {
    %c0_i32 = arith.constant 0 : i32
    %c0_i32_0 = arith.constant 0 : i32
    return %arg0, %c0_i32 : i32, i32
  }
}

</mosaic_0001>

<bundles_post_ra>
// kernel: ngs_vae_forward.1
= control target key start
LH: loop header
LB: loop body
LE: loop exit
PB: predicated region body
PF: predicated region fallthrough
CT: control target
= control target key end

     0   :  { %s4743_s21 = smov 0   ;;  %s6802_s0 = inlined_call_operand.vmem [shape: bf16[300,273], index: 0, kind: input, shape index: {}]   ;;  %s6803_s1 = inlined_call_operand.vmem [shape: bf16[273,256], index: 1, kind: input, shape index: {}]   ;;  %s6804_s2 = inlined_call_operand.vmem [shape: f32[1,256], index: 2, kind: input, shape index: {}]   ;;  %s6805_s3 = inlined_call_operand.vmem [shape: bf16[256,128], index: 3, kind: input, shape index: {}]   ;;  %s6806_s4 = inlined_call_operand.vmem [shape: f32[1,128], index: 4, kind: input, shape index: {}]   ;;  %s6807_s5 = inlined_call_operand.vmem [shape: bf16[64,64], index: 5, kind: input, shape index: {}]   ;;  %s6808_s6 = inlined_call_operand.vmem [shape: f32[1,64], index: 6, kind: input, shape index: {}]   ;;  %s6809_s7 = inlined_call_operand.vmem [shape: bf16[64,273], index: 7, kind: input, shape index: {}]   ;;  %s6810_s8 = inlined_call_operand.vmem [shape: f32[1,273], index: 8, kind: input, shape index: {}]   ;;  %s6811_s9 = inlined_call_operand.vmem [shape: bf16[300,256], index: 9, kind: input, shape index: {}]   ;;  %s6812_s10 = inlined_call_operand.vmem [shape: bf16[300,64], index: 10, kind: input, shape index: {}]   ;;  %s6813_s11 = inlined_call_operand.vmem [shape: f32[300,273], index: 11, kind: output, shape index: {0}]   ;;  %s6814_s12 = inlined_call_operand.vmem [shape: f32[300,128], index: 12, kind: output, shape index: {1}]  }
   0x1 LB: > { %s3688_s22 = sadd.s32 4294967295, %s4674_s21   ;;  %p3692_p0 = scmp.ge.s32.totalorder %s4674_s21, 1  ;;  %s4674_s21 = sphi %s4743_s21, %s23_s21  }
   0x2   : > { %p390_p1 = scmp.lt.s32.totalorder %s4674_s21, 3 }
   0x4   : > { %p391_p2 = pnand %p3692_p0, %p390_p1 }
   0x5   : > { %s450_s29 = smul.u32 (!%p391_p2), 19, %s3688_s22 }
   0x6   : > { %394 = sbr.rel (%p391_p2) target bundleno = 1157 (0x485), region = 64 }
   0x7   : > { %p451_p3 = scmp.lt.s32.totalorder (!%p391_p2), %s450_s29, 37 }
   0xb   : > { %v3865_v0 = vld [vmem:[%s6803_s1 + $0x70] sm:$0xf]  ;;  %v4293_v1 = vld [vmem:[%s6803_s1 + $0x74] sm:$0xf0]  ;;  %v3857_v5 = vld [vmem:[%s6803_s1 + $0x60] sm:$0xf] }
   0xc   : > { %v3929_v2 = vld [vmem:[%s6803_s1 + $0xf0] sm:$0xf]  ;;  %v3866_v3 = vor.u32 %v4293_v1, %v3865_v0  ;;  %v4309_v4 = vld [vmem:[%s6803_s1 + $0xf4] sm:$0xf0]  ;;  %v4291_v6 = vld [vmem:[%s6803_s1 + $0x64] sm:$0xf0] }
   0xd   : > { %v3930_v7 = vor.u32 %v4309_v4, %v3929_v2  ;;  %v3921_v8 = vld [vmem:[%s6803_s1 + $0xe0] sm:$0xf]  ;;  %v4307_v9 = vld [vmem:[%s6803_s1 + $0xe4] sm:$0xf0]  ;;  %v4778_v10 = vld [vmem:[%s6803_s1 + $0x110] sm:$0x11]  ;;  %v3858_v11 = vor.u32 %v4291_v6, %v3857_v5 }
   0xe   : > { %923 = vmatpush.bf16.msra.mxu0 %v3866_v3  ;;  %v811_v12 = vunpack.c.l.b16 %v4778_v10  ;;  %vm914_vm0 = vcmask 1040384   ;;  %v3922_v13 = vor.u32 %v4307_v9, %v3921_v8  ;;  %v4676_v14 = vmov 0   ;;  %v3849_v16 = vld [vmem:[%s6803_s1 + $0x50] sm:$0xf]  ;;  %v4289_v17 = vld [vmem:[%s6803_s1 + $0x54] sm:$0xf0] }
   0xf   : > { %981 = vmatpush.bf16.msra.mxu1 %v3930_v7  ;;  %v4781_v15 = vsel %vm914_vm0, 65535, %v4676_v14  ;;  %v3913_v19 = vld [vmem:[%s6803_s1 + $0xd0] sm:$0xf]  ;;  %v4305_v20 = vld [vmem:[%s6803_s1 + $0xd4] sm:$0xf0]  ;;  %v3850_v24 = vor.u32 %v4289_v17, %v3849_v16  ;;  %s6904_s29 = smov (!%p451_p3, %s450_s29), 37  ;;  %v812_v58 = vunpack.c.h.b16 %v4778_v10 }
  0x10   : > { %v847_v18 = vpack.c.b16 %v811_v12, %v811_v12  ;;  %v3937_v21 = vld [vmem:[%s6803_s1 + $0x100] sm:$0xf]  ;;  %v4311_v22 = vld [vmem:[%s6803_s1 + $0x104] sm:$0xf0]  ;;  %v3914_v25 = vor.u32 %v4305_v20, %v3913_v19  ;;  %s4388_s30 = smul.u32 12, %s6904_s29  ;;  %vm883_vm1 = vcmask 138240  }
  0x11   : > { %v3841_v26 = vld [vmem:[%s6803_s1 + $0x40] sm:$0xf]  ;;  %v4287_v27 = vld [vmem:[%s6803_s1 + $0x44] sm:$0xf0]  ;;  %v3938_v28 = vor.u32 %v4311_v22, %v3937_v21  ;;  %v4308_v32 = vld [vmem:[%s6803_s1 + $0xf4] sm:$0xf]  ;;  %v848_v3 = vpack.c.b16 %v812_v58, %v812_v58 }
  0x12   : > { %924 = vmatpush.bf16.msra.mxu0 %v3858_v11  ;;  %v918_v23 = vand.u32 %v4781_v15, %v847_v18  ;;  %v3905_v29 = vld [vmem:[%s6803_s1 + $0xc0] sm:$0xf]  ;;  %v4303_v30 = vld [vmem:[%s6803_s1 + $0xc4] sm:$0xf0]  ;;  %v3842_v31 = vor.u32 %v4287_v27, %v3841_v26  ;;  %v3931_v33 = vld [vmem:[%s6803_s1 + $0xf8] sm:$0xf0]  ;;  %s4826_s19 = scalar_lea.vmem %s6802_s0, %s4388_s30 }
  0x13   : > { %982 = vmatpush.bf16.msra.mxu1 %v3922_v13  ;;  %v3906_v34 = vor.u32 %v4303_v30, %v3905_v29  ;;  %v3833_v35 = vld [vmem:[%s6803_s1 + $0x30] sm:$0xf]  ;;  %v4285_v36 = vld [vmem:[%s6803_s1 + $0x34] sm:$0xf0]  ;;  %v3934_v38 = vor.u32 %v4308_v32, %v3931_v33  ;;  %v3709_v39 = vld [vmem:[%s4826_s19 + $0x8] sm:$0xf]  ;;  %v921_v11 = vand.u32 %v4781_v15, %v848_v3 }
  0x14   : > { %1045 = vmatpush.bf16.msra.mxu2 %v918_v23  ;;  %v3897_v37 = vld [vmem:[%s6803_s1 + $0xb0] sm:$0xf]  ;;  %v4253_v40 = vld [vmem:[%s4826_s19 + $0x10] sm:$0xf0]  ;;  %v4301_v41 = vld [vmem:[%s6803_s1 + $0xb4] sm:$0xf0]  ;;  %v3834_v43 = vor.u32 %v4285_v36, %v3833_v35 }
  0x15   : > { %v4842_v42 = vor.u32 %v4253_v40, %v3709_v39  ;;  %v3898_v44 = vor.u32 %v4301_v41, %v3897_v37  ;;  %v3825_v45 = vld [vmem:[%s6803_s1 + $0x20] sm:$0xf]  ;;  %v4283_v46 = vld [vmem:[%s6803_s1 + $0x24] sm:$0xf0]  ;;  %v4306_v49 = vld [vmem:[%s6803_s1 + $0xe4] sm:$0xf] }
  0x16   : > { %925 = vmatpush.bf16.msra.mxu0 %v3850_v24  ;;  %v3889_v47 = vld [vmem:[%s6803_s1 + $0xa0] sm:$0xf]  ;;  %v4299_v48 = vld [vmem:[%s6803_s1 + $0xa4] sm:$0xf0]  ;;  %v3923_v50 = vld [vmem:[%s6803_s1 + $0xe8] sm:$0xf0]  ;;  %v3826_v51 = vor.u32 %v4283_v46, %v3825_v45 }
  0x17   : > { %983 = vmatpush.bf16.msra.mxu1 %v3914_v25  ;;  %v3817_v52 = vld [vmem:[%s6803_s1 + $0x10] sm:$0xf]  ;;  %v3926_v53 = vor.u32 %v4306_v49, %v3923_v50  ;;  %v3890_v54 = vor.u32 %v4299_v48, %v3889_v47  ;;  %v4281_v55 = vld [vmem:[%s6803_s1 + $0x14] sm:$0xf0]  ;;  %v3721_v61 = vld [vmem:[%s4826_s19 + $0x20] sm:$0xf] }
  0x18   : > { %1046 = vmatpush.bf16.msra.mxu2 %v3938_v28  ;;  %v3881_v56 = vld [vmem:[%s6803_s1 + $0x90] sm:$0xf]  ;;  %v4297_v57 = vld [vmem:[%s6803_s1 + $0x94] sm:$0xf0]  ;;  %v3818_v59 = vor.u32 %v4281_v55, %v3817_v52  ;;  %v3809_v62 = vld [vmem:[%s6803_s1] sm:$0xf] }
  0x19   : > { %v3882_v60 = vor.u32 %v4297_v57, %v3881_v56  ;;  %v4279_v63 = vld [vmem:[%s6803_s1 + $0x4] sm:$0xf0]  ;;  %v4256_v0 = vld [vmem:[%s4826_s19 + $0x28] sm:$0xf0]  ;;  %v3873_v1 = vld [vmem:[%s6803_s1 + $0x80] sm:$0xf] }
  0x1a   : > { %926 = vmatpush.bf16.msra.mxu0 %v3842_v31  ;;  %v4295_v2 = vld [vmem:[%s6803_s1 + $0x84] sm:$0xf0]  ;;  %v3810_v4 = vor.u32 %v4279_v63, %v3809_v62  ;;  %v3701_v5 = vld [vmem:[%s4826_s19] sm:$0xf]  ;;  %v4252_v6 = vld [vmem:[%s4826_s19 + $0x8] sm:$0xf0]  ;;  %v4893_v7 = vor.u32 %v4256_v0, %v3721_v61 }
  0x1b   : > { %3943 = vmatmul.msk.bf16.vlgmr.msra.gmra.mxu2 %vm883_vm1, %v4842_v42  ;;  %984 = vmatpush.bf16.msra.mxu1 %v3906_v34  ;;  %v3874_v8 = vor.u32 %v4295_v2, %v3873_v1  ;;  %v4251_v9 = vld [vmem:[%s4826_s19 + $0x4] sm:$0xf]  ;;  %v3703_v10 = vld [vmem:[%s4826_s19 + $0xc] sm:$0xf0]  ;;  %v4898_v12 = vor.u32 %v4252_v6, %v3701_v5  ;;  %v4304_v14 = vld [vmem:[%s6803_s1 + $0xd4] sm:$0xf] }
  0x1c   : > { %1155 = vmatpush.bf16.msrb.mxu2 %v3934_v38  ;;  %v4900_v13 = vor.u32 %v4251_v9, %v3703_v10  ;;  %v3915_v15 = vld [vmem:[%s6803_s1 + $0xd8] sm:$0xf0]  ;;  %v3733_v17 = vld [vmem:[%s4826_s19 + $0x38] sm:$0xf]  ;;  %v4259_v18 = vld [vmem:[%s4826_s19 + $0x40] sm:$0xf0] }
  0x1d   : > { %v3918_v16 = vor.u32 %v4304_v14, %v3915_v15  ;;  %v3713_v19 = vld [vmem:[%s4826_s19 + $0x18] sm:$0xf]  ;;  %v4255_v20 = vld [vmem:[%s4826_s19 + $0x20] sm:$0xf0]  ;;  %v4916_v21 = vor.u32 %v4259_v18, %v3733_v17  ;;  %v4254_v22 = vld [vmem:[%s4826_s19 + $0x1c] sm:$0xf] }
  0x1e   : > { %927 = vmatpush.bf16.msra.mxu0 %v3834_v43  ;;  %v3715_v23 = vld [vmem:[%s4826_s19 + $0x24] sm:$0xf0]  ;;  %v4920_v24 = vor.u32 %v4255_v20, %v3713_v19  ;;  %v4302_v26 = vld [vmem:[%s6803_s1 + $0xc4] sm:$0xf]  ;;  %v3907_v27 = vld [vmem:[%s6803_s1 + $0xc8] sm:$0xf0] }
  0x1f   : > { %985 = vmatpush.bf16.msra.mxu1 %v3898_v44  ;;  %v4922_v25 = vor.u32 %v4254_v22, %v3715_v23  ;;  %v3910_v28 = vor.u32 %v4302_v26, %v3907_v27  ;;  %v3745_v29 = vld [vmem:[%s4826_s19 + $0x50] sm:$0xf]  ;;  %v4262_v30 = vld [vmem:[%s4826_s19 + $0x58] sm:$0xf0]  ;;  %v4257_v34 = vld [vmem:[%s4826_s19 + $0x34] sm:$0xf] }
  0x20   : > { %1156 = vmatpush.bf16.msrb.mxu2 %v3926_v53  ;;  %v3725_v31 = vld [vmem:[%s4826_s19 + $0x30] sm:$0xf]  ;;  %v4258_v32 = vld [vmem:[%s4826_s19 + $0x38] sm:$0xf0]  ;;  %v4938_v33 = vor.u32 %v4262_v30, %v3745_v29  ;;  %v3727_v35 = vld [vmem:[%s4826_s19 + $0x3c] sm:$0xf0] }
  0x21   : > { %v4942_v36 = vor.u32 %v4258_v32, %v3725_v31  ;;  %v4944_v37 = vor.u32 %v4257_v34, %v3727_v35  ;;  %v4300_v38 = vld [vmem:[%s6803_s1 + $0xb4] sm:$0xf]  ;;  %v3899_v39 = vld [vmem:[%s6803_s1 + $0xb8] sm:$0xf0]  ;;  %v3757_v41 = vld [vmem:[%s4826_s19 + $0x68] sm:$0xf] }
  0x22   : > { %928 = vmatpush.bf16.msra.mxu0 %v3826_v51  ;;  %v3902_v40 = vor.u32 %v4300_v38, %v3899_v39  ;;  %v4265_v43 = vld [vmem:[%s4826_s19 + $0x70] sm:$0xf0]  ;;  %v3737_v44 = vld [vmem:[%s4826_s19 + $0x48] sm:$0xf]  ;;  %v4260_v47 = vld [vmem:[%s4826_s19 + $0x4c] sm:$0xf] }
  0x23   : > { %986 = vmatpush.bf16.msra.mxu1 %v3890_v54  ;;  %v4261_v45 = vld [vmem:[%s4826_s19 + $0x50] sm:$0xf0]  ;;  %v4960_v46 = vor.u32 %v4265_v43, %v3757_v41  ;;  %v3739_v48 = vld [vmem:[%s4826_s19 + $0x54] sm:$0xf0]  ;;  %v4310_v51 = vld [vmem:[%s6803_s1 + $0x104] sm:$0xf] }
  0x24   : > { %1157 = vmatpush.bf16.msrb.mxu2 %v3918_v16  ;;  %v4964_v49 = vor.u32 %v4261_v45, %v3737_v44  ;;  %v4966_v50 = vor.u32 %v4260_v47, %v3739_v48  ;;  %v3939_v52 = vld [vmem:[%s6803_s1 + $0x108] sm:$0xf0]  ;;  %v3769_v54 = vld [vmem:[%s4826_s19 + $0x80] sm:$0xf]  ;;  %v4298_v63 = vld [vmem:[%s6803_s1 + $0xa4] sm:$0xf] }
  0x25   : > { %v3942_v53 = vor.u32 %v4310_v51, %v3939_v52  ;;  %v4268_v55 = vld [vmem:[%s4826_s19 + $0x88] sm:$0xf0]  ;;  %v3749_v56 = vld [vmem:[%s4826_s19 + $0x60] sm:$0xf]  ;;  %v4292_v2 = vld [vmem:[%s6803_s1 + $0x74] sm:$0xf] }
  0x26   : > { %929 = vmatpush.bf16.msra.mxu0 %v3818_v59  ;;  %v4264_v57 = vld [vmem:[%s4826_s19 + $0x68] sm:$0xf0]  ;;  %v4982_v58 = vor.u32 %v4268_v55, %v3769_v54  ;;  %v4263_v59 = vld [vmem:[%s4826_s19 + $0x64] sm:$0xf]  ;;  %v3867_v3 = vld [vmem:[%s6803_s1 + $0x78] sm:$0xf0] }
  0x27   : > { %987 = vmatpush.bf16.msra.mxu1 %v3882_v60  ;;  %v3751_v60 = vld [vmem:[%s4826_s19 + $0x6c] sm:$0xf0]  ;;  %v4986_v61 = vor.u32 %v4264_v57, %v3749_v56  ;;  %v3891_v0 = vld [vmem:[%s6803_s1 + $0xa8] sm:$0xf0]  ;;  %v3870_v5 = vor.u32 %v4292_v2, %v3867_v3  ;;  %v3781_v9 = vld [vmem:[%s4826_s19 + $0x98] sm:$0xf] }
  0x28   : > { %1158 = vmatpush.bf16.msrb.mxu2 %v3910_v28  ;;  %v4988_v62 = vor.u32 %v4263_v59, %v3751_v60  ;;  %v3894_v1 = vor.u32 %v4298_v63, %v3891_v0  ;;  %v3859_v6 = vld [vmem:[%s6803_s1 + $0x68] sm:$0xf0]  ;;  %v4271_v10 = vld [vmem:[%s4826_s19 + $0xa0] sm:$0xf0]  ;;  %v4266_v16 = vld [vmem:[%s4826_s19 + $0x7c] sm:$0xf] }
  0x29   : > { %1097 = vmatpush.bf16.msra.mxu3 %v3870_v5  ;;  %v4267_v14 = vld [vmem:[%s4826_s19 + $0x80] sm:$0xf0]  ;;  %v5016_v15 = vor.u32 %v4271_v10, %v3781_v9  ;;  %v3763_v17 = vld [vmem:[%s4826_s19 + $0x84] sm:$0xf0]  ;;  %v4288_v20 = vld [vmem:[%s6803_s1 + $0x54] sm:$0xf] }
  0x2a   : > { %930 = vmatpush.bf16.msra.mxu0 %v3810_v4  ;;  %v4290_v4 = vld [vmem:[%s6803_s1 + $0x64] sm:$0xf]  ;;  %v5022_v19 = vor.u32 %v4266_v16, %v3763_v17  ;;  %v3851_v22 = vld [vmem:[%s6803_s1 + $0x58] sm:$0xf0]  ;;  %v4296_v26 = vld [vmem:[%s6803_s1 + $0x94] sm:$0xf] }
  0x2b   : > { %3944 = vmatmul.msk.bf16.gmra.mxu2 %vm883_vm1, %v4893_v7  ;;  %988 = vmatpush.bf16.msra.mxu1 %v3874_v8  ;;  %v3862_v8 = vor.u32 %v4290_v4, %v3859_v6  ;;  %v3854_v23 = vor.u32 %v4288_v20, %v3851_v22  ;;  %v3883_v27 = vld [vmem:[%s6803_s1 + $0x98] sm:$0xf0]  ;;  %v4286_v28 = vld [vmem:[%s6803_s1 + $0x44] sm:$0xf]  ;;  %v3843_v30 = vld [vmem:[%s6803_s1 + $0x48] sm:$0xf0] }
  0x2c   : > { %1159 = vmatpush.bf16.msrb.mxu2 %v3902_v40  ;;  %v3886_v29 = vor.u32 %v4296_v26, %v3883_v27  ;;  %v3846_v31 = vor.u32 %v4286_v28, %v3843_v30  ;;  %v4284_v32 = vld [vmem:[%s6803_s1 + $0x34] sm:$0xf]  ;;  %v3835_v34 = vld [vmem:[%s6803_s1 + $0x38] sm:$0xf0]  ;;  %v3793_v35 = vld [vmem:[%s4826_s19 + $0xb0] sm:$0xf] }
  0x2d   : > { %931 = vmatmul.bf16.vlgmr.msra.gmra.mxu0 %v4898_v12  ;;  %1098 = vmatpush.bf16.msra.mxu3 %v3862_v8  ;;  %v4274_v38 = vld [vmem:[%s4826_s19 + $0xb8] sm:$0xf0]  ;;  %v3838_v39 = vor.u32 %v4284_v32, %v3835_v34  ;;  %v3773_v40 = vld [vmem:[%s4826_s19 + $0x90] sm:$0xf]  ;;  %v4282_v43 = vld [vmem:[%s6803_s1 + $0x24] sm:$0xf] }
  0x2e   : > { %1219 = vmatpush.bf16.msrb.mxu0 %v921_v11  ;;  %989 = vmatmul.bf16.vlgmr.msra.gmra.mxu1 %v4900_v13  ;;  %v3761_v11 = vld [vmem:[%s4826_s19 + $0x78] sm:$0xf]  ;;  %v4270_v41 = vld [vmem:[%s4826_s19 + $0x98] sm:$0xf0]  ;;  %v3827_v44 = vld [vmem:[%s6803_s1 + $0x28] sm:$0xf0]  ;;  %v5062_v45 = vor.u32 %v4274_v38, %v3793_v35 }
  0x2f   : > { %v5020_v18 = vor.u32 %v4267_v14, %v3761_v11  ;;  %v4269_v47 = vld [vmem:[%s4826_s19 + $0x94] sm:$0xf]  ;;  %v3775_v48 = vld [vmem:[%s4826_s19 + $0x9c] sm:$0xf0]  ;;  %v3830_v51 = vor.u32 %v4282_v43, %v3827_v44  ;;  %v5066_v52 = vor.u32 %v4270_v41, %v3773_v40  ;;  %v3819_v55 = vld [vmem:[%s6803_s1 + $0x18] sm:$0xf0] }
  0x30   : > { %1160 = vmatpush.bf16.msrb.mxu2 %v3894_v1  ;;  %v4280_v54 = vld [vmem:[%s6803_s1 + $0x14] sm:$0xf]  ;;  %v4319_v57 = vld [vmem:[%s6805_s3 + $0x38] sm:$0xff]  ;;  %v4278_v59 = vld [vmem:[%s6803_s1 + $0x4] sm:$0xf]  ;;  %s3696_s13 = sshll.u32 %s6904_s29, 2 }
  0x31   : > { %1099 = vmatpush.bf16.msra.mxu3 %v3854_v23  ;;  %v3822_v56 = vor.u32 %v4280_v54, %v3819_v55  ;;  %v3811_v60 = vld [vmem:[%s6803_s1 + $0x8] sm:$0xf0]  ;;  %1632 = vmatpush.bf16.msrb.mxu1 %v4319_v57  ;;  %v4318_v0 = vld [vmem:[%s6805_s3 + $0x30] sm:$0xff]  ;;  %v4294_v1 = vld [vmem:[%s6803_s1 + $0x84] sm:$0xf]  ;;  %s5674_s16 = scalar_lea.vmem %s6812_s10, %s3696_s13  ;;  %s4389_s30 = smul.u32 24, %s6904_s29 }
  0x32   : > { %1220 = vmatpush.bf16.msrb.mxu0 %v3942_v53  ;;  %v5068_v53 = vor.u32 %v4269_v47, %v3775_v48  ;;  %v3814_v63 = vor.u32 %v4278_v59, %v3811_v60  ;;  %v3875_v2 = vld [vmem:[%s6803_s1 + $0x88] sm:$0xf0]  ;;  %v3805_v3 = vld [vmem:[%s4826_s19 + $0xc8] sm:$0xf]  ;;  %v4277_v4 = vld [vmem:[%s4826_s19 + $0xd0] sm:$0xf0] }
  0x33   : > { %v3878_v5 = vor.u32 %v4294_v1, %v3875_v2  ;;  %v3785_v6 = vld [vmem:[%s4826_s19 + $0xa8] sm:$0xf]  ;;  %v4273_v8 = vld [vmem:[%s4826_s19 + $0xb0] sm:$0xf0]  ;;  %v5106_v10 = vor.u32 %v4277_v4, %v3805_v3  ;;  %v4272_v11 = vld [vmem:[%s4826_s19 + $0xac] sm:$0xf]  ;;  %s5906_s14 = scalar_lea.vmem %s6813_s11, %s4389_s30 }
  0x34   : > { %1161 = vmatpush.bf16.msrb.mxu2 %v3886_v29  ;;  %v4317_v9 = vld [vmem:[%s6805_s3 + $0x28] sm:$0xff]  ;;  %v3787_v14 = vld [vmem:[%s4826_s19 + $0xb4] sm:$0xf0]  ;;  %v5110_v16 = vor.u32 %v4273_v8, %v3785_v6  ;;  %v521_v23 = vld [vmem:[%s4826_s19 + $0xe0] sm:$0xf] }
  0x35   : > { %1100 = vmatpush.bf16.msra.mxu3 %v3846_v31  ;;  %1633 = vmatpush.bf16.msrb.mxu1 %v4318_v0  ;;  %v5112_v17 = vor.u32 %v4272_v11, %v3787_v14  ;;  %v4315_v22 = vld [vmem:[%s6805_s3 + $0x18] sm:$0xff]  ;;  %v4314_v26 = vld [vmem:[%s6805_s3 + $0x10] sm:$0xff]  ;;  %v657_v27 = vunpack.c.l.b16 %v521_v23  ;;  %v3797_v30 = vld [vmem:[%s4826_s19 + $0xc0] sm:$0xf] }
  0x36   : > { %v4327_v28 = vld [vmem:[%s6805_s3 + $0x78] sm:$0xff]  ;;  %v4276_v31 = vld [vmem:[%s4826_s19 + $0xc8] sm:$0xf0]  ;;  %v4275_v35 = vld [vmem:[%s4826_s19 + $0xc4] sm:$0xf] }
  0x37   : > { %v4313_v32 = vld [vmem:[%s6805_s3 + $0x8] sm:$0xff]  ;;  %v5137_v34 = vpack.c.b16 %v657_v27, %v657_v27  ;;  %v3799_v38 = vld [vmem:[%s4826_s19 + $0xcc] sm:$0xf0]  ;;  %v4312_v43 = vld [vmem:[%s6805_s3] sm:$0xff] }
  0x38   : > { %1162 = vmatpush.bf16.msrb.mxu2 %v3878_v5  ;;  %v5143_v41 = vor.u32 %v4275_v35, %v3799_v38  ;;  %v520_v48 = vld [vmem:[%s4826_s19 + $0xd8] sm:$0xff]  ;;  %v4326_v55 = vld [vmem:[%s6805_s3 + $0x70] sm:$0xff]  ;;  %s4250_s19 = sshll.u32 %s6904_s29, 3 }
  0x39   : > { %1101 = vmatpush.bf16.msra.mxu3 %v3838_v39  ;;  %1634 = vmatpush.bf16.msrb.mxu1 %v4317_v9  ;;  %v5141_v39 = vor.u32 %v4276_v31, %v3797_v30  ;;  %v656_v60 = vunpack.c.h.b16 %v520_v48  ;;  %s5182_s22 = scalar_lea.vmem %s6811_s9, %s4250_s19  ;;  %s5518_s27 = scalar_lea.vmem %s6814_s12, %s4250_s19 }
  0x3a   : > { %v5188_v9 = vld [vmem:[%s5182_s22 + $0x8] sm:$0xff]  ;;  %s4677_s19 = smov 64  }
  0x3b   : > { %3945 = vmatmul.msk.bf16.gmra.mxu2 %vm883_vm1, %v4916_v21  ;;  %v5169_v3 = vpack.c.b16 %v656_v60, %v656_v60 }
  0x3d   : > { %936 = vmatmul.bf16.gmra.mxu0 %v4920_v24  ;;  %1102 = vmatpush.bf16.msra.mxu3 %v3830_v51  ;;  %v5156_v51 = vld [vmem:[%s6804_s2] sm:$0x3] }
  0x3e   : > { %994 = vmatmul.bf16.gmra.mxu1 %v4922_v25  ;;  %v5162_v57 = vperm.slane %v5156_v51, 0 }
  0x41   : > { %1103 = vmatpush.bf16.msra.mxu3 %v3822_v56  ;;  %v655_v56 = vunpack.c.l.b16 %v520_v48  ;;  %v5204_v48 = vld [vmem:[%s5182_s22 + $0x10] sm:$0xff] }
  0x43   : > { %v5166_v0 = vpack.c.b16 %v655_v56, %v655_v56 }
  0x45   : > { %1104 = vmatpush.bf16.msra.mxu3 %v3814_v63 }
  0x48   : > { %1105 = vmatmul.bf16.vlgmr.msra.gmra.mxu3 %v4898_v12  ;;  %v4316_v12 = vld [vmem:[%s6805_s3 + $0x20] sm:$0xff] }
  0x49   : > { %1635 = vmatpush.bf16.msrb.mxu1 %v4316_v12  ;;  %1690 = vmatpush.bf16.msrb.mxu3 %v4327_v28 }
  0x4b   : > { %3946 = vmatmul.msk.bf16.gmra.mxu2 %vm883_vm1, %v4938_v33 }
  0x4d   : > { %941 = vmatmul.bf16.gmra.mxu0 %v4942_v36  ;;  %1636 = vmatpush.bf16.msrb.mxu1 %v4315_v22 }
  0x4e   : > { %999 = vmatmul.bf16.gmra.mxu1 %v4944_v37  ;;  %1691 = vmatpush.bf16.msrb.mxu3 %v4326_v55 }
  0x51   : > { %1637 = vmatpush.bf16.msrb.mxu1 %v4314_v26  ;;  %v1330_v26 = vunpack.c.l.bf16 %v5188_v9 }
  0x53   : > { %vm1368_vm3 = vcmp.gt.f32.partialorder %v1330_v26, 0.0  ;;  %v5223_v26 = vld [vmem:[%s5182_s22 + $0x20] sm:$0xff] }
  0x55   : > { %1638 = vmatpush.bf16.msrb.mxu1 %v4313_v32 }
  0x58   : > { %1110 = vmatmul.bf16.gmra.mxu3 %v4920_v24 }
  0x59   : > { %1639 = vmatpush.bf16.msrb.mxu1 %v4312_v43 }
  0x5b   : > { %3947 = vmatmul.msk.bf16.gmra.mxu2 %vm883_vm1, %v4960_v46 }
  0x5d   : > { %946 = vmatmul.bf16.gmra.mxu0 %v4964_v49 }
  0x5e   : > { %1004 = vmatmul.bf16.gmra.mxu1 %v4966_v50 }
  0x68   : > { %1115 = vmatmul.bf16.gmra.mxu3 %v4942_v36 }
  0x6b   : > { %3948 = vmatmul.msk.bf16.gmra.mxu2 %vm883_vm1, %v4982_v58 }
  0x6d   : > { %951 = vmatmul.bf16.gmra.mxu0 %v4986_v61 }
  0x6e   : > { %1009 = vmatmul.bf16.gmra.mxu1 %v4988_v62 }
  0x78   : > { %1120 = vmatmul.bf16.gmra.mxu3 %v4964_v49  ;;  %v4325_v49 = vld [vmem:[%s6805_s3 + $0x68] sm:$0xff] }
  0x79   : > { %1692 = vmatpush.bf16.msrb.mxu3 %v4325_v49 }
  0x7b   : > { %3949 = vmatmul.msk.bf16.gmra.mxu2 %vm883_vm1, %v5016_v15 }
  0x7d   : > { %956 = vmatmul.bf16.gmra.mxu0 %v5020_v18 }
  0x7e   : > { %1014 = vmatmul.bf16.gmra.mxu1 %v5022_v19 }
  0x88   : > { %1125 = vmatmul.bf16.gmra.mxu3 %v4986_v61  ;;  %v4324_v61 = vld [vmem:[%s6805_s3 + $0x60] sm:$0xff] }
  0x89   : > { %1693 = vmatpush.bf16.msrb.mxu3 %v4324_v61 }
  0x8b   : > { %3950 = vmatmul.msk.bf16.gmra.mxu2 %vm883_vm1, %v5062_v45 }
  0x8d   : > { %961 = vmatmul.bf16.gmra.mxu0 %v5066_v52 }
  0x8e   : > { %1019 = vmatmul.bf16.gmra.mxu1 %v5068_v53 }
  0x98   : > { %1130 = vmatmul.bf16.gmra.mxu3 %v5020_v18 }
  0x9b   : > { %3951 = vmatmul.msk.bf16.gmra.mxu2 %vm883_vm1, %v5106_v10 }
  0x9d   : > { %966 = vmatmul.bf16.gmra.mxu0 %v5110_v16 }
  0x9e   : > { %v1048_v20 = vpop.f32.mrf.mxu2  ;;  %1024 = vmatmul.bf16.gmra.mxu1 %v5112_v17 }
  0xa6   : > { %v1050_v29 = vpop.f32.mrf.mxu2 }
  0xa8   : > { %1135 = vmatmul.bf16.gmra.mxu3 %v5066_v52 }
  0xaa   : > { %v932_v40 = vpop.f32.mrf.mxu0 }
  0xab   : > { %3952 = vmatmul.msk.bf16.gmra.mxu2 %vm883_vm1, %v5137_v34  ;;  %v990_v24 = vpop.f32.mrf.mxu1  ;;  %v933_v1 = vadd.f32 %v932_v40, %v5162_v57 }
  0xad   : > { %971 = vmatmul.bf16.gmra.mxu0 %v5141_v39  ;;  %v991_v6 = vadd.f32 %v990_v24, %v933_v1 }
  0xae   : > { %v1053_v44 = vpop.f32.mrf.mxu2  ;;  %1029 = vmatmul.bf16.gmra.mxu1 %v5143_v41 }
  0xaf   : > { %v1049_v11 = vadd.f32 %v1048_v20, %v991_v6 }
  0xb1   : > { %v1271_v27 = vmax.f32 %v1049_v11, 0.0 }
  0xb2   : > { %v934_v47 = vpop.f32.mrf.mxu0 }
  0xb3   : > { %v992_v54 = vpop.f32.mrf.mxu1  ;;  %v935_v63 = vadd.f32 %v934_v47, %v5162_v57 }
  0xb5   : > { %v993_v5 = vadd.f32 %v992_v54, %v935_v63 }
  0xb6   : > { %v1055_v59 = vpop.f32.mrf.mxu2 }
  0xb7   : > { %v1051_v36 = vadd.f32 %v1050_v29, %v993_v5  ;;  %v1404_v29 = vmul.f32 2.0, %v1271_v27 }
  0xb8   : > { %1140 = vmatmul.bf16.gmra.mxu3 %v5110_v16 }
  0xb9   : > { %v1273_v22 = vmax.f32 %v1051_v36, 0.0 }
  0xba   : > { %v937_v2 = vpop.f32.mrf.mxu0 }
  0xbb   : > { %1163 = vmatmul.bf16.vlgmr.msrb.gmra.mxu2 %v4900_v13  ;;  %v995_v4 = vpop.f32.mrf.mxu1  ;;  %v5185_v13 = vld [vmem:[%s5182_s22] sm:$0xff]  ;;  %v1406_v30 = vmul.f32 2.0, %v1273_v22  ;;  %v938_v20 = vadd.f32 %v937_v2, %v5162_v57 }
  0xbc   : > { %v1328_v23 = vunpack.c.l.bf16 %v5185_v13 }
  0xbd   : > { %976 = vmatmul.bf16.gmra.mxu0 %v5166_v0  ;;  %v4028_v38 = vpack.c.bf16 %v1406_v30, %v1404_v29  ;;  %v996_v43 = vadd.f32 %v995_v4, %v938_v20 }
  0xbe   : > { %v5174_v8 = vpop.f32.mrf.mxu2  ;;  %1034 = vmatmul.bf16.gmra.mxu1 %v5169_v3  ;;  %vm1366_vm2 = vcmp.gt.f32.partialorder %v1328_v23, 0.0 }
  0xbf   : > { %vm4027_vm4 = vmpackc.low %vm1368_vm3, %vm1366_vm2  ;;  %v1054_v54 = vadd.f32 %v1053_v44, %v996_v43 }
  0xc1   : > { %v1275_v1 = vmax.f32 %v1054_v54, 0.0 }
  0xc2   : > { %v939_v14 = vpop.f32.mrf.mxu0 }
  0xc3   : > { %v997_v12 = vpop.f32.mrf.mxu1  ;;  %v940_v31 = vadd.f32 %v939_v14, %v5162_v57 }
  0xc5   : > { %v998_v40 = vadd.f32 %v997_v12, %v940_v31 }
  0xc6   : > { %v1060_v28 = vpop.f32.mrf.mxu2 }
  0xc7   : > { %v1056_v47 = vadd.f32 %v1055_v59, %v998_v40  ;;  %v1408_v59 = vmul.f32 2.0, %v1275_v1 }
  0xc8   : > { %1145 = vmatmul.bf16.gmra.mxu3 %v5141_v39 }
  0xc9   : > { %v1277_v60 = vmax.f32 %v1056_v47, 0.0 }
  0xca   : > { %v942_v32 = vpop.f32.mrf.mxu0 }
  0xcb   : > { %1168 = vmatmul.bf16.gmra.mxu2 %v4922_v25  ;;  %v1000_v35 = vpop.f32.mrf.mxu1  ;;  %v5207_v25 = vld [vmem:[%s5182_s22 + $0x18] sm:$0xff]  ;;  %v1410_v4 = vmul.f32 2.0, %v1277_v60  ;;  %v943_v44 = vadd.f32 %v942_v32, %v5162_v57  ;;  %v5240_v60 = vld [vmem:[%s5182_s22 + $0x30] sm:$0xff] }
  0xcc   : > { %v1334_v63 = vunpack.c.l.bf16 %v5207_v25 }
  0xcd   : > { %3953 = vmatmul.msk.bf16.vlgmr.msrb.gmra.mxu0 %vm883_vm1, %v4842_v42  ;;  %v1332_v42 = vunpack.c.l.bf16 %v5204_v48  ;;  %v4031_v14 = vpack.c.bf16 %v1410_v4, %v1408_v59  ;;  %v1001_v12 = vadd.f32 %v1000_v35, %v943_v44  ;;  %v4323_v4 = vld [vmem:[%s6805_s3 + $0x58] sm:$0xff] }
  0xce   : > { %v5201_v24 = vpop.f32.mrf.mxu2  ;;  %4029 = vmatmul.msk.bf16.vlgmr.msrb.gmra.mxu1 %vm4027_vm4, %v4028_v38  ;;  %vm1372_vm6 = vcmp.gt.f32.partialorder %v1334_v63, 0.0  ;;  %1694 = vmatpush.bf16.msrb.mxu3 %v4323_v4  ;;  %v5283_v4 = vld [vmem:[%s5182_s22 + $0x58] sm:$0xff] }
  0xcf   : > { %vm1370_vm5 = vcmp.gt.f32.partialorder %v1332_v42, 0.0  ;;  %v1059_v27 = vadd.f32 %v5174_v8, %v1001_v12  ;;  %v5243_v42 = vld [vmem:[%s5182_s22 + $0x38] sm:$0xff] }
  0xd0   : > { %vm4030_vm7 = vmpackc.low %vm1372_vm6, %vm1370_vm5  ;;  %v1342_v59 = vunpack.c.l.bf16 %v5243_v42 }
  0xd1   : > { %v1279_v32 = vmax.f32 %v1059_v27, 0.0 }
  0xd2   : > { %v944_v55 = vpop.f32.mrf.mxu0  ;;  %vm1380_vm12 = vcmp.gt.f32.partialorder %v1342_v59, 0.0 }
  0xd3   : > { %v1002_v56 = vpop.f32.mrf.mxu1  ;;  %v945_v5 = vadd.f32 %v944_v55, %v5162_v57  ;;  %v1412_v40 = vmul.f32 2.0, %v1279_v32  ;;  %v4322_v32 = vld [vmem:[%s6805_s3 + $0x50] sm:$0xff] }
  0xd4   : > { %1695 = vmatpush.bf16.msrb.mxu3 %v4322_v32  ;;  %v5310_v32 = vld [vmem:[%s5182_s22 + $0x60] sm:$0xff] }
  0xd5   : > { %v1003_v11 = vadd.f32 %v1002_v56, %v945_v5 }
  0xd6   : > { %v1065_v2 = vpop.f32.mrf.mxu2 }
  0xd7   : > { %v1061_v23 = vadd.f32 %v1060_v28, %v1003_v11 }
  0xd8   : > { %1150 = vmatmul.bf16.gmra.mxu3 %v5166_v0 }
  0xd9   : > { %v1281_v29 = vmax.f32 %v1061_v23, 0.0 }
  0xda   : > { %v947_v6 = vpop.f32.mrf.mxu0 }
  0xdb   : > { %1173 = vmatmul.bf16.gmra.mxu2 %v4944_v37  ;;  %v1005_v36 = vpop.f32.mrf.mxu1  ;;  %v5226_v37 = vld [vmem:[%s5182_s22 + $0x28] sm:$0xff]  ;;  %v1414_v38 = vmul.f32 2.0, %v1281_v29  ;;  %v948_v8 = vadd.f32 %v947_v6, %v5162_v57 }
  0xdc   : > { %v1338_v20 = vunpack.c.l.bf16 %v5226_v37  ;;  %v5263_v29 = vld [vmem:[%s5182_s22 + $0x48] sm:$0xff] }
  0xdd   : > { %3954 = vmatmul.msk.bf16.gmra.mxu0 %vm883_vm1, %v4893_v7  ;;  %v1336_v7 = vunpack.c.l.bf16 %v5223_v26  ;;  %v4034_v47 = vpack.c.bf16 %v1414_v38, %v1412_v40  ;;  %v1006_v18 = vadd.f32 %v1005_v36, %v948_v8 }
  0xde   : > { %v5220_v22 = vpop.f32.mrf.mxu2  ;;  %4032 = vmatmul.msk.bf16.gmra.mxu1 %vm4030_vm7, %v4031_v14  ;;  %vm1376_vm9 = vcmp.gt.f32.partialorder %v1338_v20, 0.0 }
  0xdf   : > { %vm1374_vm8 = vcmp.gt.f32.partialorder %v1336_v7, 0.0  ;;  %v1064_v63 = vadd.f32 %v5201_v24, %v1006_v18 }
  0xe0   : > { %vm4033_vm10 = vmpackc.low %vm1376_vm9, %vm1374_vm8 }
  0xe1   : > { %v1283_v44 = vmax.f32 %v1064_v63, 0.0 }
  0xe2   : > { %v949_v30 = vpop.f32.mrf.mxu0 }
  0xe3   : > { %v1007_v31 = vpop.f32.mrf.mxu1  ;;  %v950_v28 = vadd.f32 %v949_v30, %v5162_v57  ;;  %v1416_v24 = vmul.f32 2.0, %v1283_v44 }
  0xe5   : > { %v1008_v54 = vadd.f32 %v1007_v31, %v950_v28  ;;  %v5260_v31 = vld [vmem:[%s5182_s22 + $0x40] sm:$0xff]  ;;  %v1346_v28 = vunpack.c.l.bf16 %v5263_v29 }
  0xe6   : > { %v1070_v35 = vpop.f32.mrf.mxu2 }
  0xe7   : > { %v1066_v56 = vadd.f32 %v1065_v2, %v1008_v54  ;;  %vm1384_vm15 = vcmp.gt.f32.partialorder %v1346_v28, 0.0 }
  0xe9   : > { %v1285_v5 = vmax.f32 %v1066_v56, 0.0 }
  0xea   : > { %v952_v49 = vpop.f32.mrf.mxu0 }
  0xeb   : > { %1178 = vmatmul.bf16.gmra.mxu2 %v4966_v50  ;;  %v1010_v43 = vpop.f32.mrf.mxu1  ;;  %v1418_v6 = vmul.f32 2.0, %v1285_v5  ;;  %v953_v11 = vadd.f32 %v952_v49, %v5162_v57 }
  0xed   : > { %3955 = vmatmul.msk.bf16.gmra.mxu0 %vm883_vm1, %v4916_v21  ;;  %v1340_v21 = vunpack.c.l.bf16 %v5240_v60  ;;  %v4037_v12 = vpack.c.bf16 %v1418_v6, %v1416_v24  ;;  %v1011_v52 = vadd.f32 %v1010_v43, %v953_v11  ;;  %v1350_v6 = vunpack.c.l.bf16 %v5283_v4 }
  0xee   : > { %v5237_v55 = vpop.f32.mrf.mxu2  ;;  %4035 = vmatmul.msk.bf16.gmra.mxu1 %vm4033_vm10, %v4034_v47 }
  0xef   : > { %vm1378_vm11 = vcmp.gt.f32.partialorder %v1340_v21, 0.0  ;;  %v1069_v7 = vadd.f32 %v5220_v22, %v1011_v52  ;;  %vm1388_vm3 = vcmp.gt.f32.partialorder %v1350_v6, 0.0  ;;  %v5338_v6 = vld [vmem:[%s5182_s22 + $0x70] sm:$0xff] }
  0xf0   : > { %vm4036_vm13 = vmpackc.low %vm1380_vm12, %vm1378_vm11 }
  0xf1   : > { %v1287_v40 = vmax.f32 %v1069_v7, 0.0 }
  0xf2   : > { %v954_v1 = vpop.f32.mrf.mxu0 }
  0xf3   : > { %v1012_v50 = vpop.f32.mrf.mxu1  ;;  %v955_v36 = vadd.f32 %v954_v1, %v5162_v57  ;;  %v1420_v22 = vmul.f32 2.0, %v1287_v40 }
  0xf5   : > { %v1013_v23 = vadd.f32 %v1012_v50, %v955_v36  ;;  %v5280_v50 = vld [vmem:[%s5182_s22 + $0x50] sm:$0xff] }
  0xf6   : > { %v1075_v2 = vpop.f32.mrf.mxu2  ;;  %v1348_v44 = vunpack.c.l.bf16 %v5280_v50 }
  0xf7   : > { %v1071_v30 = vadd.f32 %v1070_v35, %v1013_v23 }
  0xf8   : > { %vm5290_vm2 = vcmp.gt.f32.partialorder %v1348_v44, 0.0 }
  0xf9   : > { %v1289_v38 = vmax.f32 %v1071_v30, 0.0  ;;  %vm4042_vm4 = vmpackc.low %vm1388_vm3, %vm5290_vm2  ;;  %v4321_v30 = vld [vmem:[%s6805_s3 + $0x48] sm:$0xff] }
  0xfa   : > { %v957_v14 = vpop.f32.mrf.mxu0  ;;  %1696 = vmatpush.bf16.msrb.mxu3 %v4321_v30 }
  0xfb   : > { %1183 = vmatmul.bf16.gmra.mxu2 %v4988_v62  ;;  %v1015_v61 = vpop.f32.mrf.mxu1  ;;  %v1422_v8 = vmul.f32 2.0, %v1289_v38  ;;  %v958_v43 = vadd.f32 %v957_v14, %v5162_v57  ;;  %v5313_v38 = vld [vmem:[%s5182_s22 + $0x68] sm:$0xff] }
  0xfd   : > { %3956 = vmatmul.msk.bf16.gmra.mxu0 %vm883_vm1, %v4938_v33  ;;  %v1344_v33 = vunpack.c.l.bf16 %v5260_v31  ;;  %v4040_v18 = vpack.c.bf16 %v1422_v8, %v1420_v22  ;;  %v1016_v16 = vadd.f32 %v1015_v61, %v958_v43  ;;  %v1352_v8 = vunpack.c.l.bf16 %v5310_v32 }
  0xfe   : > { %v5257_v27 = vpop.f32.mrf.mxu2  ;;  %4038 = vmatmul.msk.bf16.gmra.mxu1 %vm4036_vm13, %v4037_v12 }
  0xff   : > { %vm1382_vm14 = vcmp.gt.f32.partialorder %v1344_v33, 0.0  ;;  %v1074_v5 = vadd.f32 %v5237_v55, %v1016_v16  ;;  %v5294_v55 = vpop.f32.mrf.mxu3  ;;  %vm5323_vm5 = vcmp.gt.f32.partialorder %v1352_v8, 0.0 }
 0x100   : > { %vm4039_vm0 = vmpackc.low %vm1384_vm15, %vm1382_vm14 }
 0x101   : > { %v1291_v36 = vmax.f32 %v1074_v5, 0.0 }
 0x102   : > { %v959_v20 = vpop.f32.mrf.mxu0 }
 0x103   : > { %v1017_v62 = vpop.f32.mrf.mxu1  ;;  %v960_v49 = vadd.f32 %v959_v20, %v5162_v57  ;;  %v1424_v14 = vmul.f32 2.0, %v1291_v36  ;;  %v5341_v36 = vld [vmem:[%s5182_s22 + $0x78] sm:$0xff] }
 0x105   : > { %v1018_v56 = vadd.f32 %v1017_v62, %v960_v49  ;;  %v1354_v49 = vunpack.c.l.bf16 %v5313_v38 }
 0x106   : > { %v1080_v35 = vpop.f32.mrf.mxu2 }
 0x107   : > { %v1076_v1 = vadd.f32 %v1075_v2, %v1018_v56  ;;  %vm1392_vm6 = vcmp.gt.f32.partialorder %v1354_v49, 0.0  ;;  %v5356_v49 = vld [vmem:[%s5182_s22 + $0x80] sm:$0xff] }
 0x108   : > { %vm4045_vm7 = vmpackc.low %vm1392_vm6, %vm5323_vm5 }
 0x109   : > { %v1293_v59 = vmax.f32 %v1076_v1, 0.0 }
 0x10a   : > { %v962_v47 = vpop.f32.mrf.mxu0 }
 0x10b   : > { %1188 = vmatmul.bf16.gmra.mxu2 %v5022_v19  ;;  %v1020_v54 = vpop.f32.mrf.mxu1  ;;  %v1426_v24 = vmul.f32 2.0, %v1293_v59  ;;  %v963_v61 = vadd.f32 %v962_v47, %v5162_v57 }
 0x10d   : > { %3957 = vmatmul.msk.bf16.gmra.mxu0 %vm883_vm1, %v4960_v46  ;;  %v4043_v39 = vpack.c.bf16 %v1426_v24, %v1424_v14  ;;  %v1021_v7 = vadd.f32 %v1020_v54, %v963_v61  ;;  %v1356_v61 = vunpack.c.l.bf16 %v5338_v6 }
 0x10e   : > { %v5277_v63 = vpop.f32.mrf.mxu2  ;;  %4041 = vmatmul.msk.bf16.gmra.mxu1 %vm4039_vm0, %v4040_v18 }
 0x10f   : > { %v1079_v33 = vadd.f32 %v5257_v27, %v1021_v7  ;;  %vm1394_vm8 = vcmp.gt.f32.partialorder %v1356_v61, 0.0 }
 0x111   : > { %v1295_v22 = vmax.f32 %v1079_v33, 0.0 }
 0x112   : > { %v964_v21 = vpop.f32.mrf.mxu0 }
 0x113   : > { %v1022_v19 = vpop.f32.mrf.mxu1  ;;  %v965_v2 = vadd.f32 %v964_v21, %v5162_v57  ;;  %v1428_v56 = vmul.f32 2.0, %v1295_v22  ;;  %v5359_v22 = vld [vmem:[%s5182_s22 + $0x88] sm:$0xff] }
 0x115   : > { %v1023_v52 = vadd.f32 %v1022_v19, %v965_v2 }
 0x116   : > { %v1085_v46 = vpop.f32.mrf.mxu2 }
 0x117   : > { %v1081_v62 = vadd.f32 %v1080_v35, %v1023_v52  ;;  %v4320_v35 = vld [vmem:[%s6805_s3 + $0x40] sm:$0xff] }
 0x118   : > { %1697 = vmatpush.bf16.msrb.mxu3 %v4320_v35 }
 0x119   : > { %v1297_v40 = vmax.f32 %v1081_v62, 0.0 }
 0x11a   : > { %v967_v12 = vpop.f32.mrf.mxu0 }
 0x11b   : > { %1193 = vmatmul.bf16.gmra.mxu2 %v5068_v53  ;;  %v1025_v23 = vpop.f32.mrf.mxu1  ;;  %v5307_v53 = vpop.f32.mrf.mxu3  ;;  %v1430_v47 = vmul.f32 2.0, %v1297_v40  ;;  %v968_v0 = vadd.f32 %v967_v12, %v5162_v57 }
 0x11d   : > { %3958 = vmatmul.msk.bf16.gmra.mxu0 %vm883_vm1, %v4982_v58  ;;  %v4046_v5 = vpack.c.bf16 %v1430_v47, %v1428_v56  ;;  %v1026_v19 = vadd.f32 %v1025_v23, %v968_v0  ;;  %v1360_v56 = vunpack.c.l.bf16 %v5356_v49  ;;  %v1362_v0 = vunpack.c.l.bf16 %v5359_v22 }
 0x11e   : > { %v5305_v20 = vpop.f32.mrf.mxu2  ;;  %4044 = vmatmul.msk.bf16.gmra.mxu1 %vm4042_vm4, %v4043_v39 }
 0x11f   : > { %vm1398_vm11 = vcmp.gt.f32.partialorder %v1360_v56, 0.0  ;;  %vm1400_vm12 = vcmp.gt.f32.partialorder %v1362_v0, 0.0 }
 0x120   : > { %vm4051_vm13 = vmpackc.low %vm1400_vm12, %vm1398_vm11 }
 0x122   : > { %v969_v28 = vpop.f32.mrf.mxu0 }
 0x123   : > { %v1027_v58 = vpop.f32.mrf.mxu1  ;;  %v970_v54 = vadd.f32 %v969_v28, %v5162_v57  ;;  %v5327_v18 = vpop.f32.mrf.mxu3 }
 0x125   : > { %v1028_v21 = vadd.f32 %v1027_v58, %v970_v54 }
 0x126   : > { %v1090_v43 = vpop.f32.mrf.mxu2 }
 0x127   : > { %v1086_v44 = vadd.f32 %v1085_v46, %v1028_v21 }
 0x129   : > { %v1301_v14 = vmax.f32 %v1086_v44, 0.0 }
 0x12a   : > { %v972_v16 = vpop.f32.mrf.mxu0 }
 0x12b   : > { %1198 = vmatmul.bf16.gmra.mxu2 %v5112_v17  ;;  %v1030_v1 = vpop.f32.mrf.mxu1  ;;  %v5343_v24 = vpop.f32.mrf.mxu3  ;;  %v1084_v17 = vadd.f32 %v5277_v63, %v1026_v19  ;;  %v1434_v39 = vmul.f32 2.0, %v1301_v14  ;;  %v973_v63 = vadd.f32 %v972_v16, %v5162_v57 }
 0x12d   : > { %3959 = vmatmul.msk.bf16.gmra.mxu0 %vm883_vm1, %v5016_v15  ;;  %v1358_v15 = vunpack.c.l.bf16 %v5341_v36  ;;  %v1299_v12 = vmax.f32 %v1084_v17, 0.0  ;;  %v1031_v58 = vadd.f32 %v1030_v1, %v973_v63 }
 0x12e   : > { %v5335_v59 = vpop.f32.mrf.mxu2  ;;  %4047 = vmatmul.msk.bf16.gmra.mxu1 %vm4045_vm7, %v4046_v5 }
 0x12f   : > { %vm1396_vm9 = vcmp.gt.f32.partialorder %v1358_v15, 0.0  ;;  %v1432_v30 = vmul.f32 2.0, %v1299_v12  ;;  %v1089_v47 = vadd.f32 %v5305_v20, %v1031_v58  ;;  %v1329_v12 = vunpack.c.h.bf16 %v5185_v13 }
 0x130   : > { %vm4048_vm10 = vmpackc.low %vm1396_vm9, %vm1394_vm8 }
 0x131   : > { %v4049_v33 = vpack.c.bf16 %v1434_v39, %v1432_v30  ;;  %v1303_v16 = vmax.f32 %v1089_v47, 0.0  ;;  %vm1367_vm14 = vcmp.gt.f32.partialorder %v1329_v12, 0.0 }
 0x132   : > { %v974_v2 = vpop.f32.mrf.mxu0 }
 0x133   : > { %v1032_v11 = vpop.f32.mrf.mxu1  ;;  %v975_v46 = vadd.f32 %v974_v2, %v5162_v57  ;;  %v5349_v52 = vpop.f32.mrf.mxu3  ;;  %v1436_v19 = vmul.f32 2.0, %v1303_v16  ;;  %v1333_v16 = vunpack.c.h.bf16 %v5204_v48 }
 0x135   : > { %v1033_v28 = vadd.f32 %v1032_v11, %v975_v46  ;;  %vm1371_vm4 = vcmp.gt.f32.partialorder %v1333_v16, 0.0 }
 0x136   : > { %v1095_v23 = vpop.f32.mrf.mxu2 }
 0x137   : > { %v1091_v8 = vadd.f32 %v1090_v43, %v1033_v28  ;;  %v5385_v23 = vld [vmem:[%s5182_s22 + $0x90] sm:$0xff] }
 0x139   : > { %v1305_v27 = vmax.f32 %v1091_v8, 0.0 }
 0x13a   : > { %v977_v7 = vpop.f32.mrf.mxu0 }
 0x13b   : > { %1203 = vmatmul.bf16.gmra.mxu2 %v5143_v41  ;;  %v1035_v62 = vpop.f32.mrf.mxu1  ;;  %v5361_v35 = vpop.f32.mrf.mxu3  ;;  %v1438_v1 = vmul.f32 2.0, %v1305_v27  ;;  %v978_v5 = vadd.f32 %v977_v7, %v5162_v57 }
 0x13d   : > { %3960 = vmatmul.msk.bf16.gmra.mxu0 %vm883_vm1, %v5062_v45  ;;  %v5367_v45 = vperm.slane %v5156_v51, 1  ;;  %v4052_v51 = vpack.c.bf16 %v1438_v1, %v1436_v19  ;;  %v1036_v2 = vadd.f32 %v1035_v62, %v978_v5 }
 0x13e   : > { %v1164_v40 = vpop.f32.mrf.mxu2  ;;  %4050 = vmatmul.msk.bf16.gmra.mxu1 %vm4048_vm10, %v4049_v33 }
 0x13f   : > { %v1107_v20 = vadd.f32 %v5294_v55, %v5367_v45  ;;  %v1109_v55 = vadd.f32 %v5307_v53, %v5367_v45  ;;  %v1094_v61 = vadd.f32 %v5335_v59, %v1036_v2  ;;  %v1364_v53 = vunpack.c.l.bf16 %v5385_v23 }
 0x140   : > { %v1114_v56 = vadd.f32 %v5343_v24, %v5367_v45  ;;  %v1117_v24 = vadd.f32 %v5349_v52, %v5367_v45 }
 0x141   : > { %v1165_v11 = vadd.f32 %v1164_v40, %v1107_v20  ;;  %v1307_v7 = vmax.f32 %v1094_v61, 0.0  ;;  %vm1402_vm2 = vcmp.gt.f32.partialorder %v1364_v53, 0.0 }
 0x142   : > { %v979_v41 = vpop.f32.mrf.mxu0  ;;  %vm4054_vm3 = vmpackc.low %vm1402_vm2, %vm1402_vm2 }
 0x143   : > { %v1037_v54 = vpop.f32.mrf.mxu1  ;;  %v5372_v21 = vpop.f32.mrf.mxu3  ;;  %v1440_v28 = vmul.f32 2.0, %v1307_v7 }
 0x145   : > { %v4055_v41 = vpack.c.bf16 %v1440_v28, %v1440_v28 }
 0x146   : > { %v1166_v43 = vpop.f32.mrf.mxu2 }
 0x147   : > { %v1167_v15 = vadd.f32 %v1166_v43, %v1109_v55  ;;  %v1335_v43 = vunpack.c.h.bf16 %v5207_v25 }
 0x149   : > { %vm1373_vm5 = vcmp.gt.f32.partialorder %v1335_v43, 0.0 }
 0x14a   : > { %v1222_v44 = vpop.f32.mrf.mxu0  ;;  %vm4060_vm6 = vmpackc.low %vm1373_vm5, %vm1371_vm4 }
 0x14b   : > { %v5374_v17 = vpop.f32.mrf.mxu1  ;;  %1208 = vmatmul.bf16.gmra.mxu2 %v5169_v3  ;;  %v1223_v14 = vadd.f32 %v1222_v44, %v1165_v11  ;;  %v1331_v3 = vunpack.c.h.bf16 %v5188_v9  ;;  %v5387_v39 = vpop.f32.mrf.mxu3  ;;  %v1112_v9 = vadd.f32 %v5327_v18, %v5367_v45 }
 0x14d   : > { %3961 = vmatmul.msk.bf16.gmra.mxu0 %vm883_vm1, %v5106_v10  ;;  %v1272_v30 = vmax.f32 %v1223_v14, 0.0  ;;  %vm1369_vm15 = vcmp.gt.f32.partialorder %v1331_v3, 0.0 }
 0x14e   : > { %v1169_v57 = vpop.f32.mrf.mxu2  ;;  %4053 = vmatmul.msk.bf16.gmra.mxu1 %vm4051_vm13, %v4052_v51  ;;  %vm4057_vm0 = vmpackc.low %vm1369_vm15, %vm1367_vm14 }
 0x14f   : > { %v1405_v33 = vmul.f32 2.0, %v1272_v30  ;;  %v1170_v54 = vadd.f32 %v1169_v57, %v1112_v9  ;;  %v1339_v30 = vunpack.c.h.bf16 %v5226_v37 }
 0x151   : > { %vm1377_vm8 = vcmp.gt.f32.partialorder %v1339_v30, 0.0 }
 0x152   : > { %v1224_v46 = vpop.f32.mrf.mxu0 }
 0x153   : > { %v1225_v10 = vadd.f32 %v1224_v46, %v1167_v15  ;;  %v5389_v63 = vpop.f32.mrf.mxu1  ;;  %v5394_v40 = vpop.f32.mrf.mxu3  ;;  %v1119_v15 = vadd.f32 %v5361_v35, %v5367_v45  ;;  %v1337_v46 = vunpack.c.h.bf16 %v5223_v26  ;;  %v1122_v35 = vadd.f32 %v5372_v21, %v5367_v45 }
 0x155   : > { %v1274_v62 = vmax.f32 %v1225_v10, 0.0  ;;  %vm1375_vm7 = vcmp.gt.f32.partialorder %v1337_v46, 0.0 }
 0x156   : > { %v1171_v59 = vpop.f32.mrf.mxu2  ;;  %vm4063_vm9 = vmpackc.low %vm1377_vm8, %vm1375_vm7 }
 0x157   : > { %v1407_v13 = vmul.f32 2.0, %v1274_v62  ;;  %v1172_v18 = vadd.f32 %v1171_v59, %v1114_v56 }
 0x159   : > { %v4058_v58 = vpack.c.bf16 %v1407_v13, %v1405_v33 }
 0x15a   : > { %v1227_v8 = vpop.f32.mrf.mxu0 }
 0x15b   : > { %v5396_v47 = vpop.f32.mrf.mxu1  ;;  %4059 = vmatmul.msk.bf16.vlgmr.msrb.gmra.mxu3 %vm4057_vm0, %v4058_v58  ;;  %v1228_v0 = vadd.f32 %v1227_v8, %v1170_v54  ;;  %v5404_v1 = vpop.f32.mrf.mxu3  ;;  %v1124_v54 = vadd.f32 %v5387_v39, %v5367_v45  ;;  %v1127_v39 = vadd.f32 %v5394_v40, %v5367_v45 }
 0x15d   : > { %3962 = vmatmul.msk.bf16.gmra.mxu0 %vm883_vm1, %v5137_v34  ;;  %v1276_v20 = vmax.f32 %v1228_v0, 0.0  ;;  %v1341_v0 = vunpack.c.h.bf16 %v5240_v60 }
 0x15e   : > { %v1174_v27 = vpop.f32.mrf.mxu2  ;;  %4056 = vmatmul.msk.bf16.gmra.mxu1 %vm4054_vm3, %v4055_v41 }
 0x15f   : > { %v1409_v2 = vmul.f32 2.0, %v1276_v20  ;;  %v1175_v14 = vadd.f32 %v1174_v27, %v1117_v24  ;;  %vm1379_vm10 = vcmp.gt.f32.partialorder %v1341_v0, 0.0 }
 0x162   : > { %v1229_v5 = vpop.f32.mrf.mxu0 }
 0x163   : > { %v1230_v19 = vadd.f32 %v1229_v5, %v1172_v18  ;;  %v5406_v44 = vpop.f32.mrf.mxu1  ;;  %v5410_v57 = vpop.f32.mrf.mxu3  ;;  %v1343_v18 = vunpack.c.h.bf16 %v5243_v42 }
 0x165   : > { %v1278_v51 = vmax.f32 %v1230_v19, 0.0  ;;  %vm1381_vm11 = vcmp.gt.f32.partialorder %v1343_v18, 0.0 }
 0x166   : > { %v1176_v34 = vpop.f32.mrf.mxu2  ;;  %vm4066_vm12 = vmpackc.low %vm1381_vm11, %vm1379_vm10 }
 0x167   : > { %v1411_v11 = vmul.f32 2.0, %v1278_v51  ;;  %v1177_v3 = vadd.f32 %v1176_v34, %v1119_v15 }
 0x169   : > { %v4061_v48 = vpack.c.bf16 %v1411_v11, %v1409_v2 }
 0x16a   : > { %v1232_v25 = vpop.f32.mrf.mxu0 }
 0x16b   : > { %v5412_v55 = vpop.f32.mrf.mxu1  ;;  %4062 = vmatmul.msk.bf16.gmra.mxu3 %vm4060_vm6, %v4061_v48  ;;  %v1233_v12 = vadd.f32 %v1232_v25, %v1175_v14  ;;  %v5418_v10 = vpop.f32.mrf.mxu3  ;;  %v1129_v14 = vadd.f32 %v5404_v1, %v5367_v45  ;;  %v1132_v1 = vadd.f32 %v5410_v57, %v5367_v45 }
 0x16d   : > { %v1280_v7 = vmax.f32 %v1233_v12, 0.0  ;;  %v1345_v12 = vunpack.c.h.bf16 %v5260_v31 }
 0x16e   : > { %v1179_v61 = vpop.f32.mrf.mxu2 }
 0x16f   : > { %v1413_v13 = vmul.f32 2.0, %v1280_v7  ;;  %v1180_v8 = vadd.f32 %v1179_v61, %v1122_v35  ;;  %vm1383_vm13 = vcmp.gt.f32.partialorder %v1345_v12, 0.0 }
 0x172   : > { %v1234_v52 = vpop.f32.mrf.mxu0 }
 0x173   : > { %v1235_v53 = vadd.f32 %v1234_v52, %v1177_v3  ;;  %v5420_v62 = vpop.f32.mrf.mxu1  ;;  %v5424_v9 = vpop.f32.mrf.mxu3  ;;  %v1347_v3 = vunpack.c.h.bf16 %v5263_v29 }
 0x175   : > { %v1282_v59 = vmax.f32 %v1235_v53, 0.0  ;;  %vm1385_vm14 = vcmp.gt.f32.partialorder %v1347_v3, 0.0 }
 0x176   : > { %v1181_v33 = vpop.f32.mrf.mxu2  ;;  %vm4069_vm15 = vmpackc.low %vm1385_vm14, %vm1383_vm13 }
 0x177   : > { %v1415_v28 = vmul.f32 2.0, %v1282_v59  ;;  %v1182_v56 = vadd.f32 %v1181_v33, %v1124_v54 }
 0x179   : > { %v4064_v26 = vpack.c.bf16 %v1415_v28, %v1413_v13 }
 0x17a   : > { %v1237_v37 = vpop.f32.mrf.mxu0 }
 0x17b   : > { %v5426_v58 = vpop.f32.mrf.mxu1  ;;  %4065 = vmatmul.msk.bf16.gmra.mxu3 %vm4063_vm9, %v4064_v26  ;;  %v1238_v27 = vadd.f32 %v1237_v37, %v1180_v8  ;;  %v5432_v16 = vpop.f32.mrf.mxu3  ;;  %v1134_v8 = vadd.f32 %v5418_v10, %v5367_v45  ;;  %v1137_v10 = vadd.f32 %v5424_v9, %v5367_v45  ;;  %v1353_v9 = vunpack.c.h.bf16 %v5310_v32 }
 0x17d   : > { %v1284_v43 = vmax.f32 %v1238_v27, 0.0  ;;  %v1349_v27 = vunpack.c.h.bf16 %v5280_v50  ;;  %vm1391_vm4 = vcmp.gt.f32.partialorder %v1353_v9, 0.0 }
 0x17e   : > { %v1184_v41 = vpop.f32.mrf.mxu2 }
 0x17f   : > { %v1417_v34 = vmul.f32 2.0, %v1284_v43  ;;  %v1185_v48 = vadd.f32 %v1184_v41, %v1127_v39  ;;  %vm1387_vm0 = vcmp.gt.f32.partialorder %v1349_v27, 0.0 }
 0x182   : > { %v1239_v21 = vpop.f32.mrf.mxu0 }
 0x183   : > { %v1240_v5 = vadd.f32 %v1239_v21, %v1182_v56  ;;  %v5434_v20 = vpop.f32.mrf.mxu1  ;;  %v5438_v11 = vpop.f32.mrf.mxu3  ;;  %v1351_v56 = vunpack.c.h.bf16 %v5283_v4 }
 0x185   : > { %v1286_v19 = vmax.f32 %v1240_v5, 0.0  ;;  %vm1389_vm2 = vcmp.gt.f32.partialorder %v1351_v56, 0.0 }
 0x186   : > { %v1186_v51 = vpop.f32.mrf.mxu2  ;;  %vm4072_vm3 = vmpackc.low %vm1389_vm2, %vm1387_vm0 }
 0x187   : > { %v1419_v2 = vmul.f32 2.0, %v1286_v19  ;;  %v1187_v15 = vadd.f32 %v1186_v51, %v1129_v14  ;;  %v4331_v14 = vld [vmem:[%s6807_s5 + $0x18] sm:$0xff] }
 0x188   : > { %2038 = vmatpush.bf16.msra.mxu2 %v4331_v14 }
 0x189   : > { %v4067_v60 = vpack.c.bf16 %v1419_v2, %v1417_v34 }
 0x18a   : > { %v1242_v42 = vpop.f32.mrf.mxu0 }
 0x18b   : > { %v5440_v24 = vpop.f32.mrf.mxu1  ;;  %4068 = vmatmul.msk.bf16.gmra.mxu3 %vm4066_vm12, %v4067_v60  ;;  %v1243_v61 = vadd.f32 %v1242_v42, %v1185_v48  ;;  %v5446_v46 = vpop.f32.mrf.mxu3  ;;  %v1139_v48 = vadd.f32 %v5432_v16, %v5367_v45 }
 0x18d   : > { %v1288_v30 = vmax.f32 %v1243_v61, 0.0 }
 0x18e   : > { %v1189_v25 = vpop.f32.mrf.mxu2 }
 0x18f   : > { %v1421_v33 = vmul.f32 2.0, %v1288_v30  ;;  %v1190_v26 = vadd.f32 %v1189_v25, %v1132_v1 }
 0x192   : > { %v1244_v40 = vpop.f32.mrf.mxu0 }
 0x193   : > { %v1245_v52 = vadd.f32 %v1244_v40, %v1187_v15  ;;  %v5448_v7 = vpop.f32.mrf.mxu1  ;;  %v5452_v28 = vpop.f32.mrf.mxu3  ;;  %v1355_v15 = vunpack.c.h.bf16 %v5313_v38 }
 0x195   : > { %v1290_v53 = vmax.f32 %v1245_v52, 0.0  ;;  %vm1393_vm5 = vcmp.gt.f32.partialorder %v1355_v15, 0.0  ;;  %v4330_v15 = vld [vmem:[%s6807_s5 + $0x10] sm:$0xff] }
 0x196   : > { %v1191_v59 = vpop.f32.mrf.mxu2  ;;  %vm4075_vm6 = vmpackc.low %vm1393_vm5, %vm1391_vm4  ;;  %2039 = vmatpush.bf16.msra.mxu2 %v4330_v15 }
 0x197   : > { %v1423_v13 = vmul.f32 2.0, %v1290_v53  ;;  %v1192_v54 = vadd.f32 %v1191_v59, %v1134_v8 }
 0x199   : > { %v4070_v31 = vpack.c.bf16 %v1423_v13, %v1421_v33  ;;  %v1142_v13 = vadd.f32 %v5438_v11, %v5367_v45 }
 0x19a   : > { %v1247_v29 = vpop.f32.mrf.mxu0 }
 0x19b   : > { %v5454_v35 = vpop.f32.mrf.mxu1  ;;  %4071 = vmatmul.msk.bf16.gmra.mxu3 %vm4069_vm15, %v4070_v31  ;;  %v1248_v41 = vadd.f32 %v1247_v29, %v1190_v26  ;;  %v5460_v0 = vpop.f32.mrf.mxu3  ;;  %v1144_v26 = vadd.f32 %v5446_v46, %v5367_v45  ;;  %v1147_v46 = vadd.f32 %v5452_v28, %v5367_v45  ;;  %vm2003_vm15 = vcmask 523264  }
 0x19d   : > { %v1292_v18 = vmax.f32 %v1248_v41, 0.0  ;;  %v1357_v41 = vunpack.c.h.bf16 %v5338_v6 }
 0x19e   : > { %v1194_v37 = vpop.f32.mrf.mxu2 }
 0x19f   : > { %v1425_v51 = vmul.f32 2.0, %v1292_v18  ;;  %v1195_v60 = vadd.f32 %v1194_v37, %v1137_v10  ;;  %vm1395_vm7 = vcmp.gt.f32.partialorder %v1357_v41, 0.0 }
 0x1a2   : > { %v1249_v57 = vpop.f32.mrf.mxu0 }
 0x1a3   : > { %v1250_v21 = vadd.f32 %v1249_v57, %v1192_v54  ;;  %v5462_v43 = vpop.f32.mrf.mxu1  ;;  %v5466_v2 = vpop.f32.mrf.mxu3  ;;  %v1359_v54 = vunpack.c.h.bf16 %v5341_v36 }
 0x1a5   : > { %v1294_v5 = vmax.f32 %v1250_v21, 0.0  ;;  %vm1397_vm8 = vcmp.gt.f32.partialorder %v1359_v54, 0.0 }
 0x1a6   : > { %v1196_v19 = vpop.f32.mrf.mxu2  ;;  %vm4078_vm9 = vmpackc.low %vm1397_vm8, %vm1395_vm7 }
 0x1a7   : > { %v1427_v34 = vmul.f32 2.0, %v1294_v5  ;;  %v1197_v61 = vadd.f32 %v1196_v19, %v1139_v48  ;;  %v1363_v48 = vunpack.c.h.bf16 %v5359_v22  ;;  %v5507_v22 = vld [vmem:[%s6806_s4] ss:$0 sm:$0xff] }
 0x1a9   : > { %v4073_v50 = vpack.c.bf16 %v1427_v34, %v1425_v51  ;;  %vm1401_vm11 = vcmp.gt.f32.partialorder %v1363_v48, 0.0 }
 0x1aa   : > { %v1252_v4 = vpop.f32.mrf.mxu0 }
 0x1ab   : > { %v5468_v39 = vpop.f32.mrf.mxu1  ;;  %4074 = vmatmul.msk.bf16.gmra.mxu3 %vm4072_vm3, %v4073_v50  ;;  %v1253_v25 = vadd.f32 %v1252_v4, %v1195_v60  ;;  %v1153_v12 = vpop.f32.mrf.mxu3  ;;  %v1149_v50 = vadd.f32 %v5460_v0, %v5367_v45 }
 0x1ac   : > { %v1152_v12 = vadd.f32 %v5466_v2, %v5367_v45 }
 0x1ad   : > { %v1296_v40 = vmax.f32 %v1253_v25, 0.0 }
 0x1ae   : > { %v1199_v42 = vpop.f32.mrf.mxu2 }
 0x1af   : > { %v1429_v59 = vmul.f32 2.0, %v1296_v40  ;;  %v1200_v31 = vadd.f32 %v1199_v42, %v1142_v13  ;;  %v1361_v42 = vunpack.c.h.bf16 %v5356_v49 }
 0x1b1   : > { %vm1399_vm10 = vcmp.gt.f32.partialorder %v1361_v42, 0.0 }
 0x1b2   : > { %v1254_v3 = vpop.f32.mrf.mxu0  ;;  %vm4081_vm12 = vmpackc.low %vm1401_vm11, %vm1399_vm10 }
 0x1b3   : > { %v1255_v30 = vadd.f32 %v1254_v3, %v1197_v61  ;;  %v5477_v52 = vpop.f32.mrf.mxu1 }
 0x1b5   : > { %v1298_v53 = vmax.f32 %v1255_v30, 0.0 }
 0x1b6   : > { %v1201_v16 = vpop.f32.mrf.mxu2 }
 0x1b7   : > { %v1431_v33 = vmul.f32 2.0, %v1298_v53  ;;  %v1202_v8 = vadd.f32 %v1201_v16, %v1144_v26  ;;  %v1644_v26 = vadd.f32 %v5507_v22, %v5389_v63  ;;  %v1647_v63 = vadd.f32 %v5507_v22, %v5396_v47 }
 0x1b9   : > { %v4076_v32 = vpack.c.bf16 %v1431_v33, %v1429_v59  ;;  %v1642_v59 = vadd.f32 %v5507_v22, %v5374_v17 }
 0x1ba   : > { %v1257_v1 = vpop.f32.mrf.mxu0 }
 0x1bb   : > { %v5481_v38 = vpop.f32.mrf.mxu1  ;;  %4077 = vmatmul.msk.bf16.gmra.mxu3 %vm4075_vm6, %v4076_v32  ;;  %v1258_v37 = vadd.f32 %v1257_v1, %v1200_v31  ;;  %v1365_v1 = vunpack.c.h.bf16 %v5385_v23 }
 0x1bd   : > { %v1300_v56 = vmax.f32 %v1258_v37, 0.0  ;;  %vm1403_vm13 = vcmp.gt.f32.partialorder %v1365_v1, 0.0 }
 0x1be   : > { %v1204_v29 = vpop.f32.mrf.mxu2  ;;  %vm4084_vm14 = vmpackc.low %vm1403_vm13, %vm1403_vm13 }
 0x1bf   : > { %v1433_v5 = vmul.f32 2.0, %v1300_v56  ;;  %v1205_v36 = vadd.f32 %v1204_v29, %v1147_v46  ;;  %v1649_v46 = vadd.f32 %v5507_v22, %v5406_v44  ;;  %v4329_v44 = vld [vmem:[%s6807_s5 + $0x8] sm:$0xff] }
 0x1c0   : > { %2040 = vmatpush.bf16.msra.mxu2 %v4329_v44 }
 0x1c2   : > { %v1259_v27 = vpop.f32.mrf.mxu0 }
 0x1c3   : > { %v1260_v57 = vadd.f32 %v1259_v27, %v1202_v8  ;;  %v5487_v11 = vpop.f32.mrf.mxu1 }
 0x1c5   : > { %v1302_v18 = vmax.f32 %v1260_v57, 0.0 }
 0x1c6   : > { %v1206_v21 = vpop.f32.mrf.mxu2 }
 0x1c7   : > { %v1435_v19 = vmul.f32 2.0, %v1302_v18  ;;  %v1207_v60 = vadd.f32 %v1206_v21, %v1149_v50  ;;  %v1652_v50 = vadd.f32 %v5507_v22, %v5412_v55  ;;  %v1654_v55 = vadd.f32 %v5507_v22, %v5420_v62 }
 0x1c9   : > { %v4079_v51 = vpack.c.bf16 %v1435_v19, %v1433_v5 }
 0x1ca   : > { %v1262_v34 = vpop.f32.mrf.mxu0 }
 0x1cb   : > { %v5491_v6 = vpop.f32.mrf.mxu1  ;;  %4080 = vmatmul.msk.bf16.gmra.mxu3 %vm4078_vm9, %v4079_v51  ;;  %v1263_v4 = vadd.f32 %v1262_v34, %v1205_v36 }
 0x1cd   : > { %v1304_v14 = vmax.f32 %v1263_v4, 0.0 }
 0x1ce   : > { %v1209_v10 = vpop.f32.mrf.mxu2 }
 0x1cf   : > { %v1437_v49 = vmul.f32 2.0, %v1304_v14  ;;  %v1210_v53 = vadd.f32 %v1209_v10, %v1152_v12  ;;  %v1657_v12 = vadd.f32 %v5507_v22, %v5426_v58 }
 0x1d2   : > { %v1264_v25 = vpop.f32.mrf.mxu0 }
 0x1d3   : > { %v1265_v61 = vadd.f32 %v1264_v25, %v1207_v60  ;;  %v5497_v28 = vpop.f32.mrf.mxu1 }
 0x1d5   : > { %v1306_v9 = vmax.f32 %v1265_v61, 0.0 }
 0x1d6   : > { %v1211_v0 = vpop.f32.mrf.mxu2 }
 0x1d7   : > { %v1439_v3 = vmul.f32 2.0, %v1306_v9 }
 0x1d9   : > { %v4082_v40 = vpack.c.bf16 %v1439_v3, %v1437_v49 }
 0x1da   : > { %v1267_v30 = vpop.f32.mrf.mxu0 }
 0x1db   : > { %v5509_v16 = vpop.f32.mrf.mxu1  ;;  %4083 = vmatmul.msk.bf16.gmra.mxu3 %vm4081_vm12, %v4082_v40  ;;  %v1268_v33 = vadd.f32 %v1267_v30, %v1210_v53  ;;  %v1659_v53 = vadd.f32 %v5507_v22, %v5434_v20 }
 0x1dd   : > { %v1308_v13 = vmax.f32 %v1268_v33, 0.0 }
 0x1de   : > { %v1699_v45 = vpop.f32.mrf.mxu3 }
 0x1df   : > { %v5520_v2 = vadd.f32 %v1699_v45, %v1642_v59  ;;  %v1441_v37 = vmul.f32 2.0, %v1308_v13 }
 0x1e1   : > { %v1786_v32 = vmul.f32 0.5, %v5520_v2  ;;  %3553 = vst [vmem:[%s5518_s27] sm:$0xff] %v5520_v2  ;;  %v4085_v54 = vpack.c.bf16 %v1441_v37, %v1441_v37 }
 0x1e2   : > { %v1269_v17 = vpop.f32.mrf.mxu0 }
 0x1e3   : > { %v1805_v31 = vmul.f32 1.442695, %v1786_v32  ;;  %v1688_v29 = vpop.f32.mrf.mxu1  ;;  %v1662_v32 = vadd.f32 %v5507_v22, %v5440_v24  ;;  %v4328_v24 = vld [vmem:[%s6807_s5] sm:$0xff] }
 0x1e4   : > { %2041 = vmatpush.bf16.msra.mxu2 %v4328_v24 }
 0x1e5   : > { %4402 = vpow2.f32 %v1805_v31 }
 0x1e6   : > { %v1701_v8 = vpop.f32.mrf.mxu3 }
 0x1e7   : > { %v5528_v41 = vadd.f32 %v1701_v8, %v1644_v26  ;;  %v1664_v26 = vadd.f32 %v5507_v22, %v5448_v7  ;;  %v1667_v7 = vadd.f32 %v5507_v22, %v5454_v35 }
 0x1e9   : > { %v1787_v27 = vmul.f32 0.5, %v5528_v41  ;;  %3554 = vst [vmem:[%s5518_s27 + $0x8] sm:$0xff] %v5528_v41 }
 0x1eb   : > { %v4403_v23 = vpop.eup %4402  ;;  %v1807_v56 = vmul.f32 1.442695, %v1787_v27  ;;  %4086 = vmatmul.msk.bf16.gmra.mxu3 %vm4084_vm14, %v4085_v54 }
 0x1ec   : > { %1862 = vrot.lane.b32.xlu0 %v4403_v23, %s4677_s19 }
 0x1ed   : > { %4404 = vpow2.f32 %v1807_v56 }
 0x1ee   : > { %v1704_v57 = vpop.f32.mrf.mxu3 }
 0x1ef   : > { %v5536_v18 = vadd.f32 %v1704_v57, %v1647_v63 }
 0x1f1   : > { %v1788_v21 = vmul.f32 0.5, %v5536_v18  ;;  %3555 = vst [vmem:[%s5518_s27 + $0x10] sm:$0xff] %v5536_v18 }
 0x1f3   : > { %v4405_v5 = vpop.eup %4404  ;;  %v1809_v19 = vmul.f32 1.442695, %v1788_v21 }
 0x1f4   : > { %1864 = vrot.lane.b32.xlu0 %v4405_v5, %s4677_s19 }
 0x1f5   : > { %4406 = vpow2.f32 %v1809_v19  ;;  %v1669_v19 = vadd.f32 %v5507_v22, %v5462_v43 }
 0x1f6   : > { %v1706_v51 = vpop.f32.mrf.mxu3 }
 0x1f7   : > { %v5544_v34 = vadd.f32 %v1706_v51, %v1649_v46 }
 0x1f9   : > { %v1789_v47 = vmul.f32 0.5, %v5544_v34  ;;  %3556 = vst [vmem:[%s5518_s27 + $0x18] sm:$0xff] %v5544_v34 }
 0x1fb   : > { %v4407_v36 = vpop.eup %4406  ;;  %v1811_v10 = vmul.f32 1.442695, %v1789_v47 }
 0x1fc   : > { %1866 = vrot.lane.b32.xlu1 %v4407_v36, %s4677_s19 }
 0x1fd   : > { %4408 = vpow2.f32 %v1811_v10  ;;  %v1672_v10 = vadd.f32 %v5507_v22, %v5468_v39  ;;  %v4159_v39 = vld [vmem:[%s6809_s7 + $0x50] sm:$0xf] }
 0x1fe   : > { %v1709_v4 = vpop.f32.mrf.mxu3 }
 0x1ff   : > { %v5555_v60 = vadd.f32 %v1709_v4, %v1652_v50 }
 0x201   : > { %v1790_v42 = vmul.f32 0.5, %v5555_v60  ;;  %3557 = vst [vmem:[%s5518_s27 + $0x20] sm:$0xff] %v5555_v60 }
 0x203   : > { %v4409_v48 = vpop.eup %4408  ;;  %v1813_v25 = vmul.f32 1.442695, %v1790_v42 }
 0x204   : > { %1868 = vrot.lane.b32.xlu1 %v4409_v48, %s4677_s19  ;;  %v1674_v48 = vadd.f32 %v5507_v22, %v5477_v52  ;;  %v4341_v52 = vld [vmem:[%s6809_s7 + $0x4c] sm:$0xf] }
 0x205   : > { %4410 = vpow2.f32 %v1813_v25  ;;  %v4343_v25 = vld [vmem:[%s6809_s7 + $0x58] sm:$0xf0] }
 0x206   : > { %v1711_v14 = vpop.f32.mrf.mxu3 }
 0x207   : > { %v5563_v61 = vadd.f32 %v1711_v14, %v1654_v55  ;;  %v4151_v55 = vld [vmem:[%s6809_s7 + $0x48] sm:$0xf] }
 0x209   : > { %v1791_v9 = vmul.f32 0.5, %v5563_v61  ;;  %3558 = vst [vmem:[%s5518_s27 + $0x28] sm:$0xff] %v5563_v61 }
 0x20b   : > { %v4411_v15 = vpop.eup %4410  ;;  %v1815_v0 = vmul.f32 1.442695, %v1791_v9  ;;  %v4160_v9 = vor.u32 %v4343_v25, %v4159_v39 }
 0x20c   : > { %1870 = vrot.lane.b32.xlu2 %v4411_v15, %s4677_s19  ;;  %v4342_v15 = vld [vmem:[%s6809_s7 + $0x50] sm:$0xf0] }
 0x20d   : > { %4412 = vpow2.f32 %v1815_v0  ;;  %v4153_v0 = vld [vmem:[%s6809_s7 + $0x54] sm:$0xf0]  ;;  %2359 = vmatpush.bf16.msra.mxu3 %v4160_v9  ;;  %v4338_v9 = vld [vmem:[%s6809_s7 + $0x34] sm:$0xf] }
 0x20e   : > { %v1714_v49 = vpop.f32.mrf.mxu3 }
 0x20f   : > { %v5571_v3 = vadd.f32 %v1714_v49, %v1657_v12  ;;  %v4152_v49 = vor.u32 %v4342_v15, %v4151_v55  ;;  %v1687_v55 = vadd.f32 %v5507_v22, %v5509_v16 }
 0x211   : > { %v1792_v62 = vmul.f32 0.5, %v5571_v3  ;;  %3559 = vst [vmem:[%s5518_s27 + $0x30] sm:$0xff] %v5571_v3  ;;  %2243 = vmatpush.bf16.msra.mxu0 %v4152_v49 }
 0x213   : > { %v4413_v40 = vpop.eup %4412  ;;  %v1817_v30 = vmul.f32 1.442695, %v1792_v62  ;;  %v4156_v62 = vor.u32 %v4341_v52, %v4153_v0  ;;  %v4380_v52 = vld [vmem:[%s5674_s16 + $0x8] sm:$0xff]   ;;  %v4141_v0 = vld [vmem:[%s6809_s7 + $0x3c] sm:$0xf0] }
 0x214   : > { %1872 = vrot.lane.b32.xlu2 %v4413_v40, %s4677_s19  ;;  %v4144_v49 = vor.u32 %v4338_v9, %v4141_v0 }
 0x215   : > { %4414 = vpow2.f32 %v1817_v30  ;;  %2301 = vmatpush.bf16.msra.mxu1 %v4156_v62 }
 0x216   : > { %v1716_v59 = vpop.f32.mrf.mxu3 }
 0x217   : > { %v5579_v33 = vadd.f32 %v1716_v59, %v1659_v53  ;;  %v1677_v59 = vadd.f32 %v5507_v22, %v5481_v38 }
 0x219   : > { %v1793_v58 = vmul.f32 0.5, %v5579_v33  ;;  %3560 = vst [vmem:[%s5518_s27 + $0x38] sm:$0xff] %v5579_v33  ;;  %2302 = vmatpush.bf16.msra.mxu1 %v4144_v49 }
 0x21b   : > { %v4415_v45 = vpop.eup %4414  ;;  %v1819_v13 = vmul.f32 1.442695, %v1793_v58 }
 0x21c   : > { %1874 = vrot.lane.b32.xlu0 %v4415_v45, %s4677_s19 }
 0x21d   : > { %4416 = vpow2.f32 %v1819_v13 }
 0x21e   : > { %v1719_v1 = vpop.f32.mrf.mxu3 }
 0x21f   : > { %v5587_v17 = vadd.f32 %v1719_v1, %v1662_v32 }
 0x221   : > { %v1794_v20 = vmul.f32 0.5, %v5587_v17  ;;  %3561 = vst [vmem:[%s5518_s27 + $0x40] sm:$0xff] %v5587_v17 }
 0x223   : > { %v4417_v31 = vpop.eup %4416  ;;  %v1821_v29 = vmul.f32 1.442695, %v1794_v20  ;;  %v1679_v20 = vadd.f32 %v5507_v22, %v5487_v11  ;;  %v1682_v11 = vadd.f32 %v5507_v22, %v5491_v6  ;;  %v1684_v6 = vadd.f32 %v5507_v22, %v5497_v28 }
 0x224   : > { %1876 = vrot.lane.b32.xlu1 %v4417_v31, %s4677_s19 }
 0x225   : > { %4418 = vpow2.f32 %v1821_v29 }
 0x226   : > { %v1721_v37 = vpop.f32.mrf.mxu3 }
 0x227   : > { %v5598_v8 = vadd.f32 %v1721_v37, %v1664_v26 }
 0x229   : > { %v1795_v54 = vmul.f32 0.5, %v5598_v8  ;;  %3562 = vst [vmem:[%s5518_s27 + $0x48] sm:$0xff] %v5598_v8 }
 0x22b   : > { %v4419_v27 = vpop.eup %4418  ;;  %v1823_v23 = vmul.f32 1.442695, %v1795_v54 }
 0x22c   : > { %1878 = vrot.lane.b32.xlu2 %v4419_v27, %s4677_s19 }
 0x22d   : > { %4420 = vpow2.f32 %v1823_v23  ;;  %v4345_v23 = vld [vmem:[%s5674_s16] sm:$0xff]  }
 0x22e   : > { %v1724_v56 = vpop.f32.mrf.mxu3 }
 0x22f   : > { %v5606_v63 = vadd.f32 %v1724_v56, %v1667_v7  ;;  %v4346_v56 = vunpack.c.l.bf16 %v4345_v23 }
 0x231   : > { %v1796_v57 = vmul.f32 0.5, %v5606_v63  ;;  %3563 = vst [vmem:[%s5518_s27 + $0x50] sm:$0xff] %v5606_v63 }
 0x233   : > { %v4421_v21 = vpop.eup %4420  ;;  %v1825_v5 = vmul.f32 1.442695, %v1796_v57 }
 0x234   : > { %1880 = vrot.lane.b32.xlu0 %v4421_v21, %s4677_s19 }
 0x235   : > { %4422 = vpow2.f32 %v1825_v5  ;;  %v4347_v5 = vunpack.c.h.bf16 %v4345_v23 }
 0x236   : > { %v1726_v46 = vpop.f32.mrf.mxu3 }
 0x237   : > { %v5614_v51 = vadd.f32 %v1726_v46, %v1669_v19 }
 0x239   : > { %v1797_v35 = vmul.f32 0.5, %v5614_v51  ;;  %3564 = vst [vmem:[%s5518_s27 + $0x58] sm:$0xff] %v5614_v51 }
 0x23b   : > { %v4423_v47 = vpop.eup %4422  ;;  %v1827_v36 = vmul.f32 1.442695, %v1797_v35 }
 0x23c   : > { %1882 = vrot.lane.b32.xlu1 %v4423_v47, %s4677_s19 }
 0x23d   : > { %4424 = vpow2.f32 %v1827_v36 }
 0x23e   : > { %v1729_v50 = vpop.f32.mrf.mxu3 }
 0x23f   : > { %v5622_v44 = vadd.f32 %v1729_v50, %v1672_v10  ;;  %v4147_v50 = vld [vmem:[%s6809_s7 + $0x38] sm:$0xf] }
 0x241   : > { %v1798_v43 = vmul.f32 0.5, %v5622_v44  ;;  %3565 = vst [vmem:[%s5518_s27 + $0x60] sm:$0xff] %v5622_v44 }
 0x243   : > { %v4425_v4 = vpop.eup %4424  ;;  %v1829_v42 = vmul.f32 1.442695, %v1798_v43  ;;  %v4340_v43 = vld [vmem:[%s6809_s7 + $0x40] sm:$0xf0] }
 0x244   : > { %1884 = vrot.lane.b32.xlu2 %v4425_v4, %s4677_s19 }
 0x245   : > { %4426 = vpow2.f32 %v1829_v42  ;;  %v4148_v42 = vor.u32 %v4340_v43, %v4147_v50  ;;  %v4129_v50 = vld [vmem:[%s6809_s7 + $0x24] sm:$0xf0] }
 0x246   : > { %v1731_v14 = vpop.f32.mrf.mxu3 }
 0x247   : > { %v5648_v12 = vadd.f32 %v1731_v14, %v1674_v48  ;;  %2360 = vmatpush.bf16.msra.mxu3 %v4148_v42 }
 0x249   : > { %v1799_v40 = vmul.f32 0.5, %v5648_v12  ;;  %3566 = vst [vmem:[%s5518_s27 + $0x68] sm:$0xff] %v5648_v12 }
 0x24b   : > { %v4427_v30 = vpop.eup %4426  ;;  %v1831_v53 = vmul.f32 1.442695, %v1799_v40  ;;  %v4350_v40 = vunpack.c.l.bf16 %v4380_v52 }
 0x24c   : > { %1886 = vrot.lane.b32.xlu0 %v4427_v30, %s4677_s19 }
 0x24d   : > { %4428 = vpow2.f32 %v1831_v53 }
 0x24e   : > { %v1734_v58 = vpop.f32.mrf.mxu3 }
 0x24f   : > { %v5656_v45 = vadd.f32 %v1734_v58, %v1677_v59  ;;  %v4351_v59 = vunpack.c.h.bf16 %v4380_v52 }
 0x251   : > { %v1800_v13 = vmul.f32 0.5, %v5656_v45  ;;  %3567 = vst [vmem:[%s5518_s27 + $0x70] sm:$0xff] %v5656_v45 }
 0x253   : > { %v4429_v32 = vpop.eup %4428  ;;  %v1833_v1 = vmul.f32 1.442695, %v1800_v13 }
 0x254   : > { %1888 = vrot.lane.b32.xlu1 %v4429_v32, %s4677_s19 }
 0x255   : > { %4430 = vpow2.f32 %v1833_v1 }
 0x256   : > { %v1736_v31 = vpop.f32.mrf.mxu3 }
 0x257   : > { %v5664_v29 = vadd.f32 %v1736_v31, %v1679_v20 }
 0x259   : > { %v1801_v38 = vmul.f32 0.5, %v5664_v29  ;;  %3568 = vst [vmem:[%s5518_s27 + $0x78] sm:$0xff] %v5664_v29 }
 0x25b   : > { %v4431_v26 = vpop.eup %4430  ;;  %v1835_v24 = vmul.f32 1.442695, %v1801_v38 }
 0x25c   : > { %1890 = vrot.lane.b32.xlu2 %v4431_v26, %s4677_s19 }
 0x25d   : > { %4432 = vpow2.f32 %v1835_v24 }
 0x25e   : > { %v1739_v37 = vpop.f32.mrf.mxu3  ;;  %v1863_v54 = vpop.permute.xlu0 %1862 }
 0x25f   : > { %v5678_v27 = vadd.f32 %v1739_v37, %v1682_v11  ;;  %v1919_v19 = vmul.f32 %v4346_v56, %v1863_v54  ;;  %v4381_v11 = vld [vmem:[%s5674_s16 + $0x10] sm:$0xff]  }
 0x260   : > { %v4355_v37 = vunpack.c.h.bf16 %v4381_v11  ;;  %v4354_v23 = vunpack.c.l.bf16 %v4381_v11 }
 0x261   : > { %v1802_v7 = vmul.f32 0.5, %v5678_v27  ;;  %3569 = vst [vmem:[%s5518_s27 + $0x80] sm:$0xff] %v5678_v27  ;;  %v1938_v28 = vadd.f32 %v1919_v19, %v5520_v2  ;;  %v4139_v2 = vld [vmem:[%s6809_s7 + $0x30] sm:$0xf] }
 0x263   : > { %v4433_v57 = vpop.eup %4432  ;;  %v1837_v21 = vmul.f32 1.442695, %v1802_v7 }
 0x264   : > { %1892 = vrot.lane.b32.xlu0 %v4433_v57, %s4677_s19 }
 0x265   : > { %4434 = vpow2.f32 %v1837_v21 }
 0x266   : > { %v1741_v46 = vpop.f32.mrf.mxu3  ;;  %v1865_v47 = vpop.permute.xlu0 %1864 }
 0x267   : > { %v5687_v35 = vadd.f32 %v1741_v46, %v1684_v6  ;;  %v1920_v36 = vmul.f32 %v4347_v5, %v1865_v47  ;;  %v1871_v32 = vpop.permute.xlu2 %1870  ;;  %v4135_v46 = vld [vmem:[%s6809_s7 + $0x20] sm:$0xf]  ;;  %v4337_v47 = vld [vmem:[%s6809_s7 + $0x28] sm:$0xf0] }
 0x268   : > { %v1923_v56 = vmul.f32 %v4354_v23, %v1871_v32 }
 0x269   : > { %v1803_v10 = vmul.f32 0.5, %v5687_v35  ;;  %3570 = vst [vmem:[%s5518_s27 + $0x88] sm:$0xff] %v5687_v35  ;;  %v1939_v4 = vadd.f32 %v1920_v36, %v5528_v41  ;;  %v4339_v41 = vld [vmem:[%s6809_s7 + $0x38] sm:$0xf0]  ;;  %v4336_v36 = vld [vmem:[%s6809_s7 + $0x20] sm:$0xf0] }
 0x26a   : > { %v4140_v16 = vor.u32 %v4339_v41, %v4139_v2  ;;  %v1942_v21 = vadd.f32 %v1923_v56, %v5555_v60  ;;  %v4136_v60 = vor.u32 %v4337_v47, %v4135_v46 }
 0x26b   : > { %v4435_v48 = vpop.eup %4434  ;;  %v1839_v39 = vmul.f32 1.442695, %v1803_v10  ;;  %v1957_v25 = vpack.c.bf16 %v1939_v4, %v1938_v28  ;;  %v4335_v10 = vld [vmem:[%s6809_s7 + $0x1c] sm:$0xf] }
 0x26c   : > { %1894 = vrot.lane.b32.xlu1 %v4435_v48, %s4677_s19  ;;  %2244 = vmatpush.bf16.msra.mxu0 %v4140_v16  ;;  %v4132_v4 = vor.u32 %v4335_v10, %v4129_v50 }
 0x26d   : > { %4436 = vpow2.f32 %v1839_v39  ;;  %4103 = vmatmul.msk.bf16.vlgmr.msra.gmra.mxu2 %vm2003_vm15, %v1957_v25  ;;  %2361 = vmatpush.bf16.msra.mxu3 %v4136_v60 }
 0x26e   : > { %v1744_v14 = vpop.f32.mrf.mxu3  ;;  %v1867_v22 = vpop.permute.xlu1 %1866  ;;  %2303 = vmatpush.bf16.msra.mxu1 %v4132_v4 }
 0x26f   : > { %v5713_v15 = vadd.f32 %v1744_v14, %v1687_v55  ;;  %v1921_v58 = vmul.f32 %v4350_v40, %v1867_v22  ;;  %v1873_v54 = vpop.permute.xlu2 %1872  ;;  %v4383_v14 = vld [vmem:[%s5674_s16 + $0x20] sm:$0xff]  }
 0x270   : > { %v1924_v7 = vmul.f32 %v4355_v37, %v1873_v54  ;;  %v4362_v2 = vunpack.c.l.bf16 %v4383_v14  ;;  %v4363_v9 = vunpack.c.h.bf16 %v4383_v14  ;;  %v1766_v14 = vld [vmem:[%s5674_s16 + $0x48] sm:$0xf] }
 0x271   : > { %v1804_v62 = vmul.f32 0.5, %v5713_v15  ;;  %3571 = vst [vmem:[%s5518_s27 + $0x90] sm:$0xff] %v5713_v15  ;;  %v1940_v31 = vadd.f32 %v1921_v58, %v5536_v18 }
 0x272   : > { %v1943_v57 = vadd.f32 %v1924_v7, %v5563_v61  ;;  %v4127_v61 = vld [vmem:[%s6809_s7 + $0x18] sm:$0xf] }
 0x273   : > { %v4437_v30 = vpop.eup %4436  ;;  %v1841_v53 = vmul.f32 1.442695, %v1804_v62  ;;  %v4128_v28 = vor.u32 %v4336_v36, %v4127_v61 }
 0x274   : > { %1896 = vrot.lane.b32.xlu2 %v4437_v30, %s4677_s19  ;;  %v1959_v18 = vpack.c.bf16 %v1943_v57, %v1942_v21 }
 0x275   : > { %4438 = vpow2.f32 %v1841_v53  ;;  %2245 = vmatpush.bf16.msra.mxu0 %v4128_v28 }
 0x276   : > { %v1746_v13 = vpop.f32.mrf.mxu3  ;;  %v1869_v1 = vpop.permute.xlu1 %1868 }
 0x277   : > { %v1922_v20 = vmul.f32 %v4351_v59, %v1869_v1 }
 0x279   : > { %v1941_v38 = vadd.f32 %v1922_v20, %v5544_v34  ;;  %v4382_v34 = vld [vmem:[%s5674_s16 + $0x18] sm:$0xff]  }
 0x27a   : > { %v4358_v5 = vunpack.c.l.bf16 %v4382_v34  ;;  %v4359_v19 = vunpack.c.h.bf16 %v4382_v34 }
 0x27b   : > { %v4439_v26 = vpop.eup %4438  ;;  %v1958_v24 = vpack.c.bf16 %v1941_v38, %v1940_v31  ;;  %v4385_v31 = vld [vmem:[%s5674_s16 + $0x30] sm:$0xff]   ;;  %v4332_v38 = vld [vmem:[%s6809_s7 + $0x4] sm:$0xf] }
 0x27c   : > { %1898 = vrot.lane.b32.xlu0 %v4439_v26, %s4677_s19  ;;  %v4370_v37 = vunpack.c.l.bf16 %v4385_v31  ;;  %v4371_v23 = vunpack.c.h.bf16 %v4385_v31 }
 0x27d   : > { %4104 = vmatmul.msk.bf16.gmra.mxu2 %vm2003_vm15, %v1958_v24  ;;  %v4117_v24 = vld [vmem:[%s6809_s7 + $0xc] sm:$0xf0] }
 0x27e   : > { %v4120_v11 = vor.u32 %v4332_v38, %v4117_v24 }
 0x280   : > { %2304 = vmatpush.bf16.msra.mxu1 %v4120_v11 }
 0x286   : > { %v1879_v41 = vpop.permute.xlu2 %1878 }
 0x287   : > { %v1927_v52 = vmul.f32 %v4362_v2, %v1879_v41 }
 0x289   : > { %v1946_v0 = vadd.f32 %v1927_v52, %v5587_v17  ;;  %v4123_v17 = vld [vmem:[%s6809_s7 + $0x8] sm:$0xf] }
 0x28d   : > { %4105 = vmatmul.msk.bf16.gmra.mxu2 %vm2003_vm15, %v1959_v18 }
 0x28e   : > { %v1875_v6 = vpop.permute.xlu0 %1874 }
 0x28f   : > { %v1925_v43 = vmul.f32 %v4358_v5, %v1875_v6  ;;  %v4386_v5 = vld [vmem:[%s5674_s16 + $0x38] sm:$0xff]  }
 0x290   : > { %v4374_v6 = vunpack.c.l.bf16 %v4386_v5  ;;  %v4375_v46 = vunpack.c.h.bf16 %v4386_v5 }
 0x291   : > { %v1944_v39 = vadd.f32 %v1925_v43, %v5571_v3  ;;  %v4384_v3 = vld [vmem:[%s5674_s16 + $0x28] sm:$0xff]  }
 0x292   : > { %v4367_v30 = vunpack.c.h.bf16 %v4384_v3 }
 0x296   : > { %v1877_v42 = vpop.permute.xlu1 %1876 }
 0x297   : > { %v1926_v48 = vmul.f32 %v4359_v19, %v1877_v42 }
 0x299   : > { %v1945_v25 = vadd.f32 %v1926_v48, %v5579_v33  ;;  %v4366_v33 = vunpack.c.l.bf16 %v4384_v3 }
 0x29b   : > { %v1960_v55 = vpack.c.bf16 %v1945_v25, %v1944_v39 }
 0x29d   : > { %4106 = vmatmul.msk.bf16.gmra.mxu2 %vm2003_vm15, %v1960_v55 }
 0x29e   : > { %v1885_v53 = vpop.permute.xlu2 %1884 }
 0x29f   : > { %v1930_v58 = vmul.f32 %v4367_v30, %v1885_v53 }
 0x2a1   : > { %v1949_v32 = vadd.f32 %v1930_v58, %v5614_v51  ;;  %v4333_v51 = vld [vmem:[%s6809_s7 + $0x8] sm:$0xf0] }
 0x2a6   : > { %v1881_v22 = vpop.permute.xlu0 %1880 }
 0x2a7   : > { %v1928_v16 = vmul.f32 %v4363_v9, %v1881_v22  ;;  %v5795_v9 = vld [vmem:[%s6808_s6] ss:$0 sm:$0xff] }
 0x2a9   : > { %v1947_v49 = vadd.f32 %v1928_v16, %v5598_v8  ;;  %v4334_v8 = vld [vmem:[%s6809_s7 + $0x10] sm:$0xf0] }
 0x2aa   : > { %v4124_v20 = vor.u32 %v4334_v8, %v4123_v17 }
 0x2ab   : > { %v1961_v62 = vpack.c.bf16 %v1947_v49, %v1946_v0 }
 0x2ac   : > { %2362 = vmatpush.bf16.msra.mxu3 %v4124_v20 }
 0x2ad   : > { %4107 = vmatmul.msk.bf16.gmra.mxu2 %vm2003_vm15, %v1961_v62 }
 0x2ae   : > { %v1883_v40 = vpop.permute.xlu1 %1882 }
 0x2af   : > { %v1929_v59 = vmul.f32 %v4366_v33, %v1883_v40 }
 0x2b1   : > { %v1948_v13 = vadd.f32 %v1929_v59, %v5606_v63  ;;  %v4115_v63 = vld [vmem:[%s6809_s7] sm:$0xf] }
 0x2b2   : > { %v4116_v26 = vor.u32 %v4333_v51, %v4115_v63 }
 0x2b3   : > { %v1962_v1 = vpack.c.bf16 %v1949_v32, %v1948_v13 }
 0x2b4   : > { %2246 = vmatpush.bf16.msra.mxu0 %v4116_v26 }
 0x2b6   : > { %v1891_v19 = vpop.permute.xlu2 %1890 }
 0x2b7   : > { %v1933_v47 = vmul.f32 %v4374_v6, %v1891_v19 }
 0x2b9   : > { %v1952_v36 = vadd.f32 %v1933_v47, %v5656_v45  ;;  %v1785_v45 = vunpack.c.l.bf16 %v1766_v14  ;;  %v2137_v14 = vld [vmem:[%s6810_s8] sm:$0x7] }
 0x2bd   : > { %4108 = vmatmul.msk.bf16.gmra.mxu2 %vm2003_vm15, %v1962_v1 }
 0x2be   : > { %v1887_v54 = vpop.permute.xlu0 %1886 }
 0x2bf   : > { %v1931_v7 = vmul.f32 %v4370_v37, %v1887_v54 }
 0x2c1   : > { %v1950_v21 = vadd.f32 %v1931_v7, %v5622_v44  ;;  %v4387_v44 = vld [vmem:[%s5674_s16 + $0x40] sm:$0xff]  }
 0x2c2   : > { %v4379_v28 = vunpack.c.h.bf16 %v4387_v44 }
 0x2c6   : > { %v1889_v56 = vpop.permute.xlu1 %1888 }
 0x2c7   : > { %v1932_v57 = vmul.f32 %v4371_v23, %v1889_v56 }
 0x2c9   : > { %v1951_v18 = vadd.f32 %v1932_v57, %v5648_v12  ;;  %v4378_v12 = vunpack.c.l.bf16 %v4387_v44 }
 0x2cb   : > { %v1963_v34 = vpack.c.bf16 %v1951_v18, %v1950_v21 }
 0x2cd   : > { %4109 = vmatmul.msk.bf16.gmra.mxu2 %vm2003_vm15, %v1963_v34 }
 0x2ce   : > { %v1897_v4 = vpop.permute.xlu2 %1896 }
 0x2cf   : > { %v1936_v48 = vmul.f32 %v4379_v28, %v1897_v4 }
 0x2d1   : > { %v1955_v25 = vadd.f32 %v1936_v48, %v5687_v35 }
 0x2d6   : > { %v1893_v61 = vpop.permute.xlu0 %1892 }
 0x2d7   : > { %v1934_v60 = vmul.f32 %v4375_v46, %v1893_v61 }
 0x2d9   : > { %v1953_v10 = vadd.f32 %v1934_v60, %v5664_v29 }
 0x2db   : > { %v1964_v50 = vpack.c.bf16 %v1953_v10, %v1952_v36 }
 0x2dd   : > { %4110 = vmatmul.msk.bf16.gmra.mxu2 %vm2003_vm15, %v1964_v50 }
 0x2de   : > { %v1895_v43 = vpop.permute.xlu1 %1894 }
 0x2df   : > { %v1935_v42 = vmul.f32 %v4378_v12, %v1895_v43 }
 0x2e1   : > { %v1954_v39 = vadd.f32 %v1935_v42, %v5678_v27 }
 0x2e3   : > { %v1965_v55 = vpack.c.bf16 %v1955_v25, %v1954_v39 }
 0x2ed   : > { %4111 = vmatmul.msk.bf16.gmra.mxu2 %vm2003_vm15, %v1965_v55 }
 0x2ee   : > { %v1899_v29 = vpop.permute.xlu0 %1898 }
 0x2ef   : > { %v1937_v41 = vmul.f32 %v1899_v29, %v1785_v45 }
 0x2f0   : > { %v2043_v2 = vpop.f32.mrf.mxu2 }
 0x2f1   : > { %v1956_v52 = vadd.f32 %v1937_v41, %v5713_v15  ;;  %v2044_v22 = vadd.f32 %v5795_v9, %v2043_v2  ;;  %v5844_v41 = vperm.slane %v2137_v14, 0 }
 0x2f3   : > { %v1966_v16 = vpack.c.bf16 %v1956_v52, %v1956_v52  ;;  %v2092_v0 = vmax.f32 %v2044_v22, 0.0  ;;  %v5846_v52 = vperm.slane %v2137_v14, 1 }
 0x2f8   : > { %v2045_v27 = vpop.f32.mrf.mxu2 }
 0x2f9   : > { %v2046_v35 = vadd.f32 %v5795_v9, %v2045_v27 }
 0x2fb   : > { %v2093_v49 = vmax.f32 %v2046_v35, 0.0 }
 0x2fd   : > { %v2111_v62 = vpack.c.bf16 %v2093_v49, %v2092_v0  ;;  %4112 = vmatmul.msk.bf16.gmra.mxu2 %vm2003_vm15, %v1966_v16 }
 0x2ff   : > { %4161 = vmatmul.msk.bf16.vlgmr.msra.gmra.mxu0 %vm2003_vm15, %v2111_v62  ;;  %4171 = vmatmul.msk.bf16.vlgmr.msra.gmra.mxu1 %vm2003_vm15, %v2111_v62 }
 0x300   : > { %4181 = vmatmul.msk.bf16.vlgmr.msra.gmra.mxu3 %vm2003_vm15, %v2111_v62  ;;  %v2048_v3 = vpop.f32.mrf.mxu2 }
 0x301   : > { %v2049_v15 = vadd.f32 %v5795_v9, %v2048_v3 }
 0x303   : > { %v2094_v30 = vmax.f32 %v2049_v15, 0.0 }
 0x308   : > { %v2050_v33 = vpop.f32.mrf.mxu2 }
 0x309   : > { %v2051_v40 = vadd.f32 %v5795_v9, %v2050_v33 }
 0x30b   : > { %v2095_v53 = vmax.f32 %v2051_v40, 0.0  ;;  %v5853_v40 = vperm.slane %v2137_v14, 2 }
 0x30d   : > { %v2112_v59 = vpack.c.bf16 %v2095_v53, %v2094_v30 }
 0x30f   : > { %4162 = vmatmul.msk.bf16.gmra.mxu0 %vm2003_vm15, %v2112_v59  ;;  %4172 = vmatmul.msk.bf16.gmra.mxu1 %vm2003_vm15, %v2112_v59 }
 0x310   : > { %4182 = vmatmul.msk.bf16.gmra.mxu3 %vm2003_vm15, %v2112_v59  ;;  %v2053_v58 = vpop.f32.mrf.mxu2 }
 0x311   : > { %v2054_v13 = vadd.f32 %v5795_v9, %v2053_v58 }
 0x313   : > { %v2096_v8 = vmax.f32 %v2054_v13, 0.0 }
 0x318   : > { %v2055_v32 = vpop.f32.mrf.mxu2 }
 0x319   : > { %v2056_v17 = vadd.f32 %v5795_v9, %v2055_v32 }
 0x31b   : > { %v2097_v1 = vmax.f32 %v2056_v17, 0.0 }
 0x31d   : > { %v2113_v20 = vpack.c.bf16 %v2097_v1, %v2096_v8 }
 0x31f   : > { %4163 = vmatmul.msk.bf16.gmra.mxu0 %vm2003_vm15, %v2113_v20  ;;  %4173 = vmatmul.msk.bf16.gmra.mxu1 %vm2003_vm15, %v2113_v20 }
 0x320   : > { %4183 = vmatmul.msk.bf16.gmra.mxu3 %vm2003_vm15, %v2113_v20  ;;  %v2058_v31 = vpop.f32.mrf.mxu2 }
 0x321   : > { %v2059_v63 = vadd.f32 %v5795_v9, %v2058_v31 }
 0x323   : > { %v2098_v26 = vmax.f32 %v2059_v63, 0.0 }
 0x328   : > { %v2060_v51 = vpop.f32.mrf.mxu2 }
 0x329   : > { %v2061_v38 = vadd.f32 %v5795_v9, %v2060_v51 }
 0x32b   : > { %v2099_v24 = vmax.f32 %v2061_v38, 0.0 }
 0x32d   : > { %v2114_v11 = vpack.c.bf16 %v2099_v24, %v2098_v26 }
 0x32f   : > { %4164 = vmatmul.msk.bf16.gmra.mxu0 %vm2003_vm15, %v2114_v11  ;;  %4174 = vmatmul.msk.bf16.gmra.mxu1 %vm2003_vm15, %v2114_v11 }
 0x330   : > { %4184 = vmatmul.msk.bf16.gmra.mxu3 %vm2003_vm15, %v2114_v11  ;;  %v2063_v37 = vpop.f32.mrf.mxu2 }
 0x331   : > { %v2064_v54 = vadd.f32 %v5795_v9, %v2063_v37 }
 0x333   : > { %v2100_v56 = vmax.f32 %v2064_v54, 0.0 }
 0x338   : > { %v2065_v23 = vpop.f32.mrf.mxu2 }
 0x339   : > { %v2066_v7 = vadd.f32 %v5795_v9, %v2065_v23 }
 0x33b   : > { %v2101_v57 = vmax.f32 %v2066_v7, 0.0 }
 0x33d   : > { %v2115_v21 = vpack.c.bf16 %v2101_v57, %v2100_v56 }
 0x33f   : > { %4165 = vmatmul.msk.bf16.gmra.mxu0 %vm2003_vm15, %v2115_v21  ;;  %4175 = vmatmul.msk.bf16.gmra.mxu1 %vm2003_vm15, %v2115_v21 }
 0x340   : > { %4185 = vmatmul.msk.bf16.gmra.mxu3 %vm2003_vm15, %v2115_v21  ;;  %v2068_v18 = vpop.f32.mrf.mxu2 }
 0x341   : > { %v2069_v34 = vadd.f32 %v5795_v9, %v2068_v18 }
 0x343   : > { %v2102_v19 = vmax.f32 %v2069_v34, 0.0 }
 0x348   : > { %v2070_v5 = vpop.f32.mrf.mxu2 }
 0x349   : > { %v2071_v6 = vadd.f32 %v5795_v9, %v2070_v5 }
 0x34b   : > { %v2103_v46 = vmax.f32 %v2071_v6, 0.0 }
 0x34d   : > { %v2116_v47 = vpack.c.bf16 %v2103_v46, %v2102_v19 }
 0x34f   : > { %4166 = vmatmul.msk.bf16.gmra.mxu0 %vm2003_vm15, %v2116_v47  ;;  %4176 = vmatmul.msk.bf16.gmra.mxu1 %vm2003_vm15, %v2116_v47 }
 0x350   : > { %4186 = vmatmul.msk.bf16.gmra.mxu3 %vm2003_vm15, %v2116_v47  ;;  %v2073_v61 = vpop.f32.mrf.mxu2 }
 0x351   : > { %v2074_v60 = vadd.f32 %v5795_v9, %v2073_v61 }
 0x353   : > { %v2104_v50 = vmax.f32 %v2074_v60, 0.0 }
 0x358   : > { %v2075_v36 = vpop.f32.mrf.mxu2 }
 0x359   : > { %v2076_v10 = vadd.f32 %v5795_v9, %v2075_v36 }
 0x35b   : > { %v2105_v44 = vmax.f32 %v2076_v10, 0.0 }
 0x35d   : > { %v2117_v12 = vpack.c.bf16 %v2105_v44, %v2104_v50 }
 0x35f   : > { %4167 = vmatmul.msk.bf16.gmra.mxu0 %vm2003_vm15, %v2117_v12  ;;  %4177 = vmatmul.msk.bf16.gmra.mxu1 %vm2003_vm15, %v2117_v12 }
 0x360   : > { %4187 = vmatmul.msk.bf16.gmra.mxu3 %vm2003_vm15, %v2117_v12  ;;  %v2078_v43 = vpop.f32.mrf.mxu2 }
 0x361   : > { %v2079_v28 = vadd.f32 %v5795_v9, %v2078_v43 }
 0x363   : > { %v2106_v48 = vmax.f32 %v2079_v28, 0.0 }
 0x368   : > { %v2080_v4 = vpop.f32.mrf.mxu2 }
 0x369   : > { %v2081_v42 = vadd.f32 %v5795_v9, %v2080_v4 }
 0x36b   : > { %v2107_v39 = vmax.f32 %v2081_v42, 0.0 }
 0x36d   : > { %v2118_v25 = vpack.c.bf16 %v2107_v39, %v2106_v48 }
 0x36f   : > { %4168 = vmatmul.msk.bf16.gmra.mxu0 %vm2003_vm15, %v2118_v25  ;;  %4178 = vmatmul.msk.bf16.gmra.mxu1 %vm2003_vm15, %v2118_v25 }
 0x370   : > { %4188 = vmatmul.msk.bf16.gmra.mxu3 %vm2003_vm15, %v2118_v25  ;;  %v2083_v55 = vpop.f32.mrf.mxu2 }
 0x371   : > { %v2084_v45 = vadd.f32 %v5795_v9, %v2083_v55 }
 0x373   : > { %v2108_v22 = vmax.f32 %v2084_v45, 0.0 }
 0x378   : > { %v2085_v29 = vpop.f32.mrf.mxu2 }
 0x379   : > { %v2086_v2 = vadd.f32 %v5795_v9, %v2085_v29 }
 0x37b   : > { %v2109_v27 = vmax.f32 %v2086_v2, 0.0 }
 0x37c   : > { %v2248_v35 = vpop.f32.mrf.mxu0  ;;  %v2306_v16 = vpop.f32.mrf.mxu1 }
 0x37d   : > { %v2119_v0 = vpack.c.bf16 %v2109_v27, %v2108_v22  ;;  %v2249_v49 = vadd.f32 %v2248_v35, %v5844_v41  ;;  %v2307_v62 = vadd.f32 %v2306_v16, %v5846_v52 }
 0x37f   : > { %v4191_v3 = vmul.f32 -1.442695, %v2249_v49  ;;  %v4192_v15 = vmul.f32 -1.442695, %v2307_v62  ;;  %4169 = vmatmul.msk.bf16.gmra.mxu0 %vm2003_vm15, %v2119_v0  ;;  %4179 = vmatmul.msk.bf16.gmra.mxu1 %vm2003_vm15, %v2119_v0 }
 0x380   : > { %4189 = vmatmul.msk.bf16.gmra.mxu3 %vm2003_vm15, %v2119_v0  ;;  %v2088_v33 = vpop.f32.mrf.mxu2 }
 0x381   : > { %4440 = vpow2.f32 %v4191_v3  ;;  %v2089_v13 = vadd.f32 %v5795_v9, %v2088_v33 }
 0x382   : > { %4442 = vpow2.f32 %v4192_v15 }
 0x383   : > { %v2364_v30 = vpop.f32.mrf.mxu3  ;;  %v2110_v24 = vmax.f32 %v2089_v13, 0.0 }
 0x384   : > { %v2365_v53 = vadd.f32 %v2364_v30, %v5853_v40  ;;  %v2250_v59 = vpop.f32.mrf.mxu0  ;;  %v2308_v58 = vpop.f32.mrf.mxu1 }
 0x385   : > { %v2251_v32 = vadd.f32 %v2250_v59, %v5844_v41  ;;  %v2309_v17 = vadd.f32 %v2308_v58, %v5846_v52  ;;  %v2120_v23 = vpack.c.bf16 %v2110_v24, %v2110_v24 }
 0x386   : > { %v4193_v8 = vmul.f32 -1.442695, %v2365_v53 }
 0x387   : > { %v4441_v1 = vpop.eup %4440  ;;  %v4194_v20 = vmul.f32 -1.442695, %v2251_v32  ;;  %v4195_v51 = vmul.f32 -1.442695, %v2309_v17 }
 0x388   : > { %v4443_v31 = vpop.eup %4442  ;;  %v5859_v63 = vadd.f32 1.0, %v4441_v1  ;;  %4444 = vpow2.f32 %v4193_v8  ;;  %v2090_v38 = vpop.f32.mrf.mxu2 }
 0x389   : > { %v5861_v26 = vadd.f32 1.0, %v4443_v31  ;;  %4446 = vpow2.f32 %v4194_v20 }
 0x38a   : > { %4448 = vrcp.f32 %v5859_v63  ;;  %v2650_v34 = vand.u32 2147483647, %v5859_v63  ;;  %v2652_v5 = vand.u32 2147483648, %v5859_v63  ;;  %vm2646_vm0 = vweird.f32 %v5859_v63 }
 0x38b   : > { %4450 = vrcp.f32 %v5861_v26  ;;  %v2366_v9 = vpop.f32.mrf.mxu3  ;;  %v2665_v46 = vand.u32 2147483647, %v5861_v26  ;;  %vm2661_vm2 = vweird.f32 %v5861_v26  ;;  %v2667_v44 = vand.u32 2147483648, %v5861_v26 }
 0x38c   : > { %4452 = vpow2.f32 %v4195_v51  ;;  %v2367_v11 = vadd.f32 %v2366_v9, %v5853_v40  ;;  %v2253_v37 = vpop.f32.mrf.mxu0  ;;  %v2311_v54 = vpop.f32.mrf.mxu1  ;;  %vm5884_vm3 = vcmp.eq.f32.partialorder %v2650_v34, 8.507059e+37  ;;  %v2653_v4 = vor.u32 1.1754944e-38, %v2652_v5 }
 0x38d   : > { %v2254_v7 = vadd.f32 %v2253_v37, %v5844_v41  ;;  %v2312_v21 = vadd.f32 %v2311_v54, %v5846_v52  ;;  %vm5890_vm5 = vcmp.eq.f32.partialorder %v2665_v46, 8.507059e+37  ;;  %v2668_v16 = vor.u32 1.1754944e-38, %v2667_v44 }
 0x38e   : > { %v4445_v56 = vpop.eup %4444  ;;  %v4196_v57 = vmul.f32 -1.442695, %v2367_v11 }
 0x38f   : > { %v4447_v18 = vpop.eup %4446  ;;  %v5870_v6 = vadd.f32 1.0, %v4445_v56  ;;  %4170 = vmatmul.msk.bf16.gmra.mxu0 %vm2003_vm15, %v2120_v23  ;;  %4180 = vmatmul.msk.bf16.gmra.mxu1 %vm2003_vm15, %v2120_v23  ;;  %v4197_v36 = vmul.f32 -1.442695, %v2254_v7  ;;  %v4198_v12 = vmul.f32 -1.442695, %v2312_v21 }
 0x390   : > { %v4449_v19 = vpop.eup %4448  ;;  %v5875_v47 = vadd.f32 1.0, %v4447_v18  ;;  %4454 = vpow2.f32 %v4196_v57  ;;  %4190 = vmatmul.msk.bf16.gmra.mxu3 %vm2003_vm15, %v2120_v23 }
 0x391   : > { %v4451_v61 = vpop.eup %4450  ;;  %v2642_v60 = vmul.f32 %v4449_v19, %v5859_v63  ;;  %4456 = vrcp.f32 %v5870_v6  ;;  %vm2647_vm4 = vweird.f32 %v4449_v19  ;;  %v2680_v25 = vand.u32 2147483647, %v5870_v6 }
 0x392   : > { %v4453_v10 = vpop.eup %4452  ;;  %v2657_v50 = vmul.f32 %v4451_v61, %v5861_v26  ;;  %4458 = vrcp.f32 %v5875_v47  ;;  %v2682_v14 = vand.u32 2147483648, %v5870_v6  ;;  %vm2662_vm6 = vweird.f32 %v4451_v61  ;;  %vm2648_vm8 = vmor %vm2646_vm0, %vm2647_vm4 }
 0x393   : > { %v2643_v43 = vsub.f32 1.0, %v2642_v60  ;;  %v2369_v42 = vpop.f32.mrf.mxu3  ;;  %v5896_v45 = vadd.f32 1.0, %v4453_v10  ;;  %4460 = vpow2.f32 %v4197_v36  ;;  %vm2676_vm7 = vweird.f32 %v5870_v6  ;;  %vm2663_vm11 = vmor %vm2661_vm2, %vm2662_vm6 }
 0x394   : > { %v2658_v48 = vsub.f32 1.0, %v2657_v50  ;;  %4462 = vpow2.f32 %v4198_v12  ;;  %v2370_v22 = vadd.f32 %v2369_v42, %v5853_v40  ;;  %v5901_v0 = vpop.f32.mrf.mxu0  ;;  %vm5912_vm9 = vcmp.eq.f32.partialorder %v2680_v25, 8.507059e+37  ;;  %v2313_v23 = vpop.f32.mrf.mxu1 }
 0x395   : > { %v2644_v55 = vmul.f32 %v4449_v19, %v2643_v43  ;;  %4464 = vrcp.f32 %v5896_v45  ;;  %vm2691_vm10 = vweird.f32 %v5875_v47  ;;  %v2695_v15 = vand.u32 2147483647, %v5875_v47 }
 0x396   : > { %v4455_v29 = vpop.eup %4454  ;;  %v2659_v2 = vmul.f32 %v4451_v61, %v2658_v48  ;;  %v2683_v53 = vor.u32 1.1754944e-38, %v2682_v14  ;;  %v4199_v58 = vmul.f32 -1.442695, %v2370_v22  ;;  %v2697_v31 = vand.u32 2147483648, %v5875_v47 }
 0x397   : > { %v4457_v27 = vpop.eup %4456  ;;  %v2645_v35 = vadd.f32 %v4449_v19, %v2644_v55  ;;  %v5921_v59 = vadd.f32 1.0, %v4455_v29  ;;  %v2710_v63 = vand.u32 2147483647, %v5896_v45  ;;  %vm5933_vm13 = vcmp.eq.f32.partialorder %v2695_v15, 8.507059e+37 }
 0x398   : > { %v2660_v49 = vadd.f32 %v4451_v61, %v2659_v2  ;;  %v2672_v62 = vmul.f32 %v4457_v27, %v5870_v6  ;;  %v4459_v33 = vpop.eup %4458  ;;  %vm2677_vm12 = vweird.f32 %v4457_v27  ;;  %v2712_v11 = vand.u32 2147483648, %v5896_v45 }
 0x399   : > { %v2649_v30 = vsel %vm2648_vm8, %v4449_v19, %v2645_v35  ;;  %v2687_v8 = vmul.f32 %v4459_v33, %v5875_v47  ;;  %v4461_v1 = vpop.eup %4460  ;;  %4466 = vrcp.f32 %v5921_v59  ;;  %vm2692_vm14 = vweird.f32 %v4459_v33  ;;  %vm2678_vm15 = vmor %vm2676_vm7, %vm2677_vm12 }
 0x39a   : > { %v2654_v13 = vsel %vm5884_vm3, %v2653_v4, %v2649_v30  ;;  %v2664_v32 = vsel %vm2663_vm11, %v4451_v61, %v2660_v49  ;;  %v2673_v17 = vsub.f32 1.0, %v2672_v62  ;;  %v4463_v51 = vpop.eup %4462  ;;  %v5938_v37 = vadd.f32 1.0, %v4461_v1  ;;  %vm2693_vm3 = vmor %vm2691_vm10, %vm2692_vm14 }
 0x39b   : > { %3496 = vst [vmem:[%s5906_s14] sm:$0xff] %v2654_v13  ;;  %v2669_v20 = vsel %vm5890_vm5, %v2668_v16, %v2664_v32  ;;  %v2688_v26 = vsub.f32 1.0, %v2687_v8  ;;  %v4465_v9 = vpop.eup %4464  ;;  %v5940_v54 = vadd.f32 1.0, %v4463_v51  ;;  %4468 = vpow2.f32 %v4199_v58  ;;  %v2371_v7 = vpop.f32.mrf.mxu3 }
 0x39c   : > { %3497 = vst [vmem:[%s5906_s14 + $0x8] sm:$0xff] %v2669_v20  ;;  %v2674_v38 = vmul.f32 %v4457_v27, %v2673_v17  ;;  %v2702_v21 = vmul.f32 %v4465_v9, %v5896_v45  ;;  %v2698_v18 = vor.u32 1.1754944e-38, %v2697_v31  ;;  %vm2706_vm0 = vweird.f32 %v5896_v45  ;;  %v2258_v50 = vpop.f32.mrf.mxu0 }
 0x39d   : > { %v2689_v57 = vmul.f32 %v4459_v33, %v2688_v26  ;;  %vm5946_vm2 = vcmp.eq.f32.partialorder %v2710_v63, 8.507059e+37  ;;  %4470 = vrcp.f32 %v5938_v37  ;;  %v2725_v61 = vand.u32 2147483647, %v5921_v59 }
 0x39e   : > { %v2675_v56 = vadd.f32 %v4457_v27, %v2674_v38  ;;  %v2703_v46 = vsub.f32 1.0, %v2702_v21  ;;  %v2713_v36 = vor.u32 1.1754944e-38, %v2712_v11  ;;  %v2727_v10 = vand.u32 2147483648, %v5921_v59 }
 0x39f   : > { %v2690_v19 = vadd.f32 %v4459_v33, %v2689_v57  ;;  %v4467_v60 = vpop.eup %4466  ;;  %4472 = vrcp.f32 %v5940_v54  ;;  %vm2707_vm4 = vweird.f32 %v4465_v9  ;;  %vm2721_vm5 = vweird.f32 %v5921_v59 }
 0x3a0   : > { %v2679_v5 = vsel %vm2678_vm15, %v4457_v27, %v2675_v56  ;;  %v2704_v12 = vmul.f32 %v4465_v9, %v2703_v46  ;;  %v2717_v43 = vmul.f32 %v4467_v60, %v5921_v59  ;;  %v2740_v47 = vand.u32 2147483647, %v5938_v37  ;;  %vm2708_vm7 = vmor %vm2706_vm0, %vm2707_vm4 }
 0x3a1   : > { %v2684_v6 = vsel %vm5912_vm9, %v2683_v53, %v2679_v5  ;;  %v2694_v44 = vsel %vm2693_vm3, %v4459_v33, %v2690_v19  ;;  %v4469_v28 = vpop.eup %4468  ;;  %v2742_v42 = vand.u32 2147483648, %v5938_v37  ;;  %vm5967_vm6 = vcmp.eq.f32.partialorder %v2725_v61, 8.507059e+37 }
 0x3a2   : > { %3498 = vst.msk [vmem:[%s5906_s14 + $0x10] sm:$0xff] %vm883_vm1, %v2684_v6  ;;  %v2699_v4 = vsel %vm5933_vm13, %v2698_v18, %v2694_v44  ;;  %v2705_v48 = vadd.f32 %v4465_v9, %v2704_v12  ;;  %v2718_v39 = vsub.f32 1.0, %v2717_v43  ;;  %v5971_v55 = vadd.f32 1.0, %v4469_v28 }
 0x3a3   : > { %3499 = vst [vmem:[%s5906_s14 + $0x18] sm:$0xff] %v2699_v4  ;;  %v4471_v14 = vpop.eup %4470  ;;  %vm2722_vm8 = vweird.f32 %v4467_v60  ;;  %v2728_v29 = vor.u32 1.1754944e-38, %v2727_v10  ;;  %vm2736_vm9 = vweird.f32 %v5938_v37  ;;  %v2256_v2 = vadd.f32 %v5901_v0, %v5844_v41  ;;  %v2316_v0 = vpop.f32.mrf.mxu1 }
 0x3a4   : > { %v2709_v22 = vsel %vm2708_vm7, %v4465_v9, %v2705_v48  ;;  %v2719_v27 = vmul.f32 %v4467_v60, %v2718_v39  ;;  %v2732_v35 = vmul.f32 %v4471_v14, %v5938_v37  ;;  %vm2751_vm10 = vweird.f32 %v5940_v54  ;;  %v2374_v15 = vpop.f32.mrf.mxu3  ;;  %vm2723_vm12 = vmor %vm2721_vm5, %vm2722_vm8  ;;  %v2260_v38 = vpop.f32.mrf.mxu0 }
 0x3a5   : > { %v2314_v16 = vadd.f32 %v2313_v23, %v5846_v52  ;;  %v4473_v49 = vpop.eup %4472  ;;  %v2714_v45 = vsel %vm5946_vm2, %v2713_v36, %v2709_v22  ;;  %vm5983_vm11 = vcmp.eq.f32.partialorder %v2740_v47, 8.507059e+37  ;;  %v2743_v3 = vor.u32 1.1754944e-38, %v2742_v42 }
 0x3a6   : > { %4474 = vrcp.f32 %v5971_v55  ;;  %3500 = vst [vmem:[%s5906_s14 + $0x20] sm:$0xff] %v2714_v45  ;;  %v2720_v33 = vadd.f32 %v4467_v60, %v2719_v27  ;;  %v2733_v30 = vsub.f32 1.0, %v2732_v35  ;;  %v2747_v53 = vmul.f32 %v4473_v49, %v5940_v54 }
 0x3a7   : > { %v2372_v58 = vadd.f32 %v2371_v7, %v5853_v40  ;;  %vm2737_vm13 = vweird.f32 %v4471_v14  ;;  %v2757_v13 = vand.u32 2147483648, %v5940_v54  ;;  %v4200_v32 = vmul.f32 -1.442695, %v2256_v2 }
 0x3a8   : > { %v2259_v17 = vadd.f32 %v2258_v50, %v5844_v41  ;;  %v2724_v8 = vsel %vm2723_vm12, %v4467_v60, %v2720_v33  ;;  %v2734_v1 = vmul.f32 %v4471_v14, %v2733_v30  ;;  %v2748_v20 = vsub.f32 1.0, %v2747_v53  ;;  %vm2738_vm15 = vmor %vm2736_vm9, %vm2737_vm13 }
 0x3a9   : > { %v4201_v31 = vmul.f32 -1.442695, %v2314_v16  ;;  %v2729_v63 = vsel %vm5967_vm6, %v2728_v29, %v2724_v8  ;;  %vm2752_vm14 = vweird.f32 %v4473_v49  ;;  %v2755_v51 = vand.u32 2147483647, %v5940_v54 }
 0x3aa   : > { %4476 = vpow2.f32 %v4200_v32  ;;  %3501 = vst.msk [vmem:[%s5906_s14 + $0x28] sm:$0xff] %vm883_vm1, %v2729_v63  ;;  %v2735_v59 = vadd.f32 %v4471_v14, %v2734_v1  ;;  %v2749_v26 = vmul.f32 %v4473_v49, %v2748_v20  ;;  %v4202_v24 = vmul.f32 -1.442695, %v2372_v58  ;;  %vm2753_vm0 = vmor %vm2751_vm10, %vm2752_vm14 }
 0x3ab   : > { %4478 = vpow2.f32 %v4201_v31  ;;  %v2758_v11 = vor.u32 1.1754944e-38, %v2757_v13  ;;  %v4203_v23 = vmul.f32 -1.442695, %v2259_v17  ;;  %v2317_v7 = vadd.f32 %v2316_v0, %v5846_v52  ;;  %v2318_v50 = vpop.f32.mrf.mxu1 }
 0x3ac   : > { %v4475_v9 = vpop.eup %4474  ;;  %v2375_v56 = vadd.f32 %v2374_v15, %v5853_v40  ;;  %v2739_v57 = vsel %vm2738_vm15, %v4471_v14, %v2735_v59  ;;  %v2750_v21 = vadd.f32 %v4473_v49, %v2749_v26  ;;  %v2261_v34 = vadd.f32 %v2260_v38, %v5844_v41  ;;  %v2376_v44 = vpop.f32.mrf.mxu3 }
 0x3ad   : > { %v2762_v18 = vmul.f32 %v4475_v9, %v5971_v55  ;;  %v2744_v5 = vsel %vm5983_vm11, %v2743_v3, %v2739_v57  ;;  %4480 = vpow2.f32 %v4202_v24  ;;  %v4204_v37 = vmul.f32 -1.442695, %v2317_v7  ;;  %v2263_v14 = vpop.f32.mrf.mxu0 }
 0x3ae   : > { %v4205_v19 = vmul.f32 -1.442695, %v2375_v56  ;;  %3502 = vst [vmem:[%s5906_s14 + $0x30] sm:$0xff] %v2744_v5  ;;  %v2754_v46 = vsel %vm2753_vm0, %v4473_v49, %v2750_v21  ;;  %vm2756_vm2 = vcmp.eq.f32.partialorder %v2755_v51, 8.507059e+37  ;;  %4482 = vpow2.f32 %v4203_v23 }
 0x3af   : > { %v2763_v61 = vsub.f32 1.0, %v2762_v18  ;;  %v2759_v6 = vsel %vm2756_vm2, %v2758_v11, %v2754_v46  ;;  %v2770_v36 = vand.u32 2147483647, %v5971_v55  ;;  %v2772_v10 = vand.u32 2147483648, %v5971_v55 }
 0x3b0   : > { %v4477_v60 = vpop.eup %4476  ;;  %4484 = vpow2.f32 %v4204_v37  ;;  %3503 = vst [vmem:[%s5906_s14 + $0x38] sm:$0xff] %v2759_v6  ;;  %vm2767_vm3 = vweird.f32 %v4475_v9  ;;  %vm2766_vm4 = vweird.f32 %v5971_v55  ;;  %v4206_v4 = vmul.f32 -1.442695, %v2261_v34 }
 0x3b1   : > { %v4479_v54 = vpop.eup %4478  ;;  %v2764_v12 = vmul.f32 %v4475_v9, %v2763_v61  ;;  %v6017_v43 = vadd.f32 1.0, %v4477_v60  ;;  %4486 = vpow2.f32 %v4205_v19  ;;  %v2319_v42 = vadd.f32 %v2318_v50, %v5846_v52  ;;  %vm2768_vm5 = vmor %vm2766_vm4, %vm2767_vm3 }
 0x3b2   : > { %v6020_v28 = vadd.f32 1.0, %v4479_v54  ;;  %v2377_v48 = vadd.f32 %v2376_v44, %v5853_v40  ;;  %v2773_v25 = vor.u32 1.1754944e-38, %v2772_v10  ;;  %vm2771_vm6 = vcmp.eq.f32.partialorder %v2770_v36, 8.507059e+37 }
 0x3b3   : > { %v2765_v47 = vadd.f32 %v4475_v9, %v2764_v12  ;;  %4488 = vrcp.f32 %v6017_v43  ;;  %v4481_v39 = vpop.eup %4480  ;;  %v2785_v35 = vand.u32 2147483647, %v6017_v43  ;;  %v4207_v45 = vmul.f32 -1.442695, %v2319_v42  ;;  %v2321_v19 = vpop.f32.mrf.mxu1 }
 0x3b4   : > { %4490 = vrcp.f32 %v6020_v28  ;;  %v4483_v29 = vpop.eup %4482  ;;  %v6026_v55 = vadd.f32 1.0, %v4481_v39  ;;  %v6034_v62 = vmul.f32 -1.442695, %v2377_v48  ;;  %v6037_v3 = vadd.f32 %v2263_v14, %v5844_v41  ;;  %v2379_v39 = vpop.f32.mrf.mxu3 }
 0x3b5   : > { %v2769_v2 = vsel %vm2768_vm5, %v4475_v9, %v2765_v47  ;;  %v6029_v16 = vadd.f32 1.0, %v4483_v29  ;;  %4492 = vpow2.f32 %v4206_v4  ;;  %v2787_v0 = vand.u32 2147483648, %v6017_v43 }
 0x3b6   : > { %v4485_v22 = vpop.eup %4484  ;;  %v2774_v27 = vsel %vm2771_vm6, %v2773_v25, %v2769_v2  ;;  %4494 = vrcp.f32 %v6026_v55  ;;  %v2800_v15 = vand.u32 2147483647, %v6020_v28  ;;  %v2802_v33 = vand.u32 2147483648, %v6020_v28 }
 0x3b7   : > { %v4487_v49 = vpop.eup %4486  ;;  %3504 = vst.msk [vmem:[%s5906_s14 + $0x40] sm:$0xff] %vm883_vm1, %v2774_v27  ;;  %4496 = vrcp.f32 %v6029_v16  ;;  %vm2781_vm7 = vweird.f32 %v6017_v43  ;;  %vm2796_vm8 = vweird.f32 %v6020_v28  ;;  %v6045_v53 = vadd.f32 1.0, %v4485_v22 }
 0x3b8   : > { %v6047_v58 = vadd.f32 1.0, %v4487_v49  ;;  %vm6050_vm9 = vcmp.eq.f32.partialorder %v2785_v35, 8.507059e+37  ;;  %v2815_v8 = vand.u32 2147483647, %v6026_v55  ;;  %v2817_v1 = vand.u32 2147483648, %v6026_v55 }
 0x3b9   : > { %v4489_v30 = vpop.eup %4488  ;;  %v2830_v31 = vand.u32 2147483647, %v6029_v16  ;;  %v2832_v63 = vand.u32 2147483648, %v6029_v16  ;;  %4498 = vrcp.f32 %v6045_v53  ;;  %v2788_v59 = vor.u32 1.1754944e-38, %v2787_v0 }
 0x3ba   : > { %v4491_v13 = vpop.eup %4490  ;;  %v2777_v32 = vmul.f32 %v4489_v30, %v6017_v43  ;;  %vm6060_vm10 = vcmp.eq.f32.partialorder %v2800_v15, 8.507059e+37  ;;  %v2803_v24 = vor.u32 1.1754944e-38, %v2802_v33  ;;  %vm2811_vm11 = vweird.f32 %v6026_v55 }
 0x3bb   : > { %v2792_v20 = vmul.f32 %v4491_v13, %v6020_v28  ;;  %v4493_v51 = vpop.eup %4492  ;;  %vm2826_vm12 = vweird.f32 %v6029_v16  ;;  %4500 = vrcp.f32 %v6047_v58  ;;  %vm2782_vm13 = vweird.f32 %v4489_v30 }
 0x3bc   : > { %v2778_v38 = vsub.f32 1.0, %v2777_v32  ;;  %v4495_v9 = vpop.eup %4494  ;;  %vm6068_vm14 = vcmp.eq.f32.partialorder %v2815_v8, 8.507059e+37  ;;  %v2818_v21 = vor.u32 1.1754944e-38, %v2817_v1  ;;  %vm2797_vm15 = vweird.f32 %v4491_v13  ;;  %vm2783_vm3 = vmor %vm2781_vm7, %vm2782_vm13  ;;  %v2323_v1 = vpop.f32.mrf.mxu1 }
 0x3bd   : > { %v2793_v11 = vsub.f32 1.0, %v2792_v20  ;;  %v4497_v23 = vpop.eup %4496  ;;  %v2807_v56 = vmul.f32 %v4495_v9, %v6026_v55  ;;  %vm6073_vm0 = vcmp.eq.f32.partialorder %v2830_v31, 8.507059e+37  ;;  %v2833_v37 = vor.u32 1.1754944e-38, %v2832_v63  ;;  %vm2798_vm4 = vmor %vm2796_vm8, %vm2797_vm15 }
 0x3be   : > { %v2779_v7 = vmul.f32 %v4489_v30, %v2778_v38  ;;  %v2822_v34 = vmul.f32 %v4497_v23, %v6029_v16  ;;  %vm2841_vm2 = vweird.f32 %v6045_v53  ;;  %v2845_v60 = vand.u32 2147483647, %v6045_v53 }
 0x3bf   : > { %v2794_v18 = vmul.f32 %v4491_v13, %v2793_v11  ;;  %v2808_v61 = vsub.f32 1.0, %v2807_v56  ;;  %v2847_v6 = vand.u32 2147483648, %v6045_v53  ;;  %v4499_v36 = vpop.eup %4498  ;;  %v6083_v44 = vadd.f32 1.0, %v4493_v51 }
 0x3c0   : > { %v2780_v46 = vadd.f32 %v4489_v30, %v2779_v7  ;;  %v2823_v50 = vsub.f32 1.0, %v2822_v34  ;;  %4502 = vpow2.f32 %v4207_v45  ;;  %vm2812_vm5 = vweird.f32 %v4495_v9  ;;  %v2265_v45 = vpop.f32.mrf.mxu0 }
 0x3c1   : > { %v2795_v10 = vadd.f32 %v4491_v13, %v2794_v18  ;;  %v2809_v12 = vmul.f32 %v4495_v9, %v2808_v61  ;;  %v2837_v4 = vmul.f32 %v4499_v36, %v6045_v53  ;;  %v4501_v47 = vpop.eup %4500  ;;  %vm2827_vm6 = vweird.f32 %v4497_v23  ;;  %vm2813_vm7 = vmor %vm2811_vm11, %vm2812_vm5 }
 0x3c2   : > { %v2784_v54 = vsel %vm2783_vm3, %v4489_v30, %v2780_v46  ;;  %v2824_v48 = vmul.f32 %v4497_v23, %v2823_v50  ;;  %v2852_v29 = vmul.f32 %v4501_v47, %v6047_v58  ;;  %vm2856_vm8 = vweird.f32 %v6047_v58 }
 0x3c3   : > { %v2789_v43 = vsel %vm6050_vm9, %v2788_v59, %v2784_v54  ;;  %v2799_v42 = vsel %vm2798_vm4, %v4491_v13, %v2795_v10  ;;  %v2810_v14 = vadd.f32 %v4495_v9, %v2809_v12  ;;  %v2838_v28 = vsub.f32 1.0, %v2837_v4  ;;  %vm2828_vm9 = vmor %vm2826_vm12, %vm2827_vm6 }
 0x3c4   : > { %3505 = vst [vmem:[%s5906_s14 + $0x48] sm:$0xff] %v2789_v43  ;;  %v2804_v25 = vsel %vm6060_vm10, %v2803_v24, %v2799_v42  ;;  %v2825_v2 = vadd.f32 %v4497_v23, %v2824_v48  ;;  %v2860_v22 = vand.u32 2147483647, %v6047_v58  ;;  %4504 = vrcp.f32 %v6083_v44  ;;  %v2326_v42 = vpop.f32.mrf.mxu1 }
 0x3c5   : > { %3506 = vst [vmem:[%s5906_s14 + $0x50] sm:$0xff] %v2804_v25  ;;  %v2814_v27 = vsel %vm2813_vm7, %v4495_v9, %v2810_v14  ;;  %v2839_v35 = vmul.f32 %v4499_v36, %v2838_v28  ;;  %vm2842_vm10 = vweird.f32 %v4499_v36  ;;  %v2853_v49 = vsub.f32 1.0, %v2852_v29 }
 0x3c6   : > { %v4503_v0 = vpop.eup %4502  ;;  %v2819_v55 = vsel %vm6068_vm14, %v2818_v21, %v2814_v27  ;;  %v2829_v15 = vsel %vm2828_vm9, %v4497_v23, %v2825_v2  ;;  %v2862_v33 = vand.u32 2147483648, %v6047_v58  ;;  %4506 = vpow2.f32 %v6034_v62  ;;  %vm2843_vm12 = vmor %vm2841_vm2, %vm2842_vm10  ;;  %v2381_v23 = vpop.f32.mrf.mxu3 }
 0x3c7   : > { %3507 = vst.msk [vmem:[%s5906_s14 + $0x58] sm:$0xff] %vm883_vm1, %v2819_v55  ;;  %v2834_v16 = vsel %vm6073_vm0, %v2833_v37, %v2829_v15  ;;  %v2840_v30 = vadd.f32 %v4499_v36, %v2839_v35  ;;  %v2854_v13 = vmul.f32 %v4501_v47, %v2853_v49  ;;  %vm2857_vm11 = vweird.f32 %v4501_v47 }
 0x3c8   : > { %3508 = vst [vmem:[%s5906_s14 + $0x60] sm:$0xff] %v2834_v16  ;;  %v2848_v32 = vor.u32 1.1754944e-38, %v2847_v6  ;;  %v6114_v17 = vadd.f32 1.0, %v4503_v0  ;;  %v4209_v8 = vmul.f32 -1.442695, %v6037_v3  ;;  %v2322_v62 = vadd.f32 %v2321_v19, %v5846_v52  ;;  %vm2858_vm14 = vmor %vm2856_vm8, %vm2857_vm11  ;;  %v2268_v46 = vpop.f32.mrf.mxu0 }
 0x3c9   : > { %v2844_v20 = vsel %vm2843_vm12, %v4499_v36, %v2840_v30  ;;  %vm2846_vm13 = vcmp.eq.f32.partialorder %v2845_v60, 8.507059e+37  ;;  %v2855_v31 = vadd.f32 %v4501_v47, %v2854_v13  ;;  %v2380_v63 = vadd.f32 %v2379_v39, %v5853_v40 }
 0x3ca   : > { %v4505_v51 = vpop.eup %4504  ;;  %v2849_v38 = vsel %vm2846_vm13, %v2848_v32, %v2844_v20  ;;  %v2863_v53 = vor.u32 1.1754944e-38, %v2862_v33  ;;  %4508 = vrcp.f32 %v6114_v17  ;;  %v2266_v59 = vadd.f32 %v2265_v45, %v5844_v41 }
 0x3cb   : > { %3509 = vst [vmem:[%s5906_s14 + $0x68] sm:$0xff] %v2849_v38  ;;  %v2859_v3 = vsel %vm2858_vm14, %v4501_v47, %v2855_v31  ;;  %vm2861_vm15 = vcmp.eq.f32.partialorder %v2860_v22, 8.507059e+37  ;;  %v2867_v26 = vmul.f32 %v4505_v51, %v6083_v44  ;;  %vm2871_vm0 = vweird.f32 %v6083_v44 }
 0x3cc   : > { %v4507_v24 = vpop.eup %4506  ;;  %v2864_v9 = vsel %vm2861_vm15, %v2863_v53, %v2859_v3  ;;  %v2875_v11 = vand.u32 2147483647, %v6083_v44  ;;  %4510 = vpow2.f32 %v4209_v8  ;;  %v4210_v58 = vmul.f32 -1.442695, %v2322_v62 }
 0x3cd   : > { %3510 = vst.msk [vmem:[%s5906_s14 + $0x70] sm:$0xff] %vm883_vm1, %v2864_v9  ;;  %v2868_v7 = vsub.f32 1.0, %v2867_v26  ;;  %v2877_v56 = vand.u32 2147483648, %v6083_v44  ;;  %v6130_v57 = vadd.f32 1.0, %v4507_v24  ;;  %v4211_v21 = vmul.f32 -1.442695, %v2380_v63 }
 0x3ce   : > { %v2890_v18 = vand.u32 2147483647, %v6114_v17  ;;  %4512 = vpow2.f32 %v4210_v58  ;;  %v4212_v34 = vmul.f32 -1.442695, %v2266_v59  ;;  %v2324_v5 = vadd.f32 %v2323_v1, %v5846_v52 }
 0x3cf   : > { %v2869_v37 = vmul.f32 %v4505_v51, %v2868_v7  ;;  %vm2872_vm2 = vweird.f32 %v4505_v51  ;;  %4514 = vrcp.f32 %v6130_v57  ;;  %v2382_v19 = vadd.f32 %v2381_v23, %v5853_v40  ;;  %v6194_v7 = vpop.f32.mrf.mxu3 }
 0x3d0   : > { %v4509_v61 = vpop.eup %4508  ;;  %vm6136_vm3 = vcmp.eq.f32.partialorder %v2875_v11, 8.507059e+37  ;;  %v2892_v6 = vand.u32 2147483648, %v6114_v17  ;;  %4516 = vpow2.f32 %v4211_v21  ;;  %v4213_v36 = vmul.f32 -1.442695, %v2324_v5  ;;  %vm2873_vm5 = vmor %vm2871_vm0, %vm2872_vm2 }
 0x3d1   : > { %v2870_v10 = vadd.f32 %v4505_v51, %v2869_v37  ;;  %v2878_v50 = vor.u32 1.1754944e-38, %v2877_v56  ;;  %v2882_v54 = vmul.f32 %v4509_v61, %v6114_v17  ;;  %vm2886_vm4 = vweird.f32 %v6114_v17 }
 0x3d2   : > { %v4511_v12 = vpop.eup %4510  ;;  %vm6145_vm6 = vcmp.eq.f32.partialorder %v2890_v18, 8.507059e+37  ;;  %v2905_v47 = vand.u32 2147483647, %v6130_v57  ;;  %4518 = vpow2.f32 %v4212_v34  ;;  %v2269_v43 = vadd.f32 %v2268_v46, %v5844_v41 }
 0x3d3   : > { %v2874_v48 = vsel %vm2873_vm5, %v4505_v51, %v2870_v10  ;;  %v2883_v39 = vsub.f32 1.0, %v2882_v54  ;;  %v6151_v25 = vadd.f32 1.0, %v4511_v12  ;;  %v4214_v14 = vmul.f32 -1.442695, %v2382_v19  ;;  %v2270_v12 = vpop.f32.mrf.mxu0 }
 0x3d4   : > { %v4513_v28 = vpop.eup %4512  ;;  %v2879_v44 = vsel %vm6136_vm3, %v2878_v50, %v2874_v48  ;;  %v2893_v29 = vor.u32 1.1754944e-38, %v2892_v6  ;;  %v2907_v2 = vand.u32 2147483648, %v6130_v57  ;;  %4520 = vpow2.f32 %v4213_v36 }
 0x3d5   : > { %v4515_v22 = vpop.eup %4514  ;;  %3511 = vst [vmem:[%s5906_s14 + $0x78] sm:$0xff] %v2879_v44  ;;  %v2884_v27 = vmul.f32 %v4509_v61, %v2883_v39  ;;  %vm2887_vm7 = vweird.f32 %v4509_v61  ;;  %4522 = vrcp.f32 %v6151_v25  ;;  %v2327_v35 = vadd.f32 %v2326_v42, %v5846_v52 }
 0x3d6   : > { %v4517_v49 = vpop.eup %4516  ;;  %v2897_v45 = vmul.f32 %v4515_v22, %v6130_v57  ;;  %vm2901_vm8 = vweird.f32 %v6130_v57  ;;  %v6161_v0 = vadd.f32 1.0, %v4513_v28  ;;  %v4215_v55 = vmul.f32 -1.442695, %v2269_v43  ;;  %vm2888_vm10 = vmor %vm2886_vm4, %vm2887_vm7  ;;  %v2328_v28 = vpop.f32.mrf.mxu1 }
 0x3d7   : > { %v2885_v15 = vadd.f32 %v4509_v61, %v2884_v27  ;;  %vm6163_vm9 = vcmp.eq.f32.partialorder %v2905_v47, 8.507059e+37  ;;  %v6167_v16 = vadd.f32 1.0, %v4517_v49  ;;  %4524 = vpow2.f32 %v4214_v14 }
 0x3d8   : > { %v4519_v30 = vpop.eup %4518  ;;  %v2898_v13 = vsub.f32 1.0, %v2897_v45  ;;  %v2908_v32 = vor.u32 1.1754944e-38, %v2907_v2  ;;  %v2920_v8 = vand.u32 2147483647, %v6151_v25  ;;  %4526 = vrcp.f32 %v6161_v0 }
 0x3d9   : > { %v2889_v62 = vsel %vm2888_vm10, %v4509_v61, %v2885_v15  ;;  %v2922_v1 = vand.u32 2147483648, %v6151_v25  ;;  %4528 = vrcp.f32 %v6167_v16  ;;  %v4216_v20 = vmul.f32 -1.442695, %v2327_v35 }
 0x3da   : > { %v4521_v31 = vpop.eup %4520  ;;  %v2894_v63 = vsel %vm6145_vm6, %v2893_v29, %v2889_v62  ;;  %v2899_v51 = vmul.f32 %v4515_v22, %v2898_v13  ;;  %vm2902_vm11 = vweird.f32 %v4515_v22  ;;  %4530 = vpow2.f32 %v4215_v55 }
 0x3db   : > { %v4523_v17 = vpop.eup %4522  ;;  %3512 = vst [vmem:[%s5906_s14 + $0x80] sm:$0xff] %v2894_v63  ;;  %vm2916_vm12 = vweird.f32 %v6151_v25  ;;  %v2935_v38 = vand.u32 2147483647, %v6161_v0  ;;  %v2937_v53 = vand.u32 2147483648, %v6161_v0  ;;  %v6181_v59 = vadd.f32 1.0, %v4519_v30  ;;  %vm2903_vm14 = vmor %vm2901_vm8, %vm2902_vm11  ;;  %v2273_v24 = vpop.f32.mrf.mxu0 }
 0x3dc   : > { %v2900_v3 = vadd.f32 %v4515_v22, %v2899_v51  ;;  %v2912_v26 = vmul.f32 %v4523_v17, %v6151_v25  ;;  %vm6184_vm13 = vcmp.eq.f32.partialorder %v2920_v8, 8.507059e+37  ;;  %v2950_v9 = vand.u32 2147483647, %v6167_v16 }
 0x3dd   : > { %v4525_v11 = vpop.eup %4524  ;;  %v2923_v58 = vor.u32 1.1754944e-38, %v2922_v1  ;;  %vm2931_vm15 = vweird.f32 %v6161_v0  ;;  %v2952_v23 = vand.u32 2147483648, %v6167_v16  ;;  %4532 = vrcp.f32 %v6181_v59 }
 0x3de   : > { %v4527_v56 = vpop.eup %4526  ;;  %v2904_v21 = vsel %vm2903_vm14, %v4515_v22, %v2900_v3  ;;  %v2913_v18 = vsub.f32 1.0, %v2912_v26  ;;  %vm2946_vm0 = vweird.f32 %v6167_v16  ;;  %v6197_v34 = vadd.f32 1.0, %v4521_v31 }
 0x3df   : > { %v4529_v5 = vpop.eup %4528  ;;  %v2909_v57 = vsel %vm6163_vm9, %v2908_v32, %v2904_v21  ;;  %v2927_v37 = vmul.f32 %v4527_v56, %v6161_v0  ;;  %vm6202_vm2 = vcmp.eq.f32.partialorder %v2935_v38, 8.507059e+37  ;;  %v2938_v46 = vor.u32 1.1754944e-38, %v2937_v53  ;;  %v2386_v0 = vpop.f32.mrf.mxu3 }
 0x3e0   : > { %v4531_v61 = vpop.eup %4530  ;;  %3513 = vst.msk [vmem:[%s5906_s14 + $0x88] sm:$0xff] %vm883_vm1, %v2909_v57  ;;  %v2914_v60 = vmul.f32 %v4523_v17, %v2913_v18  ;;  %vm2917_vm3 = vweird.f32 %v4523_v17  ;;  %v2942_v6 = vmul.f32 %v4529_v5, %v6167_v16  ;;  %vm6209_vm4 = vcmp.eq.f32.partialorder %v2950_v9, 8.507059e+37 }
 0x3e1   : > { %v2928_v10 = vsub.f32 1.0, %v2927_v37  ;;  %v2953_v50 = vor.u32 1.1754944e-38, %v2952_v23  ;;  %v2965_v54 = vand.u32 2147483647, %v6181_v59  ;;  %4534 = vrcp.f32 %v6197_v34  ;;  %vm2918_vm6 = vmor %vm2916_vm12, %vm2917_vm3 }
 0x3e2   : > { %v2915_v4 = vadd.f32 %v4523_v17, %v2914_v60  ;;  %v2943_v47 = vsub.f32 1.0, %v2942_v6  ;;  %vm2961_vm5 = vweird.f32 %v6181_v59  ;;  %v2967_v43 = vand.u32 2147483648, %v6181_v59 }
 0x3e3   : > { %v6217_v42 = vadd.f32 1.0, %v4525_v11  ;;  %v4533_v48 = vpop.eup %4532  ;;  %v2929_v39 = vmul.f32 %v4527_v56, %v2928_v10  ;;  %vm2932_vm7 = vweird.f32 %v4527_v56  ;;  %v6221_v14 = vadd.f32 1.0, %v4531_v61  ;;  %v2275_v45 = vpop.f32.mrf.mxu0 }
 0x3e4   : > { %4536 = vpow2.f32 %v4216_v20  ;;  %v2919_v44 = vsel %vm2918_vm6, %v4523_v17, %v2915_v4  ;;  %v2944_v29 = vmul.f32 %v4529_v5, %v2943_v47  ;;  %vm2947_vm8 = vweird.f32 %v4529_v5  ;;  %vm2933_vm9 = vmor %vm2931_vm15, %vm2932_vm7 }
 0x3e5   : > { %v2957_v2 = vmul.f32 %v4533_v48, %v6181_v59  ;;  %v2924_v22 = vsel %vm6184_vm13, %v2923_v58, %v2919_v44  ;;  %v2930_v27 = vadd.f32 %v4527_v56, %v2929_v39  ;;  %v2980_v35 = vand.u32 2147483647, %v6197_v34  ;;  %vm2948_vm11 = vmor %vm2946_vm0, %vm2947_vm8 }
 0x3e6   : > { %4538 = vrcp.f32 %v6217_v42  ;;  %3514 = vst [vmem:[%s5906_s14 + $0x90] sm:$0xff] %v2924_v22  ;;  %v2945_v25 = vadd.f32 %v4529_v5, %v2944_v29  ;;  %vm6231_vm10 = vcmp.eq.f32.partialorder %v2965_v54, 8.507059e+37  ;;  %v2982_v55 = vand.u32 2147483648, %v6197_v34 }
 0x3e7   : > { %v2958_v49 = vsub.f32 1.0, %v2957_v2  ;;  %v4535_v15 = vpop.eup %4534  ;;  %v2934_v33 = vsel %vm2933_vm9, %v4527_v56, %v2930_v27  ;;  %vm2962_vm12 = vweird.f32 %v4533_v48  ;;  %v2968_v30 = vor.u32 1.1754944e-38, %v2967_v43 }
 0x3e8   : > { %4540 = vrcp.f32 %v6221_v14  ;;  %v2939_v13 = vsel %vm6202_vm2, %v2938_v46, %v2934_v33  ;;  %v2949_v32 = vsel %vm2948_vm11, %v4529_v5, %v2945_v25  ;;  %v2972_v62 = vmul.f32 %v4535_v15, %v6197_v34  ;;  %vm2963_vm0 = vmor %vm2961_vm5, %vm2962_vm12 }
 0x3e9   : > { %v2959_v8 = vmul.f32 %v4533_v48, %v2958_v49  ;;  %3515 = vst [vmem:[%s5906_s14 + $0x98] sm:$0xff] %v2939_v13  ;;  %v2954_v20 = vsel %vm6209_vm4, %v2953_v50, %v2949_v32  ;;  %vm2976_vm13 = vweird.f32 %v6197_v34  ;;  %vm6246_vm14 = vcmp.eq.f32.partialorder %v2980_v35, 8.507059e+37  ;;  %v2389_v34 = vpop.f32.mrf.mxu3 }
 0x3ea   : > { %v4537_v1 = vpop.eup %4536  ;;  %v2995_v31 = vand.u32 2147483647, %v6217_v42  ;;  %3516 = vst.msk [vmem:[%s5906_s14 + $0xa0] sm:$0xff] %vm883_vm1, %v2954_v20  ;;  %v2973_v51 = vsub.f32 1.0, %v2972_v62  ;;  %v2983_v17 = vor.u32 1.1754944e-38, %v2982_v55  ;;  %vm2991_vm15 = vweird.f32 %v6217_v42 }
 0x3eb   : > { %v2960_v63 = vadd.f32 %v4533_v48, %v2959_v8  ;;  %vm2977_vm2 = vweird.f32 %v4535_v15  ;;  %v2997_v53 = vand.u32 2147483648, %v6217_v42  ;;  %v6258_v3 = vadd.f32 1.0, %v4537_v1 }
 0x3ec   : > { %v4539_v38 = vpop.eup %4538  ;;  %v2385_v26 = vadd.f32 %v6194_v7, %v5853_v40  ;;  %v2974_v11 = vmul.f32 %v4535_v15, %v2973_v51  ;;  %vm3006_vm3 = vweird.f32 %v6221_v14  ;;  %v2271_v23 = vadd.f32 %v2270_v12, %v5844_v41  ;;  %v2331_v7 = vpop.f32.mrf.mxu1  ;;  %vm2978_vm5 = vmor %vm2976_vm13, %vm2977_vm2 }
 0x3ed   : > { %v2964_v9 = vsel %vm2963_vm0, %v4533_v48, %v2960_v63  ;;  %v2987_v58 = vmul.f32 %v4539_v38, %v6217_v42  ;;  %vm6267_vm4 = vcmp.eq.f32.partialorder %v2995_v31, 8.507059e+37  ;;  %v3010_v18 = vand.u32 2147483647, %v6221_v14 }
 0x3ee   : > { %v4541_v59 = vpop.eup %4540  ;;  %v2969_v56 = vsel %vm6231_vm10, %v2968_v30, %v2964_v9  ;;  %4542 = vrcp.f32 %v6258_v3  ;;  %v2975_v5 = vadd.f32 %v4535_v15, %v2974_v11  ;;  %v2329_v19 = vadd.f32 %v2328_v28, %v5846_v52 }
 0x3ef   : > { %3517 = vst [vmem:[%s5906_s14 + $0xa8] sm:$0xff] %v2969_v56  ;;  %v2988_v57 = vsub.f32 1.0, %v2987_v58  ;;  %v3002_v37 = vmul.f32 %v4541_v59, %v6221_v14  ;;  %vm2992_vm6 = vweird.f32 %v4539_v38  ;;  %v2998_v46 = vor.u32 1.1754944e-38, %v2997_v53 }
 0x3f0   : > { %v3012_v61 = vand.u32 2147483648, %v6221_v14  ;;  %v4217_v60 = vmul.f32 -1.442695, %v2385_v26  ;;  %v2979_v6 = vsel %vm2978_vm5, %v4535_v15, %v2975_v5  ;;  %v4218_v50 = vmul.f32 -1.442695, %v2271_v23  ;;  %vm2993_vm9 = vmor %vm2991_vm15, %vm2992_vm6 }
 0x3f1   : > { %v2989_v36 = vmul.f32 %v4539_v38, %v2988_v57  ;;  %v3003_v10 = vsub.f32 1.0, %v3002_v37  ;;  %v2984_v54 = vsel %vm6246_vm14, %v2983_v17, %v2979_v6  ;;  %vm3007_vm7 = vweird.f32 %v4541_v59  ;;  %v2391_v53 = vpop.f32.mrf.mxu3 }
 0x3f2   : > { %vm6282_vm8 = vcmp.eq.f32.partialorder %v3010_v18, 8.507059e+37  ;;  %4544 = vpow2.f32 %v4217_v60  ;;  %3518 = vst [vmem:[%s5906_s14 + $0xb0] sm:$0xff] %v2984_v54  ;;  %v4219_v43 = vmul.f32 -1.442695, %v2329_v19  ;;  %v3013_v39 = vor.u32 1.1754944e-38, %v3012_v61  ;;  %vm3008_vm10 = vmor %vm3006_vm3, %vm3007_vm7  ;;  %v6332_v61 = vpop.f32.mrf.mxu0 }
 0x3f3   : > { %v2990_v4 = vadd.f32 %v4539_v38, %v2989_v36  ;;  %v3004_v47 = vmul.f32 %v4541_v59, %v3003_v10  ;;  %4546 = vpow2.f32 %v4218_v50  ;;  %v2387_v28 = vadd.f32 %v2386_v0, %v5853_v40 }
 0x3f4   : > { %v4543_v48 = vpop.eup %4542  ;;  %v2274_v44 = vadd.f32 %v2273_v24, %v5844_v41  ;;  %v2332_v29 = vadd.f32 %v2331_v7, %v5846_v52  ;;  %v3025_v35 = vand.u32 2147483647, %v6258_v3  ;;  %4548 = vpow2.f32 %v4219_v43  ;;  %v2333_v32 = vpop.f32.mrf.mxu1 }
 0x3f5   : > { %v2994_v2 = vsel %vm2993_vm9, %v4539_v38, %v2990_v4  ;;  %v3005_v22 = vadd.f32 %v4541_v59, %v3004_v47  ;;  %v3017_v27 = vmul.f32 %v4543_v48, %v6258_v3  ;;  %v4220_v42 = vmul.f32 -1.442695, %v2387_v28 }
 0x3f6   : > { %v2999_v25 = vsel %vm6267_vm4, %v2998_v46, %v2994_v2  ;;  %v4221_v49 = vmul.f32 -1.442695, %v2274_v44  ;;  %v3027_v33 = vand.u32 2147483648, %v6258_v3  ;;  %v4222_v30 = vmul.f32 -1.442695, %v2332_v29 }
 0x3f7   : > { %3519 = vst.msk [vmem:[%s5906_s14 + $0xb8] sm:$0xff] %vm883_vm1, %v2999_v25  ;;  %v3009_v55 = vsel %vm3008_vm10, %v4541_v59, %v3005_v22  ;;  %v3018_v15 = vsub.f32 1.0, %v3017_v27  ;;  %vm3022_vm11 = vweird.f32 %v4543_v48  ;;  %4550 = vpow2.f32 %v4220_v42 }
 0x3f8   : > { %v4545_v0 = vpop.eup %4544  ;;  %v3014_v13 = vsel %vm6282_vm8, %v3013_v39, %v3009_v55  ;;  %v2390_v14 = vadd.f32 %v2389_v34, %v5853_v40  ;;  %4552 = vpow2.f32 %v4221_v49  ;;  %v2276_v20 = vadd.f32 %v2275_v45, %v5844_v41 }
 0x3f9   : > { %v4547_v8 = vpop.eup %4546  ;;  %3520 = vst [vmem:[%s5906_s14 + $0xc0] sm:$0xff] %v3014_v13  ;;  %v3019_v62 = vmul.f32 %v4543_v48, %v3018_v15  ;;  %v6307_v1 = vadd.f32 1.0, %v4545_v0  ;;  %4554 = vpow2.f32 %v4222_v30  ;;  %vm3021_vm12 = vweird.f32 %v6258_v3 }
 0x3fa   : > { %v6310_v16 = vadd.f32 1.0, %v4547_v8  ;;  %v2334_v63 = vadd.f32 %v2333_v32, %v5846_v52  ;;  %v4549_v51 = vpop.eup %4548  ;;  %vm3023_vm13 = vmor %vm3021_vm12, %vm3022_vm11  ;;  %vm3026_vm14 = vcmp.eq.f32.partialorder %v3025_v35, 8.507059e+37  ;;  %v3028_v17 = vor.u32 1.1754944e-38, %v3027_v33 }
 0x3fb   : > { %v3020_v31 = vadd.f32 %v4543_v48, %v3019_v62  ;;  %4556 = vrcp.f32 %v6307_v1  ;;  %v4223_v38 = vmul.f32 -1.442695, %v2390_v14  ;;  %v3042_v24 = vand.u32 2147483648, %v6307_v1 }
 0x3fc   : > { %4558 = vrcp.f32 %v6310_v16  ;;  %v6318_v9 = vadd.f32 1.0, %v4549_v51  ;;  %v4224_v3 = vmul.f32 -1.442695, %v2276_v20  ;;  %v3040_v23 = vand.u32 2147483647, %v6307_v1  ;;  %v6360_v25 = vpop.f32.mrf.mxu1 }
 0x3fd   : > { %v3024_v26 = vsel %vm3023_vm13, %v4543_v48, %v3020_v31  ;;  %v4551_v11 = vpop.eup %4550  ;;  %v3055_v56 = vand.u32 2147483647, %v6310_v16  ;;  %v4225_v21 = vmul.f32 -1.442695, %v2334_v63  ;;  %v2392_v18 = vadd.f32 %v2391_v53, %v5853_v40  ;;  %v6383_v53 = vpop.f32.mrf.mxu0 }
 0x3fe   : > { %v3029_v58 = vsel %vm3026_vm14, %v3028_v17, %v3024_v26  ;;  %v4553_v59 = vpop.eup %4552  ;;  %4560 = vrcp.f32 %v6318_v9  ;;  %v3057_v5 = vand.u32 2147483648, %v6310_v16  ;;  %v6326_v57 = vadd.f32 1.0, %v4551_v11 }
 0x3ff   : > { %3521 = vst [vmem:[%s5906_s14 + $0xc8] sm:$0xff] %v3029_v58  ;;  %v4555_v7 = vpop.eup %4554  ;;  %v6328_v37 = vadd.f32 1.0, %v4553_v59  ;;  %4562 = vpow2.f32 %v4223_v38  ;;  %vm3036_vm15 = vweird.f32 %v6307_v1  ;;  %v3043_v46 = vor.u32 1.1754944e-38, %v3042_v24 }
 0x400   : > { %vm3051_vm0 = vweird.f32 %v6310_v16  ;;  %4564 = vpow2.f32 %v4224_v3  ;;  %vm6335_vm2 = vcmp.eq.f32.partialorder %v3040_v23, 8.507059e+37  ;;  %v3070_v10 = vand.u32 2147483647, %v6318_v9 }
 0x401   : > { %v4557_v19 = vpop.eup %4556  ;;  %v3072_v50 = vand.u32 2147483648, %v6318_v9  ;;  %4566 = vrcp.f32 %v6326_v57  ;;  %vm6343_vm3 = vcmp.eq.f32.partialorder %v3055_v56, 8.507059e+37  ;;  %v6347_v34 = vadd.f32 1.0, %v4555_v7 }
 0x402   : > { %v4559_v60 = vpop.eup %4558  ;;  %v3032_v6 = vmul.f32 %v4557_v19, %v6307_v1  ;;  %4568 = vpow2.f32 %v4225_v21  ;;  %v3058_v47 = vor.u32 1.1754944e-38, %v3057_v5  ;;  %vm3066_vm4 = vweird.f32 %v6318_v9 }
 0x403   : > { %v3047_v54 = vmul.f32 %v4559_v60, %v6310_v16  ;;  %4570 = vrcp.f32 %v6328_v37  ;;  %vm3037_vm5 = vweird.f32 %v4557_v19  ;;  %v3085_v39 = vand.u32 2147483647, %v6326_v57 }
 0x404   : > { %v3033_v4 = vsub.f32 1.0, %v3032_v6  ;;  %v4561_v43 = vpop.eup %4560  ;;  %v6352_v28 = vmul.f32 -1.442695, %v2392_v18  ;;  %vm6355_vm6 = vcmp.eq.f32.partialorder %v3070_v10, 8.507059e+37  ;;  %v3073_v27 = vor.u32 1.1754944e-38, %v3072_v50  ;;  %vm3038_vm9 = vmor %vm3036_vm15, %vm3037_vm5  ;;  %v6410_v6 = vpop.f32.mrf.mxu1 }
 0x405   : > { %v3048_v48 = vsub.f32 1.0, %v3047_v54  ;;  %v4563_v44 = vpop.eup %4562  ;;  %v3062_v2 = vmul.f32 %v4561_v43, %v6318_v9  ;;  %v3087_v35 = vand.u32 2147483648, %v6326_v57  ;;  %vm3052_vm7 = vweird.f32 %v4559_v60  ;;  %v2394_v54 = vpop.f32.mrf.mxu3 }
 0x406   : > { %v3034_v29 = vmul.f32 %v4557_v19, %v3033_v4  ;;  %v4565_v42 = vpop.eup %4564  ;;  %vm3081_vm8 = vweird.f32 %v6326_v57  ;;  %4572 = vrcp.f32 %v6347_v34  ;;  %v3100_v33 = vand.u32 2147483647, %v6328_v37  ;;  %vm3053_vm13 = vmor %vm3051_vm0, %vm3052_vm7  ;;  %v2283_v22 = vpop.f32.mrf.mxu0 }
 0x407   : > { %v3049_v49 = vmul.f32 %v4559_v60, %v3048_v48  ;;  %v4567_v45 = vpop.eup %4566  ;;  %v3063_v15 = vsub.f32 1.0, %v3062_v2  ;;  %v3102_v30 = vand.u32 2147483648, %v6328_v37  ;;  %vm3067_vm10 = vweird.f32 %v4561_v43 }
 0x408   : > { %v3035_v55 = vadd.f32 %v4557_v19, %v3034_v29  ;;  %v4569_v0 = vpop.eup %4568  ;;  %v3077_v14 = vmul.f32 %v4567_v45, %v6326_v57  ;;  %vm6370_vm11 = vcmp.eq.f32.partialorder %v3085_v39, 8.507059e+37  ;;  %vm3096_vm12 = vweird.f32 %v6328_v37  ;;  %vm3068_vm15 = vmor %vm3066_vm4, %vm3067_vm10 }
 0x409   : > { %v3050_v13 = vadd.f32 %v4559_v60, %v3049_v49  ;;  %v4571_v8 = vpop.eup %4570  ;;  %v3064_v1 = vmul.f32 %v4561_v43, %v3063_v15  ;;  %v3088_v20 = vor.u32 1.1754944e-38, %v3087_v35  ;;  %v6378_v31 = vadd.f32 1.0, %v4563_v44 }
 0x40a   : > { %v3039_v62 = vsel %vm3038_vm9, %v4557_v19, %v3035_v55  ;;  %v3078_v17 = vsub.f32 1.0, %v3077_v14  ;;  %v3092_v38 = vmul.f32 %v4571_v8, %v6328_v37  ;;  %vm6389_vm14 = vcmp.eq.f32.partialorder %v3100_v33, 8.507059e+37 }
 0x40b   : > { %v3044_v63 = vsel %vm6335_vm2, %v3043_v46, %v3039_v62  ;;  %v3054_v51 = vsel %vm3053_vm13, %v4559_v60, %v3050_v13  ;;  %v3065_v26 = vadd.f32 %v4561_v43, %v3064_v1  ;;  %v3103_v3 = vor.u32 1.1754944e-38, %v3102_v30 }
 0x40c   : > { %3522 = vst.msk [vmem:[%s5906_s14 + $0xd0] sm:$0xff] %vm883_vm1, %v3044_v63  ;;  %v3059_v16 = vsel %vm6343_vm3, %v3058_v47, %v3054_v51  ;;  %v4573_v11 = vpop.eup %4572  ;;  %v3079_v58 = vmul.f32 %v4567_v45, %v3078_v17  ;;  %vm3082_vm0 = vweird.f32 %v4567_v45  ;;  %v3093_v23 = vsub.f32 1.0, %v3092_v38  ;;  %v2341_v63 = vpop.f32.mrf.mxu1 }
 0x40d   : > { %3523 = vst [vmem:[%s5906_s14 + $0xd8] sm:$0xff] %v3059_v16  ;;  %4574 = vrcp.f32 %v6378_v31  ;;  %v3069_v59 = vsel %vm3068_vm15, %v4561_v43, %v3065_v26  ;;  %v3107_v56 = vmul.f32 %v4573_v11, %v6347_v34  ;;  %v3115_v21 = vand.u32 2147483647, %v6347_v34  ;;  %vm3083_vm3 = vmor %vm3081_vm8, %vm3082_vm0  ;;  %v2396_v26 = vpop.f32.mrf.mxu3 }
 0x40e   : > { %v3117_v18 = vand.u32 2147483648, %v6347_v34  ;;  %v3074_v7 = vsel %vm6355_vm6, %v3073_v27, %v3069_v59  ;;  %v3080_v5 = vadd.f32 %v4567_v45, %v3079_v58  ;;  %v3094_v19 = vmul.f32 %v4571_v8, %v3093_v23 }
 0x40f   : > { %vm3097_vm2 = vweird.f32 %v4571_v8  ;;  %3524 = vst [vmem:[%s5906_s14 + $0xe0] sm:$0xff] %v3074_v7  ;;  %v3108_v9 = vsub.f32 1.0, %v3107_v56  ;;  %vm3112_vm4 = vweird.f32 %v4573_v11  ;;  %v6406_v46 = vadd.f32 1.0, %v4565_v42  ;;  %v2285_v7 = vpop.f32.mrf.mxu0 }
 0x410   : > { %v6408_v60 = vadd.f32 1.0, %v4569_v0  ;;  %v3084_v36 = vsel %vm3083_vm3, %v4567_v45, %v3080_v5  ;;  %v3095_v10 = vadd.f32 %v4571_v8, %v3094_v19  ;;  %v3130_v50 = vand.u32 2147483647, %v6378_v31  ;;  %vm3098_vm5 = vmor %vm3096_vm12, %vm3097_vm2 }
 0x411   : > { %4576 = vpow2.f32 %v6352_v28  ;;  %v3089_v57 = vsel %vm6370_vm11, %v3088_v20, %v3084_v36  ;;  %v3109_v12 = vmul.f32 %v4573_v11, %v3108_v9  ;;  %v3132_v4 = vand.u32 2147483648, %v6378_v31 }
 0x412   : > { %4578 = vrcp.f32 %v6406_v46  ;;  %3525 = vst.msk [vmem:[%s5906_s14 + $0xe8] sm:$0xff] %vm883_vm1, %v3089_v57  ;;  %v3099_v43 = vsel %vm3098_vm5, %v4571_v8, %v3095_v10  ;;  %vm3111_vm6 = vweird.f32 %v6347_v34  ;;  %vm6423_vm7 = vcmp.eq.f32.partialorder %v3115_v21, 8.507059e+37 }
 0x413   : > { %v4575_v47 = vpop.eup %4574  ;;  %4580 = vrcp.f32 %v6408_v60  ;;  %v3104_v37 = vsel %vm6389_vm14, %v3103_v3, %v3099_v43  ;;  %v3110_v39 = vadd.f32 %v4573_v11, %v3109_v12  ;;  %v3118_v28 = vor.u32 1.1754944e-38, %v3117_v18  ;;  %vm3113_vm8 = vmor %vm3111_vm6, %vm3112_vm4 }
 0x414   : > { %v3122_v44 = vmul.f32 %v4575_v47, %v6378_v31  ;;  %3526 = vst [vmem:[%s5906_s14 + $0xf0] sm:$0xff] %v3104_v37  ;;  %vm3126_vm9 = vweird.f32 %v6378_v31  ;;  %vm6434_vm10 = vcmp.eq.f32.partialorder %v3130_v50, 8.507059e+37  ;;  %v3145_v29 = vand.u32 2147483647, %v6406_v46 }
 0x415   : > { %v3147_v2 = vand.u32 2147483648, %v6406_v46  ;;  %v3114_v27 = vsel %vm3113_vm8, %v4573_v11, %v3110_v39  ;;  %v3133_v42 = vor.u32 1.1754944e-38, %v3132_v4  ;;  %v2279_v49 = vadd.f32 %v6332_v61, %v5844_v41 }
 0x416   : > { %v3123_v35 = vsub.f32 1.0, %v3122_v44  ;;  %v3119_v55 = vsel %vm6423_vm7, %v3118_v28, %v3114_v27  ;;  %vm3141_vm11 = vweird.f32 %v6406_v46  ;;  %v2337_v15 = vadd.f32 %v6360_v25, %v5846_v52  ;;  %v6487_v28 = vpop.f32.mrf.mxu1 }
 0x417   : > { %v4577_v45 = vpop.eup %4576  ;;  %v2395_v33 = vadd.f32 %v2394_v54, %v5853_v40  ;;  %3527 = vst [vmem:[%s5906_s14 + $0xf8] sm:$0xff] %v3119_v55  ;;  %vm3127_vm12 = vweird.f32 %v4575_v47  ;;  %v4227_v14 = vmul.f32 -1.442695, %v2279_v49  ;;  %vm6452_vm13 = vcmp.eq.f32.partialorder %v3145_v29, 8.507059e+37 }
 0x418   : > { %v4579_v30 = vpop.eup %4578  ;;  %v3124_v0 = vmul.f32 %v4575_v47, %v3123_v35  ;;  %v6449_v13 = vadd.f32 1.0, %v4577_v45  ;;  %v3148_v62 = vor.u32 1.1754944e-38, %v3147_v2  ;;  %vm3156_vm14 = vweird.f32 %v6408_v60  ;;  %vm3128_vm15 = vmor %vm3126_vm9, %vm3127_vm12  ;;  %v2399_v2 = vpop.f32.mrf.mxu3 }
 0x419   : > { %v4581_v32 = vpop.eup %4580  ;;  %v3137_v61 = vmul.f32 %v4579_v30, %v6406_v46  ;;  %v4228_v20 = vmul.f32 -1.442695, %v2337_v15  ;;  %v3160_v17 = vand.u32 2147483647, %v6408_v60  ;;  %v3162_v38 = vand.u32 2147483648, %v6408_v60 }
 0x41a   : > { %v3125_v25 = vadd.f32 %v4575_v47, %v3124_v0  ;;  %v3152_v1 = vmul.f32 %v4581_v32, %v6408_v60  ;;  %4582 = vrcp.f32 %v6449_v13  ;;  %v4229_v16 = vmul.f32 -1.442695, %v2395_v33 }
 0x41b   : > { %v3138_v51 = vsub.f32 1.0, %v3137_v61  ;;  %4584 = vpow2.f32 %v4227_v14  ;;  %v2281_v11 = vadd.f32 %v6383_v53, %v5844_v41  ;;  %vm3142_vm0 = vweird.f32 %v4579_v30 }
 0x41c   : > { %v3129_v24 = vsel %vm3128_vm15, %v4575_v47, %v3125_v25  ;;  %v3153_v3 = vsub.f32 1.0, %v3152_v1  ;;  %vm3157_vm2 = vweird.f32 %v4581_v32  ;;  %4586 = vpow2.f32 %v4228_v20  ;;  %vm3143_vm3 = vmor %vm3141_vm11, %vm3142_vm0 }
 0x41d   : > { %v3134_v58 = vsel %vm6434_vm10, %v3133_v42, %v3129_v24  ;;  %v3139_v23 = vmul.f32 %v4579_v30, %v3138_v51  ;;  %v4230_v59 = vmul.f32 -1.442695, %v2281_v11  ;;  %v2339_v56 = vadd.f32 %v6410_v6, %v5846_v52  ;;  %vm3158_vm4 = vmor %vm3156_vm14, %vm3157_vm2 }
 0x41e   : > { %3528 = vst.msk [vmem:[%s5906_s14 + $0x100] sm:$0xff] %vm883_vm1, %v3134_v58  ;;  %v3154_v31 = vmul.f32 %v4581_v32, %v3153_v3  ;;  %4588 = vpow2.f32 %v4229_v16  ;;  %v2397_v18 = vadd.f32 %v2396_v26, %v5853_v40  ;;  %v2284_v53 = vadd.f32 %v2283_v22, %v5844_v41 }
 0x41f   : > { %v3140_v21 = vadd.f32 %v4579_v30, %v3139_v23  ;;  %4590 = vpow2.f32 %v4230_v59  ;;  %v4231_v9 = vmul.f32 -1.442695, %v2339_v56  ;;  %v2342_v36 = vadd.f32 %v2341_v63, %v5846_v52 }
 0x420   : > { %v4583_v5 = vpop.eup %4582  ;;  %v3155_v19 = vadd.f32 %v4581_v32, %v3154_v31  ;;  %v3163_v6 = vor.u32 1.1754944e-38, %v3162_v38  ;;  %v4232_v54 = vmul.f32 -1.442695, %v2397_v18  ;;  %vm3161_vm5 = vcmp.eq.f32.partialorder %v3160_v17, 8.507059e+37  ;;  %v6528_v31 = vpop.f32.mrf.mxu1 }
 0x421   : > { %v3144_v10 = vsel %vm3143_vm3, %v4579_v30, %v3140_v21  ;;  %v3167_v50 = vmul.f32 %v4583_v5, %v6449_v13  ;;  %v4585_v57 = vpop.eup %4584  ;;  %v4233_v4 = vmul.f32 -1.442695, %v2284_v53  ;;  %4592 = vpow2.f32 %v4231_v9 }
 0x422   : > { %v3149_v46 = vsel %vm6452_vm13, %v3148_v62, %v3144_v10  ;;  %v3159_v12 = vsel %vm3158_vm4, %v4581_v32, %v3155_v19  ;;  %v6483_v48 = vadd.f32 1.0, %v4585_v57  ;;  %v4587_v60 = vpop.eup %4586  ;;  %v3177_v37 = vand.u32 2147483648, %v6449_v13 }
 0x423   : > { %3529 = vst [vmem:[%s5906_s14 + $0x108] sm:$0xff] %v3149_v46  ;;  %v3164_v47 = vsel %vm3161_vm5, %v3163_v6, %v3159_v12  ;;  %v3168_v43 = vsub.f32 1.0, %v3167_v50  ;;  %4594 = vpow2.f32 %v4232_v54  ;;  %v4234_v39 = vmul.f32 -1.442695, %v2342_v36 }
 0x424   : > { %3530 = vst [vmem:[%s5906_s14 + $0x110] sm:$0xff] %v3164_v47  ;;  %v4589_v44 = vpop.eup %4588  ;;  %vm3172_vm6 = vweird.f32 %v4583_v5  ;;  %v3175_v29 = vand.u32 2147483647, %v6449_v13  ;;  %4596 = vrcp.f32 %v6483_v48  ;;  %v6491_v27 = vadd.f32 1.0, %v4587_v60 }
 0x425   : > { %v3169_v34 = vmul.f32 %v4583_v5, %v3168_v43  ;;  %v4591_v22 = vpop.eup %4590  ;;  %v6493_v35 = vadd.f32 1.0, %v4589_v44  ;;  %4598 = vpow2.f32 %v4233_v4  ;;  %vm3171_vm7 = vweird.f32 %v6449_v13  ;;  %v6503_v13 = vpop.f32.mrf.mxu0 }
 0x426   : > { %v6496_v49 = vadd.f32 1.0, %v4591_v22  ;;  %4600 = vpow2.f32 %v4234_v39  ;;  %vm3173_vm8 = vmor %vm3171_vm7, %vm3172_vm6  ;;  %v3178_v45 = vor.u32 1.1754944e-38, %v3177_v37  ;;  %v3190_v55 = vand.u32 2147483647, %v6483_v48 }
 0x427   : > { %v3170_v42 = vadd.f32 %v4583_v5, %v3169_v34  ;;  %4602 = vrcp.f32 %v6491_v27  ;;  %v2400_v15 = vadd.f32 %v2399_v2, %v5853_v40  ;;  %v4593_v33 = vpop.eup %4592  ;;  %vm3176_vm9 = vcmp.eq.f32.partialorder %v3175_v29, 8.507059e+37 }
 0x428   : > { %v3192_v0 = vand.u32 2147483648, %v6483_v48  ;;  %4604 = vrcp.f32 %v6493_v35  ;;  %v6506_v61 = vadd.f32 %v2285_v7, %v5844_v41  ;;  %vm3186_vm10 = vweird.f32 %v6483_v48  ;;  %v6537_v7 = vpop.f32.mrf.mxu3 }
 0x429   : > { %v3174_v30 = vsel %vm3173_vm8, %v4583_v5, %v3170_v42  ;;  %v4595_v14 = vpop.eup %4594  ;;  %v3205_v62 = vand.u32 2147483647, %v6491_v27  ;;  %v3207_v25 = vand.u32 2147483648, %v6491_v27  ;;  %4606 = vrcp.f32 %v6496_v49 }
 0x42a   : > { %v3179_v32 = vsel %vm3176_vm9, %v3178_v45, %v3174_v30  ;;  %v4597_v8 = vpop.eup %4596  ;;  %vm6515_vm11 = vcmp.eq.f32.partialorder %v3190_v55, 8.507059e+37  ;;  %v3220_v51 = vand.u32 2147483647, %v6493_v35  ;;  %v4235_v17 = vmul.f32 -1.442695, %v2400_v15 }
 0x42b   : > { %3531 = vst.msk [vmem:[%s5906_s14 + $0x118] sm:$0xff] %vm883_vm1, %v3179_v32  ;;  %v4599_v1 = vpop.eup %4598  ;;  %v3182_v20 = vmul.f32 %v4597_v8, %v6483_v48  ;;  %v3193_v16 = vor.u32 1.1754944e-38, %v3192_v0  ;;  %v3222_v26 = vand.u32 2147483648, %v6493_v35  ;;  %v6521_v24 = vadd.f32 1.0, %v4593_v33 }
 0x42c   : > { %v4601_v38 = vpop.eup %4600  ;;  %v6523_v3 = vadd.f32 1.0, %v4595_v14  ;;  %vm3201_vm12 = vweird.f32 %v6491_v27  ;;  %vm3216_vm13 = vweird.f32 %v6493_v35  ;;  %v3235_v23 = vand.u32 2147483647, %v6496_v49 }
 0x42d   : > { %v4603_v11 = vpop.eup %4602  ;;  %v3183_v58 = vsub.f32 1.0, %v3182_v20  ;;  %vm6531_vm14 = vcmp.eq.f32.partialorder %v3205_v62, 8.507059e+37  ;;  %v3208_v18 = vor.u32 1.1754944e-38, %v3207_v25  ;;  %v3237_v53 = vand.u32 2147483648, %v6496_v49  ;;  %v6557_v60 = vpop.f32.mrf.mxu0 }
 0x42e   : > { %v4605_v59 = vpop.eup %4604  ;;  %v3197_v56 = vmul.f32 %v4603_v11, %v6491_v27  ;;  %4608 = vrcp.f32 %v6521_v24  ;;  %vm3187_vm15 = vweird.f32 %v4597_v8  ;;  %vm6540_vm0 = vcmp.eq.f32.partialorder %v3220_v51, 8.507059e+37 }
 0x42f   : > { %v3184_v5 = vmul.f32 %v4597_v8, %v3183_v58  ;;  %v3212_v19 = vmul.f32 %v4605_v59, %v6493_v35  ;;  %vm3231_vm2 = vweird.f32 %v6496_v49  ;;  %v4607_v36 = vpop.eup %4606  ;;  %v3223_v6 = vor.u32 1.1754944e-38, %v3222_v26  ;;  %vm3188_vm4 = vmor %vm3186_vm10, %vm3187_vm15 }
 0x430   : > { %v3198_v10 = vsub.f32 1.0, %v3197_v56  ;;  %4610 = vrcp.f32 %v6523_v3  ;;  %v6546_v50 = vadd.f32 1.0, %v4599_v1  ;;  %v3227_v46 = vmul.f32 %v4607_v36, %v6496_v49  ;;  %v2404_v63 = vpop.f32.mrf.mxu3 }
 0x431   : > { %v3185_v54 = vadd.f32 %v4597_v8, %v3184_v5  ;;  %v3213_v57 = vsub.f32 1.0, %v3212_v19  ;;  %vm6549_vm3 = vcmp.eq.f32.partialorder %v3235_v23, 8.507059e+37  ;;  %v6553_v4 = vadd.f32 1.0, %v4601_v38 }
 0x432   : > { %v3199_v47 = vmul.f32 %v4603_v11, %v3198_v10  ;;  %vm3202_vm5 = vweird.f32 %v4603_v11  ;;  %v3238_v43 = vor.u32 1.1754944e-38, %v3237_v53  ;;  %4612 = vpow2.f32 %v4235_v17 }
 0x433   : > { %v3189_v37 = vsel %vm3188_vm4, %v4597_v8, %v3185_v54  ;;  %v3214_v39 = vmul.f32 %v4605_v59, %v3213_v57  ;;  %vm3217_vm6 = vweird.f32 %v4605_v59  ;;  %v3228_v44 = vsub.f32 1.0, %v3227_v46  ;;  %vm3203_vm7 = vmor %vm3201_vm12, %vm3202_vm5  ;;  %v6575_v8 = vpop.f32.mrf.mxu1 }
 0x434   : > { %v4609_v34 = vpop.eup %4608  ;;  %v3194_v29 = vsel %vm6515_vm11, %v3193_v16, %v3189_v37  ;;  %v3200_v2 = vadd.f32 %v4603_v11, %v3199_v47  ;;  %v3250_v22 = vand.u32 2147483647, %v6521_v24  ;;  %4614 = vrcp.f32 %v6546_v50  ;;  %vm3218_vm9 = vmor %vm3216_vm13, %vm3217_vm6 }
 0x435   : > { %3532 = vst [vmem:[%s5906_s14 + $0x120] sm:$0xff] %v3194_v29  ;;  %v3215_v48 = vadd.f32 %v4605_v59, %v3214_v39  ;;  %v3229_v42 = vmul.f32 %v4607_v36, %v3228_v44  ;;  %vm3232_vm8 = vweird.f32 %v4607_v36  ;;  %v3242_v45 = vmul.f32 %v4609_v34, %v6521_v24  ;;  %v6607_v53 = vpop.f32.mrf.mxu0 }
 0x436   : > { %v4611_v55 = vpop.eup %4610  ;;  %v3204_v15 = vsel %vm3203_vm7, %v4603_v11, %v3200_v2  ;;  %vm3246_vm10 = vweird.f32 %v6521_v24  ;;  %v3252_v33 = vand.u32 2147483648, %v6521_v24  ;;  %v3265_v27 = vand.u32 2147483647, %v6523_v3  ;;  %vm3233_vm11 = vmor %vm3231_vm2, %vm3232_vm8 }
 0x437   : > { %v3209_v30 = vsel %vm6531_vm14, %v3208_v18, %v3204_v15  ;;  %v3219_v0 = vsel %vm3218_vm9, %v4605_v59, %v3215_v48  ;;  %v3230_v14 = vadd.f32 %v4607_v36, %v3229_v42  ;;  %v3243_v32 = vsub.f32 1.0, %v3242_v45 }
 0x438   : > { %v4613_v62 = vpop.eup %4612  ;;  %3533 = vst [vmem:[%s5906_s14 + $0x128] sm:$0xff] %v3209_v30  ;;  %v3224_v35 = vsel %vm6540_vm0, %v3223_v6, %v3219_v0  ;;  %vm6583_vm12 = vcmp.eq.f32.partialorder %v3250_v22, 8.507059e+37  ;;  %v3257_v1 = vmul.f32 %v4611_v55, %v6523_v3  ;;  %v3267_v20 = vand.u32 2147483648, %v6523_v3  ;;  %v2406_v2 = vpop.f32.mrf.mxu3 }
 0x439   : > { %3534 = vst.msk [vmem:[%s5906_s14 + $0x130] sm:$0xff] %vm883_vm1, %v3224_v35  ;;  %v3234_v51 = vsel %vm3233_vm11, %v4607_v36, %v3230_v14  ;;  %v3244_v17 = vmul.f32 %v4609_v34, %v3243_v32  ;;  %vm3247_vm13 = vweird.f32 %v4609_v34  ;;  %4616 = vrcp.f32 %v6553_v4 }
 0x43a   : > { %v4615_v38 = vpop.eup %4614  ;;  %v3239_v49 = vsel %vm6549_vm3, %v3238_v43, %v3234_v51  ;;  %v3253_v16 = vor.u32 1.1754944e-38, %v3252_v33  ;;  %v3258_v26 = vsub.f32 1.0, %v3257_v1  ;;  %vm3261_vm14 = vweird.f32 %v6523_v3  ;;  %vm3248_vm0 = vmor %vm3246_vm10, %vm3247_vm13 }
 0x43b   : > { %3535 = vst [vmem:[%s5906_s14 + $0x138] sm:$0xff] %v3239_v49  ;;  %v3245_v11 = vadd.f32 %v4609_v34, %v3244_v17  ;;  %vm6596_vm15 = vcmp.eq.f32.partialorder %v3265_v27, 8.507059e+37  ;;  %v3272_v23 = vmul.f32 %v4615_v38, %v6546_v50  ;;  %v3280_v59 = vand.u32 2147483647, %v6546_v50  ;;  %v6628_v39 = vpop.f32.mrf.mxu1 }
 0x43c   : > { %v3259_v56 = vmul.f32 %v4611_v55, %v3258_v26  ;;  %vm3262_vm2 = vweird.f32 %v4611_v55  ;;  %v3282_v21 = vand.u32 2147483648, %v6546_v50  ;;  %v6605_v18 = vadd.f32 1.0, %v4613_v62 }
 0x43d   : > { %v3249_v5 = vsel %vm3248_vm0, %v4609_v34, %v3245_v11  ;;  %v3268_v19 = vor.u32 1.1754944e-38, %v3267_v20  ;;  %v3273_v9 = vsub.f32 1.0, %v3272_v23  ;;  %v4236_v36 = vmul.f32 -1.442695, %v6506_v61  ;;  %vm3263_vm4 = vmor %vm3261_vm14, %vm3262_vm2  ;;  %v2295_v33 = vpop.f32.mrf.mxu0 }
 0x43e   : > { %v3254_v10 = vsel %vm6583_vm12, %v3253_v16, %v3249_v5  ;;  %v3260_v6 = vadd.f32 %v4611_v55, %v3259_v56  ;;  %vm3276_vm3 = vweird.f32 %v6546_v50  ;;  %v2344_v24 = vadd.f32 %v6487_v28, %v5846_v52 }
 0x43f   : > { %v4617_v54 = vpop.eup %4616  ;;  %3536 = vst [vmem:[%s5906_s14 + $0x140] sm:$0xff] %v3254_v10  ;;  %v3274_v57 = vmul.f32 %v4615_v38, %v3273_v9  ;;  %vm3277_vm5 = vweird.f32 %v4615_v38  ;;  %vm6618_vm6 = vcmp.eq.f32.partialorder %v3280_v59, 8.507059e+37  ;;  %4618 = vrcp.f32 %v6605_v18 }
 0x440   : > { %v3264_v61 = vsel %vm3263_vm4, %v4611_v55, %v3260_v6  ;;  %v3283_v12 = vor.u32 1.1754944e-38, %v3282_v21  ;;  %v3287_v47 = vmul.f32 %v4617_v54, %v6553_v4  ;;  %v3295_v28 = vand.u32 2147483647, %v6553_v4  ;;  %vm3278_vm7 = vmor %vm3276_vm3, %vm3277_vm5  ;;  %v6667_v59 = vpop.f32.mrf.mxu3 }
 0x441   : > { %v3269_v43 = vsel %vm6596_vm15, %v3268_v19, %v3264_v61  ;;  %v3275_v37 = vadd.f32 %v4615_v38, %v3274_v57  ;;  %v3297_v3 = vand.u32 2147483648, %v6553_v4  ;;  %4620 = vpow2.f32 %v4236_v36 }
 0x442   : > { %3537 = vst.msk [vmem:[%s5906_s14 + $0x148] sm:$0xff] %vm883_vm1, %v3269_v43  ;;  %v3288_v44 = vsub.f32 1.0, %v3287_v47  ;;  %vm3292_vm8 = vweird.f32 %v4617_v54  ;;  %v4237_v34 = vmul.f32 -1.442695, %v2344_v24  ;;  %v2402_v29 = vadd.f32 %v6537_v7, %v5853_v40 }
 0x443   : > { %v3279_v22 = vsel %vm3278_vm7, %v4615_v38, %v3275_v37  ;;  %v2289_v48 = vadd.f32 %v6503_v13, %v5844_v41  ;;  %v2347_v42 = vadd.f32 %v6528_v31, %v5846_v52  ;;  %v2405_v45 = vadd.f32 %v2404_v63, %v5853_v40  ;;  %v2353_v38 = vpop.f32.mrf.mxu1 }
 0x444   : > { %v3284_v50 = vsel %vm6618_vm6, %v3283_v12, %v3279_v22  ;;  %v3289_v55 = vmul.f32 %v4617_v54, %v3288_v44  ;;  %4622 = vpow2.f32 %v4237_v34  ;;  %v4238_v15 = vmul.f32 -1.442695, %v2402_v29 }
 0x445   : > { %v4619_v27 = vpop.eup %4618  ;;  %3538 = vst [vmem:[%s5906_s14 + $0x150] sm:$0xff] %v3284_v50  ;;  %vm3291_vm9 = vweird.f32 %v6553_v4  ;;  %vm6645_vm10 = vcmp.eq.f32.partialorder %v3295_v28, 8.507059e+37  ;;  %v4239_v13 = vmul.f32 -1.442695, %v2289_v48  ;;  %v4240_v30 = vmul.f32 -1.442695, %v2347_v42 }
 0x446   : > { %v3290_v31 = vadd.f32 %v4617_v54, %v3289_v55  ;;  %v3298_v0 = vor.u32 1.1754944e-38, %v3297_v3  ;;  %v3302_v14 = vmul.f32 %v4619_v27, %v6605_v18  ;;  %4624 = vpow2.f32 %v4238_v15  ;;  %vm3293_vm11 = vmor %vm3291_vm9, %vm3292_vm8 }
 0x447   : > { %v4621_v32 = vpop.eup %4620  ;;  %v3310_v62 = vand.u32 2147483647, %v6605_v18  ;;  %4626 = vpow2.f32 %v4239_v13  ;;  %v4241_v35 = vmul.f32 -1.442695, %v2405_v45  ;;  %v2291_v4 = vadd.f32 %v6557_v60, %v5844_v41 }
 0x448   : > { %v3294_v25 = vsel %vm3293_vm11, %v4617_v54, %v3290_v31  ;;  %v3303_v1 = vsub.f32 1.0, %v3302_v14  ;;  %v6654_v20 = vadd.f32 1.0, %v4621_v32  ;;  %4628 = vpow2.f32 %v4240_v30 }
 0x449   : > { %v3299_v63 = vsel %vm6645_vm10, %v3298_v0, %v3294_v25  ;;  %v3312_v51 = vand.u32 2147483648, %v6605_v18  ;;  %v2349_v17 = vadd.f32 %v6575_v8, %v5846_v52  ;;  %vm3307_vm12 = vweird.f32 %v4619_v27 }
 0x44a   : > { %v4623_v49 = vpop.eup %4622  ;;  %3539 = vst [vmem:[%s5906_s14 + $0x158] sm:$0xff] %v3299_v63  ;;  %v3304_v16 = vmul.f32 %v4619_v27, %v3303_v1  ;;  %4630 = vrcp.f32 %v6654_v20  ;;  %vm3306_vm13 = vweird.f32 %v6605_v18  ;;  %v4242_v26 = vmul.f32 -1.442695, %v2291_v4 }
 0x44b   : > { %v6664_v60 = vadd.f32 1.0, %v4623_v49  ;;  %vm3311_vm14 = vcmp.eq.f32.partialorder %v3310_v62, 8.507059e+37  ;;  %4632 = vpow2.f32 %v4241_v35  ;;  %v2407_v23 = vadd.f32 %v2406_v2, %v5853_v40  ;;  %vm3308_vm15 = vmor %vm3306_vm13, %vm3307_vm12  ;;  %v2411_v2 = vpop.f32.mrf.mxu3 }
 0x44c   : > { %v4625_v11 = vpop.eup %4624  ;;  %v3305_v58 = vadd.f32 %v4619_v27, %v3304_v16  ;;  %v3313_v56 = vor.u32 1.1754944e-38, %v3312_v51  ;;  %v3325_v21 = vand.u32 2147483647, %v6654_v20  ;;  %v4243_v18 = vmul.f32 -1.442695, %v2349_v17 }
 0x44d   : > { %v4627_v8 = vpop.eup %4626  ;;  %4634 = vrcp.f32 %v6664_v60  ;;  %v3327_v9 = vand.u32 2147483648, %v6654_v20  ;;  %v6672_v36 = vadd.f32 1.0, %v4625_v11  ;;  %v3340_v57 = vand.u32 2147483647, %v6664_v60 }
 0x44e   : > { %v4629_v5 = vpop.eup %4628  ;;  %v3309_v19 = vsel %vm3308_vm15, %v4619_v27, %v3305_v58  ;;  %v6674_v10 = vadd.f32 1.0, %v4627_v8  ;;  %4636 = vpow2.f32 %v4242_v26  ;;  %v4244_v46 = vmul.f32 -1.442695, %v2407_v23 }
 0x44f   : > { %v3314_v6 = vsel %vm3311_vm14, %v3313_v56, %v3309_v19  ;;  %v6676_v24 = vadd.f32 1.0, %v4629_v5  ;;  %4638 = vrcp.f32 %v6672_v36  ;;  %vm3321_vm0 = vweird.f32 %v6654_v20 }
 0x450   : > { %v4631_v54 = vpop.eup %4630  ;;  %3540 = vst.msk [vmem:[%s5906_s14 + $0x160] sm:$0xff] %vm883_vm1, %v3314_v6  ;;  %4640 = vrcp.f32 %v6674_v10  ;;  %v6687_v12 = vadd.f32 %v6607_v53, %v5844_v41  ;;  %vm6689_vm2 = vcmp.eq.f32.partialorder %v3325_v21, 8.507059e+37  ;;  %v3328_v43 = vor.u32 1.1754944e-38, %v3327_v9 }
 0x451   : > { %v3317_v61 = vmul.f32 %v4631_v54, %v6654_v20  ;;  %v4633_v47 = vpop.eup %4632  ;;  %v3342_v37 = vand.u32 2147483648, %v6664_v60  ;;  %4642 = vpow2.f32 %v4243_v18  ;;  %v3355_v34 = vand.u32 2147483647, %v6672_v36 }
 0x452   : > { %v3357_v29 = vand.u32 2147483648, %v6672_v36  ;;  %4644 = vrcp.f32 %v6676_v24  ;;  %vm3336_vm3 = vweird.f32 %v6664_v60  ;;  %vm6699_vm4 = vcmp.eq.f32.partialorder %v3340_v57, 8.507059e+37 }
 0x453   : > { %v4635_v3 = vpop.eup %4634  ;;  %v3318_v44 = vsub.f32 1.0, %v3317_v61  ;;  %4646 = vpow2.f32 %v4244_v46  ;;  %vm3322_vm5 = vweird.f32 %v4631_v54  ;;  %v3370_v42 = vand.u32 2147483647, %v6674_v10 }
 0x454   : > { %v3332_v41 = vmul.f32 %v4635_v3, %v6664_v60  ;;  %v4637_v22 = vpop.eup %4636  ;;  %v6704_v45 = vadd.f32 1.0, %v4633_v47  ;;  %v3343_v15 = vor.u32 1.1754944e-38, %v3342_v37  ;;  %vm3351_vm6 = vweird.f32 %v6672_v36  ;;  %vm3323_vm9 = vmor %vm3321_vm0, %vm3322_vm5 }
 0x455   : > { %v3319_v48 = vmul.f32 %v4631_v54, %v3318_v44  ;;  %v4639_v50 = vpop.eup %4638  ;;  %vm3366_vm7 = vweird.f32 %v6674_v10  ;;  %vm6709_vm8 = vcmp.eq.f32.partialorder %v3355_v34, 8.507059e+37  ;;  %v3358_v30 = vor.u32 1.1754944e-38, %v3357_v29 }
 0x456   : > { %v3333_v55 = vsub.f32 1.0, %v3332_v41  ;;  %v4641_v33 = vpop.eup %4640  ;;  %v3347_v7 = vmul.f32 %v4639_v50, %v6672_v36  ;;  %v3372_v31 = vand.u32 2147483648, %v6674_v10  ;;  %vm3337_vm10 = vweird.f32 %v4635_v3 }
 0x457   : > { %v3320_v27 = vadd.f32 %v4631_v54, %v3319_v48  ;;  %v4643_v0 = vpop.eup %4642  ;;  %v3362_v32 = vmul.f32 %v4641_v33, %v6674_v10  ;;  %vm3381_vm11 = vweird.f32 %v6676_v24  ;;  %v6719_v62 = vadd.f32 1.0, %v4637_v22  ;;  %vm3338_vm13 = vmor %vm3336_vm3, %vm3337_vm10 }
 0x458   : > { %v3334_v14 = vmul.f32 %v4635_v3, %v3333_v55  ;;  %v4645_v35 = vpop.eup %4644  ;;  %v3348_v25 = vsub.f32 1.0, %v3347_v7  ;;  %vm6721_vm12 = vcmp.eq.f32.partialorder %v3370_v42, 8.507059e+37  ;;  %4648 = vrcp.f32 %v6704_v45 }
 0x459   : > { %v3324_v4 = vsel %vm3323_vm9, %v4631_v54, %v3320_v27  ;;  %v4647_v20 = vpop.eup %4646  ;;  %v3363_v17 = vsub.f32 1.0, %v3362_v32  ;;  %v3377_v38 = vmul.f32 %v4645_v35, %v6676_v24  ;;  %vm3352_vm14 = vweird.f32 %v4639_v50 }
 0x45a   : > { %v3329_v63 = vsel %vm6689_vm2, %v3328_v43, %v3324_v4  ;;  %v3335_v51 = vadd.f32 %v4635_v3, %v3334_v14  ;;  %v3349_v49 = vmul.f32 %v4639_v50, %v3348_v25  ;;  %vm3367_vm15 = vweird.f32 %v4641_v33  ;;  %vm3353_vm0 = vmor %vm3351_vm6, %vm3352_vm14 }
 0x45b   : > { %3541 = vst [vmem:[%s5906_s14 + $0x168] sm:$0xff] %v3329_v63  ;;  %v6733_v16 = vadd.f32 1.0, %v4643_v0  ;;  %v3364_v11 = vmul.f32 %v4641_v33, %v3363_v17  ;;  %v3378_v58 = vsub.f32 1.0, %v3377_v38  ;;  %4650 = vrcp.f32 %v6719_v62  ;;  %vm3368_vm3 = vmor %vm3366_vm7, %vm3367_vm15 }
 0x45c   : > { %v3339_v26 = vsel %vm3338_vm13, %v4635_v3, %v3335_v51  ;;  %v3350_v8 = vadd.f32 %v4639_v50, %v3349_v49  ;;  %v3373_v56 = vor.u32 1.1754944e-38, %v3372_v31  ;;  %v3387_v21 = vand.u32 2147483648, %v6676_v24 }
 0x45d   : > { %v3344_v23 = vsel %vm6699_vm4, %v3343_v15, %v3339_v26  ;;  %v3365_v60 = vadd.f32 %v4641_v33, %v3364_v11  ;;  %v3379_v18 = vmul.f32 %v4645_v35, %v3378_v58  ;;  %vm3382_vm2 = vweird.f32 %v4645_v35 }
 0x45e   : > { %3542 = vst [vmem:[%s5906_s14 + $0x170] sm:$0xff] %v3344_v23  ;;  %v3385_v5 = vand.u32 2147483647, %v6676_v24  ;;  %v4649_v19 = vpop.eup %4648  ;;  %v3354_v9 = vsel %vm3353_vm0, %v4639_v50, %v3350_v8  ;;  %v3400_v6 = vand.u32 2147483647, %v6704_v45  ;;  %4652 = vrcp.f32 %v6733_v16  ;;  %vm3383_vm4 = vmor %vm3381_vm11, %vm3382_vm2 }
 0x45f   : > { %v6748_v54 = vadd.f32 1.0, %v4647_v20  ;;  %v3359_v36 = vsel %vm6709_vm8, %v3358_v30, %v3354_v9  ;;  %v3369_v57 = vsel %vm3368_vm3, %v4641_v33, %v3365_v60  ;;  %v3380_v46 = vadd.f32 %v4645_v35, %v3379_v18 }
 0x460   : > { %v3392_v61 = vmul.f32 %v4649_v19, %v6704_v45  ;;  %3543 = vst.msk [vmem:[%s5906_s14 + $0x178] sm:$0xff] %vm883_vm1, %v3359_v36  ;;  %v3374_v10 = vsel %vm6721_vm12, %v3373_v56, %v3369_v57  ;;  %v3388_v47 = vor.u32 1.1754944e-38, %v3387_v21  ;;  %v3402_v28 = vand.u32 2147483648, %v6704_v45 }
 0x461   : > { %v4245_v43 = vmul.f32 -1.442695, %v6687_v12  ;;  %v4651_v37 = vpop.eup %4650  ;;  %3544 = vst [vmem:[%s5906_s14 + $0x180] sm:$0xff] %v3374_v10  ;;  %v3384_v3 = vsel %vm3383_vm4, %v4645_v35, %v3380_v46  ;;  %vm3386_vm5 = vcmp.eq.f32.partialorder %v3385_v5, 8.507059e+37  ;;  %v3417_v41 = vand.u32 2147483648, %v6719_v62 }
 0x462   : > { %v3393_v44 = vsub.f32 1.0, %v3392_v61  ;;  %v3389_v34 = vsel %vm3386_vm5, %v3388_v47, %v3384_v3  ;;  %v3407_v29 = vmul.f32 %v4651_v37, %v6719_v62  ;;  %4654 = vrcp.f32 %v6748_v54 }
 0x463   : > { %3545 = vst [vmem:[%s5906_s14 + $0x188] sm:$0xff] %v3389_v34  ;;  %vm3396_vm6 = vweird.f32 %v6704_v45  ;;  %vm3397_vm7 = vweird.f32 %v4649_v19  ;;  %vm6767_vm8 = vcmp.eq.f32.partialorder %v3400_v6, 8.507059e+37  ;;  %v3403_v2 = vor.u32 1.1754944e-38, %v3402_v28 }
 0x464   : > { %v3394_v24 = vmul.f32 %v4649_v19, %v3393_v44  ;;  %v4653_v12 = vpop.eup %4652  ;;  %v3408_v22 = vsub.f32 1.0, %v3407_v29  ;;  %vm3411_vm9 = vweird.f32 %v6719_v62  ;;  %4656 = vpow2.f32 %v4245_v43  ;;  %vm3398_vm10 = vmor %vm3396_vm6, %vm3397_vm7 }
 0x465   : > { %v3415_v42 = vand.u32 2147483647, %v6719_v62  ;;  %v3422_v50 = vmul.f32 %v4653_v12, %v6733_v16  ;;  %v2352_v45 = vadd.f32 %v6628_v39, %v5846_v52  ;;  %vm3412_vm11 = vweird.f32 %v4651_v37 }
 0x466   : > { %v3395_v48 = vadd.f32 %v4649_v19, %v3394_v24  ;;  %v3409_v55 = vmul.f32 %v4651_v37, %v3408_v22  ;;  %v3418_v15 = vor.u32 1.1754944e-38, %v3417_v41  ;;  %v2410_v33 = vadd.f32 %v6667_v59, %v5853_v40  ;;  %vm3413_vm12 = vmor %vm3411_vm9, %vm3412_vm11 }
 0x467   : > { %v3423_v7 = vsub.f32 1.0, %v3422_v50  ;;  %v3430_v13 = vand.u32 2147483647, %v6733_v16  ;;  %v4246_v30 = vmul.f32 -1.442695, %v2352_v45  ;;  %v3432_v32 = vand.u32 2147483648, %v6733_v16 }
 0x468   : > { %v3399_v27 = vsel %vm3398_vm10, %v4649_v19, %v3395_v48  ;;  %v4655_v31 = vpop.eup %4654  ;;  %v3410_v14 = vadd.f32 %v4651_v37, %v3409_v55  ;;  %v4247_v52 = vmul.f32 -1.442695, %v2410_v33  ;;  %vm3427_vm13 = vweird.f32 %v4653_v12 }
 0x469   : > { %v3404_v0 = vsel %vm6767_vm8, %v3403_v2, %v3399_v27  ;;  %v3424_v40 = vmul.f32 %v4653_v12, %v3423_v7  ;;  %v3437_v39 = vmul.f32 %v4655_v31, %v6748_v54  ;;  %4658 = vpow2.f32 %v4246_v30 }
 0x46a   : > { %3546 = vst.msk [vmem:[%s5906_s14 + $0x190] sm:$0xff] %vm883_vm1, %v3404_v0  ;;  %v4657_v59 = vpop.eup %4656  ;;  %v3414_v35 = vsel %vm3413_vm12, %v4651_v37, %v3410_v14  ;;  %vm3416_vm14 = vcmp.eq.f32.partialorder %v3415_v42, 8.507059e+37  ;;  %vm3426_vm15 = vweird.f32 %v6733_v16  ;;  %4660 = vpow2.f32 %v4247_v52 }
 0x46b   : > { %v3419_v4 = vsel %vm3416_vm14, %v3418_v15, %v3414_v35  ;;  %v3425_v25 = vadd.f32 %v4653_v12, %v3424_v40  ;;  %v3438_v1 = vsub.f32 1.0, %v3437_v39  ;;  %v2638_v20 = vadd.f32 1.0, %v4657_v59  ;;  %vm3428_vm0 = vmor %vm3426_vm15, %vm3427_vm13 }
 0x46c   : > { %3547 = vst [vmem:[%s5906_s14 + $0x198] sm:$0xff] %v3419_v4  ;;  %vm3431_vm2 = vcmp.eq.f32.partialorder %v3430_v13, 8.507059e+37  ;;  %v3433_v62 = vor.u32 1.1754944e-38, %v3432_v32  ;;  %v3445_v63 = vand.u32 2147483647, %v6748_v54  ;;  %v3447_v51 = vand.u32 2147483648, %v6748_v54 }
 0x46d   : > { %v3429_v17 = vsel %vm3428_vm0, %v4653_v12, %v3425_v25  ;;  %v3439_v38 = vmul.f32 %v4655_v31, %v3438_v1  ;;  %vm3442_vm3 = vweird.f32 %v4655_v31  ;;  %4662 = vrcp.f32 %v2638_v20 }
 0x46e   : > { %v3434_v49 = vsel %vm3431_vm2, %v3433_v62, %v3429_v17  ;;  %vm3441_vm4 = vweird.f32 %v6748_v54  ;;  %v3448_v58 = vor.u32 1.1754944e-38, %v3447_v51  ;;  %vm3446_vm6 = vcmp.eq.f32.partialorder %v3445_v63, 8.507059e+37 }
 0x46f   : > { %v4659_v16 = vpop.eup %4658  ;;  %3548 = vst [vmem:[%s5906_s14 + $0x1a0] sm:$0xff] %v3434_v49  ;;  %v3440_v26 = vadd.f32 %v4655_v31, %v3439_v38  ;;  %vm3443_vm5 = vmor %vm3441_vm4, %vm3442_vm3  ;;  %v3460_v19 = vand.u32 2147483647, %v2638_v20  ;;  %v3462_v9 = vand.u32 2147483648, %v2638_v20  ;;  %vm3456_vm8 = vweird.f32 %v2638_v20 }
 0x470   : > { %v4661_v11 = vpop.eup %4660  ;;  %v2639_v23 = vadd.f32 1.0, %v4659_v16 }
 0x471   : > { %v3444_v8 = vsel %vm3443_vm5, %v4655_v31, %v3440_v26  ;;  %v2640_v56 = vadd.f32 1.0, %v4661_v11  ;;  %vm3461_vm10 = vcmp.eq.f32.partialorder %v3460_v19, 8.507059e+37  ;;  %v3463_v10 = vor.u32 1.1754944e-38, %v3462_v9 }
 0x472   : > { %v3449_v21 = vsel %vm3446_vm6, %v3448_v58, %v3444_v8  ;;  %4664 = vrcp.f32 %v2639_v23  ;;  %v3475_v43 = vand.u32 2147483647, %v2639_v23  ;;  %v3477_v37 = vand.u32 2147483648, %v2639_v23 }
 0x473   : > { %v4663_v60 = vpop.eup %4662  ;;  %3549 = vst.msk [vmem:[%s5906_s14 + $0x1a8] sm:$0xff] %vm883_vm1, %v3449_v21  ;;  %4666 = vrcp.f32 %v2640_v56  ;;  %v3492_v29 = vand.u32 2147483648, %v2640_v56  ;;  %v3490_v24 = vand.u32 2147483647, %v2640_v56  ;;  %vm3471_vm13 = vweird.f32 %v2639_v23 }
 0x474   : > { %v3452_v18 = vmul.f32 %v4663_v60, %v2638_v20  ;;  %vm3457_vm7 = vweird.f32 %v4663_v60  ;;  %v3478_v12 = vor.u32 1.1754944e-38, %v3477_v37  ;;  %vm3486_vm15 = vweird.f32 %v2640_v56 }
 0x475   : > { %vm3458_vm9 = vmor %vm3456_vm8, %vm3457_vm7  ;;  %vm3476_vm0 = vcmp.eq.f32.partialorder %v3475_v43, 8.507059e+37  ;;  %v3493_v48 = vor.u32 1.1754944e-38, %v3492_v29  ;;  %vm3491_vm3 = vcmp.eq.f32.partialorder %v3490_v24, 8.507059e+37 }
 0x476   : > { %v3453_v5 = vsub.f32 1.0, %v3452_v18 }
 0x478   : > { %v4665_v6 = vpop.eup %4664  ;;  %v3454_v36 = vmul.f32 %v4663_v60, %v3453_v5 }
 0x479   : > { %v4667_v54 = vpop.eup %4666  ;;  %v3467_v57 = vmul.f32 %v4665_v6, %v2639_v23  ;;  %vm3472_vm11 = vweird.f32 %v4665_v6 }
 0x47a   : > { %v3455_v46 = vadd.f32 %v4663_v60, %v3454_v36  ;;  %v3482_v61 = vmul.f32 %v4667_v54, %v2640_v56  ;;  %vm3487_vm12 = vweird.f32 %v4667_v54  ;;  %vm3473_vm14 = vmor %vm3471_vm13, %vm3472_vm11 }
 0x47b   : > { %v3468_v47 = vsub.f32 1.0, %v3467_v57  ;;  %vm3488_vm2 = vmor %vm3486_vm15, %vm3487_vm12 }
 0x47c   : > { %v3459_v28 = vsel %vm3458_vm9, %v4663_v60, %v3455_v46  ;;  %v3483_v3 = vsub.f32 1.0, %v3482_v61 }
 0x47d   : > { %v3464_v44 = vsel %vm3461_vm10, %v3463_v10, %v3459_v28  ;;  %v3469_v34 = vmul.f32 %v4665_v6, %v3468_v47 }
 0x47e   : > { %3550 = vst [vmem:[%s5906_s14 + $0x1b0] sm:$0xff] %v3464_v44  ;;  %v3484_v41 = vmul.f32 %v4667_v54, %v3483_v3 }
 0x47f   : > { %v3470_v53 = vadd.f32 %v4665_v6, %v3469_v34 }
 0x480   : > { %v3485_v2 = vadd.f32 %v4667_v54, %v3484_v41 }
 0x481   : > { %v3474_v22 = vsel %vm3473_vm14, %v4665_v6, %v3470_v53 }
 0x482   : > { %v3479_v42 = vsel %vm3476_vm0, %v3478_v12, %v3474_v22  ;;  %v3489_v50 = vsel %vm3488_vm2, %v4667_v54, %v3485_v2 }
 0x483   : > { %3551 = vst [vmem:[%s5906_s14 + $0x1b8] sm:$0xff] %v3479_v42  ;;  %v3494_v45 = vsel %vm3491_vm3, %v3493_v48, %v3489_v50 }
 0x484   : > { %3552 = vst.msk [vmem:[%s5906_s14 + $0x1c0] sm:$0xff] %vm883_vm1, %v3494_v45 }
 0x485 PF: > { %s23_s21 = sadd.s32 1, %s4674_s21  }
 0x486   : > { %p20_p4 = scmp.ge.s32.totalorder %s23_s21, 4  }
 0x488   :  { %22 = sbr.rel (!%p20_p4) target bundleno = 1 (0x1), region = 112 }

</bundles_post_ra>
